<compile_context>
chip_gen: v6e
topology: v6e:2x2x1
jax: 0.10.0
libtpu: 0.0.40
codegen_flags: <defaults>
</compile_context>

<pallas_src>
import functools

import jax
import jax.numpy as jnp
from jax import lax
from jax.experimental import pallas as pl
from jax.experimental.pallas import tpu as pltpu

_VMEM_LIMIT_BYTES = 32 * 1024 * 1024       # explicit, safe on v5e/v6e/v7x
_MXU_DTYPE = jnp.float32                   # set jnp.bfloat16 for production speed


# ------------------------------ in-kernel math ------------------------------

def _mm(a, b):
    return jnp.dot(a.astype(_MXU_DTYPE), b.astype(_MXU_DTYPE),
                   preferred_element_type=jnp.float32)


def _mm_bt(a, b):
    """a @ b.T as a single dot_general (no materialized transpose)."""
    return lax.dot_general(a.astype(_MXU_DTYPE), b.astype(_MXU_DTYPE),
                           (((1,), (1,)), ((), ())),
                           preferred_element_type=jnp.float32)


def _attention_mlp(k_mat, q_mat, w_ks, b_ks, w_qs, b_qs, w_kv, b_kv, b_proj,
                   n_head):
    """Multi-head Attention(score_function='mlp') for ONE batch element.

    k_mat: (k_len, E), q_mat: (q_len, E) -> (q_len, H_out).
    w_ks/w_qs : (n_head, E)  w_mlp-folded score projections (head-major).
    w_kv      : (n_head, E, H_out) = per-head w_k_h @ w_proj_h (value path
                folded through the output projection -> full-width matmuls).
    b_kv      : (n_head, 1, H_out);  b_proj: (1, H_out).
    """
    kscore = _mm_bt(w_ks, k_mat) + b_ks                        # (n_head, k_len)
    qscore = _mm_bt(w_qs, q_mat) + b_qs                        # (n_head, q_len)
    # All heads at once; tanh is bounded in [-1,1] so exp cannot overflow ->
    # skip the max-subtraction.
    s = jnp.tanh(qscore[:, :, None] + kscore[:, None, :])      # (n_head, q, k)
    e = jnp.exp(s)
    p = e * pl.reciprocal(jnp.sum(e, axis=-1, keepdims=True), approx=True)

    q_len, h_out = q_mat.shape[0], w_kv.shape[-1]
    acc = jnp.zeros((q_len, h_out), jnp.float32)
    for h in range(n_head):                   # static unroll; leading-axis slices
        v_h = _mm(k_mat, w_kv[h]) + b_kv[h]                    # (k_len, H_out)
        acc = acc + _mm(p[h], v_h)                             # (q_len, H_out)
    return acc + b_proj


def _ffn(x, w1, b1, w2, b2):
    """PositionwiseFeedForward: Conv1d(k=1) -> ReLU -> Conv1d(k=1)."""
    h1 = jnp.maximum(_mm(x, w1) + b1, 0.0)
    return _mm(h1, w2) + b2


def _aen_kernel(cl_ref, tl_ref, ctx_ref, tgt_ref, *refs, n_head):
    """Whole AEN forward for one batch element (everything stays in VMEM)."""
    o_ref = refs[-1]
    it = iter(refs[:-1])
    attn_k = tuple(next(it)[...] for _ in range(7))
    ffn_c = tuple(next(it)[...] for _ in range(4))
    attn_q = tuple(next(it)[...] for _ in range(7))
    ffn_t = tuple(next(it)[...] for _ in range(4))
    attn_s1 = tuple(next(it)[...] for _ in range(7))
    dw_hc, dw_s1, dw_ht, db = (next(it)[...] for _ in range(4))

    ctx = ctx_ref[0]                                           # (Lc, E)
    tgt = tgt_ref[0]                                           # (Lt, E)

    hc = _ffn(_attention_mlp(ctx, ctx, *attn_k, n_head=n_head), *ffn_c)   # (Lc,H)
    ht = _ffn(_attention_mlp(ctx, tgt, *attn_q, n_head=n_head), *ffn_t)   # (Lt,H)
    s1 = _attention_mlp(hc, ht, *attn_s1, n_head=n_head)                  # (Lt,H)

    b = pl.program_id(0)
    inv_cl = 1.0 / jnp.maximum(cl_ref[b], 1).astype(jnp.float32)   # SMEM scalars
    inv_tl = 1.0 / jnp.maximum(tl_ref[b], 1).astype(jnp.float32)

    hc_mean = jnp.sum(hc, axis=0, keepdims=True) * inv_cl          # (1, H)
    ht_mean = jnp.sum(ht, axis=0, keepdims=True) * inv_tl
    # NB: the torch reference divides the s1 sum by *context_len* -- reproduced.
    s1_mean = jnp.sum(s1, axis=0, keepdims=True) * inv_cl

    # dense_w split per pooled chunk -> no in-kernel lane concat
    o_ref[0] = (_mm(hc_mean, dw_hc) + _mm(s1_mean, dw_s1)
                + _mm(ht_mean, dw_ht) + db)                        # (1, P)


# ------------------------------ pallas wrapper -------------------------------

def _const_spec(arr):
    zeros = (0,) * arr.ndim
    return pl.BlockSpec(arr.shape, lambda b, *_, _z=zeros: _z)


def _aen_fused(context, target, context_len, target_len, weights, n_head):
    B, Lc, E = context.shape
    Lt = target.shape[1]
    P = weights[-1].shape[-1]          # final dense bias (1, P)

    grid_spec = pltpu.PrefetchScalarGridSpec(
        num_scalar_prefetch=2,                       # context_len, target_len -> SMEM
        grid=(B,),
        in_specs=[pl.BlockSpec((1, Lc, E), lambda b, *_: (b, 0, 0)),
                  pl.BlockSpec((1, Lt, E), lambda b, *_: (b, 0, 0))]
                 + [_const_spec(w) for w in weights],
        out_specs=pl.BlockSpec((1, 1, P), lambda b, *_: (b, 0, 0)),
    )
    out = pl.pallas_call(
        functools.partial(_aen_kernel, n_head=n_head),
        out_shape=jax.ShapeDtypeStruct((B, 1, P), jnp.float32),
        grid_spec=grid_spec,
        compiler_params=pltpu.CompilerParams(
            dimension_semantics=("parallel",),       # batch across v7x TCs
            vmem_limit_bytes=_VMEM_LIMIT_BYTES),
    )(context_len, target_len, context, target, *weights)
    return out[:, 0, :]                              # (B, P)


# --------------------------- weight prep (folding) ---------------------------

def _prepare_attn(p, n_head):
    """Head-major score projections with w_mlp folded in, and the value path
    folded through the output projection (exact algebraic rewrites)."""
    in_dim, hd = p["w_k"].shape
    d = hd // n_head
    out_dim = p["w_proj"].shape[1]
    wm_k, wm_q = p["w_mlp"][:d], p["w_mlp"][d:]
    w_k_r = p["w_k"].reshape(in_dim, n_head, d)
    w_q_r = p["w_q"].reshape(in_dim, n_head, d)
    b_k_r = p["b_k"].reshape(n_head, d)
    b_q_r = p["b_q"].reshape(n_head, d)
    w_proj_r = p["w_proj"].reshape(n_head, d, out_dim)

    w_ks = jnp.einsum("ehd,d->he", w_k_r, wm_k)                 # (n_head, in_dim)
    b_ks = (b_k_r * wm_k[None, :]).sum(-1).reshape(n_head, 1)
    w_qs = jnp.einsum("ehd,d->he", w_q_r, wm_q)
    b_qs = (b_q_r * wm_q[None, :]).sum(-1).reshape(n_head, 1)
    w_kv = jnp.einsum("ehd,hdf->hef", w_k_r, w_proj_r)          # (n_head, in, out)
    b_kv = jnp.einsum("hd,hdf->hf", b_k_r, w_proj_r).reshape(n_head, 1, out_dim)
    return (w_ks, b_ks, w_qs, b_qs, w_kv, b_kv, p["b_proj"].reshape(1, out_dim))


def _prepare_ffn(p):
    return (p["w1"], p["b1"].reshape(1, -1), p["w2"], p["b2"].reshape(1, -1))


# -------------------------------- model wiring -------------------------------

@functools.partial(jax.jit, static_argnames=("n_head",))
def aen_glove_forward(params, context_ids, target_ids, n_head=8):
    # lengths: count of non-zero token ids (id 0 == padding)
    context_len = jnp.sum(context_ids != 0, axis=-1).astype(jnp.int32)
    target_len = jnp.sum(target_ids != 0, axis=-1).astype(jnp.int32)

    emb = params["embedding"]
    context = jnp.take(emb, context_ids, axis=0)   # (B, Lc, E)
    target = jnp.take(emb, target_ids, axis=0)     # (B, Lt, E)

    # SqueezeEmbedding: zero the padded positions (pad_packed_sequence pads with
    # zeros); the "truncate to batch max length" is a no-op here because one
    # sequence in the batch is full length.  As in the torch reference, padded
    # positions still participate in attention (no softmax mask).
    Lc, Lt = context_ids.shape[1], target_ids.shape[1]
    cmask = (jnp.arange(Lc)[None, :] < context_len[:, None]).astype(jnp.float32)
    tmask = (jnp.arange(Lt)[None, :] < target_len[:, None]).astype(jnp.float32)
    context = context * cmask[..., None]
    target = target * tmask[..., None]

    H = params["dense_w"].shape[0] // 3
    weights = (_prepare_attn(params["attn_k"], n_head)
               + _prepare_ffn(params["ffn_c"])
               + _prepare_attn(params["attn_q"], n_head)
               + _prepare_ffn(params["ffn_t"])
               + _prepare_attn(params["attn_s1"], n_head)
               + (params["dense_w"][:H], params["dense_w"][H:2 * H],
                  params["dense_w"][2 * H:], params["dense_b"].reshape(1, -1)))

    # Dropout layers are identity at inference time.
    return _aen_fused(context, target, context_len, target_len, weights, n_head)


# ----------------------------- deterministic init ----------------------------

def init_params(key, vocab, embed_dim, hidden_dim, n_head, polarities):
    def nrm(k, shape, scale=0.1):
        return scale * jax.random.normal(k, shape, dtype=jnp.float32)

    keys = iter(jax.random.split(key, 32))

    def attn_params(in_dim, out_dim):
        d = in_dim // n_head
        return {
            "w_k": nrm(next(keys), (in_dim, n_head * d)),
            "b_k": nrm(next(keys), (n_head * d,)),
            "w_q": nrm(next(keys), (in_dim, n_head * d)),
            "b_q": nrm(next(keys), (n_head * d,)),
            "w_mlp": nrm(next(keys), (2 * d,)),
            "w_proj": nrm(next(keys), (n_head * d, out_dim)),
            "b_proj": nrm(next(keys), (out_dim,)),
        }

    def ffn_params(h):
        return {"w1": nrm(next(keys), (h, h)), "b1": nrm(next(keys), (h,)),
                "w2": nrm(next(keys), (h, h)), "b2": nrm(next(keys), (h,))}

    return {
        "embedding": nrm(next(keys), (vocab, embed_dim), scale=0.5),
        "attn_k": attn_params(embed_dim, hidden_dim),
        "attn_q": attn_params(embed_dim, hidden_dim),
        "ffn_c": ffn_params(hidden_dim),
        "ffn_t": ffn_params(hidden_dim),
        "attn_s1": attn_params(hidden_dim, hidden_dim),
        "dense_w": nrm(next(keys), (hidden_dim * 3, polarities)),
        "dense_b": nrm(next(keys), (polarities,)),
    }


if __name__ == "__main__":
    B, Lc, Lt, E, H, NH, P, V = 2, 16, 8, 32, 32, 8, 3, 50

    key = jax.random.PRNGKey(0)
    k_ids_c, k_ids_t, k_params = jax.random.split(key, 3)

    context_ids = jax.random.randint(k_ids_c, (B, Lc), 1, V, dtype=jnp.int32)
    target_ids = jax.random.randint(k_ids_t, (B, Lt), 1, V, dtype=jnp.int32)
    # trailing padding on the second sequence (row 0 stays full length so that
    # SqueezeEmbedding's batch-max truncation is a no-op)
    context_ids = context_ids.at[1, 12:].set(0)
    target_ids = target_ids.at[1, 6:].set(0)

    params = init_params(k_params, V, E, H, NH, P)

    out = aen_glove_forward(params, context_ids, target_ids, n_head=NH)
    out = jax.block_until_ready(out)

    assert out.shape == (B, P), out.shape
    assert bool(jnp.all(jnp.isfinite(out)))
    print("KERNEL_OK")
</pallas_src>

<mosaic_0001>
module attributes {stable_mosaic.version = 11 : i64} {
  func.func @_aen_kernel(%arg0: i32, %arg1: memref<2xi32, #tpu.memory_space<smem>>, %arg2: memref<2xi32, #tpu.memory_space<smem>>, %arg3: memref<1x16x32xf32, #tpu.memory_space<vmem>>, %arg4: memref<1x8x32xf32, #tpu.memory_space<vmem>>, %arg5: memref<8x32xf32, #tpu.memory_space<vmem>>, %arg6: memref<8x1xf32, #tpu.memory_space<vmem>>, %arg7: memref<8x32xf32, #tpu.memory_space<vmem>>, %arg8: memref<8x1xf32, #tpu.memory_space<vmem>>, %arg9: memref<8x32x32xf32, #tpu.memory_space<vmem>>, %arg10: memref<8x1x32xf32, #tpu.memory_space<vmem>>, %arg11: memref<1x32xf32, #tpu.memory_space<vmem>>, %arg12: memref<32x32xf32, #tpu.memory_space<vmem>>, %arg13: memref<1x32xf32, #tpu.memory_space<vmem>>, %arg14: memref<32x32xf32, #tpu.memory_space<vmem>>, %arg15: memref<1x32xf32, #tpu.memory_space<vmem>>, %arg16: memref<8x32xf32, #tpu.memory_space<vmem>>, %arg17: memref<8x1xf32, #tpu.memory_space<vmem>>, %arg18: memref<8x32xf32, #tpu.memory_space<vmem>>, %arg19: memref<8x1xf32, #tpu.memory_space<vmem>>, %arg20: memref<8x32x32xf32, #tpu.memory_space<vmem>>, %arg21: memref<8x1x32xf32, #tpu.memory_space<vmem>>, %arg22: memref<1x32xf32, #tpu.memory_space<vmem>>, %arg23: memref<32x32xf32, #tpu.memory_space<vmem>>, %arg24: memref<1x32xf32, #tpu.memory_space<vmem>>, %arg25: memref<32x32xf32, #tpu.memory_space<vmem>>, %arg26: memref<1x32xf32, #tpu.memory_space<vmem>>, %arg27: memref<8x32xf32, #tpu.memory_space<vmem>>, %arg28: memref<8x1xf32, #tpu.memory_space<vmem>>, %arg29: memref<8x32xf32, #tpu.memory_space<vmem>>, %arg30: memref<8x1xf32, #tpu.memory_space<vmem>>, %arg31: memref<8x32x32xf32, #tpu.memory_space<vmem>>, %arg32: memref<8x1x32xf32, #tpu.memory_space<vmem>>, %arg33: memref<1x32xf32, #tpu.memory_space<vmem>>, %arg34: memref<32x3xf32, #tpu.memory_space<vmem>>, %arg35: memref<32x3xf32, #tpu.memory_space<vmem>>, %arg36: memref<32x3xf32, #tpu.memory_space<vmem>>, %arg37: memref<1x3xf32, #tpu.memory_space<vmem>>, %arg38: memref<1x1x3xf32, #tpu.memory_space<vmem>>) attributes {dimension_semantics = [#tpu.dimension_semantics<parallel>], iteration_bounds = array<i64: 2>, scalar_prefetch = 2 : i64, scratch_operands = 0 : i64, tpu.core_type = #tpu.core_type<tc>, window_params = [{transform_indices = @transform_0, window_bounds = array<i64: 1, 16, 32>}, {transform_indices = @transform_1, window_bounds = array<i64: 1, 8, 32>}, {pipeline_mode = #tpu.pipeline_mode<synchronous>, transform_indices = @transform_2, window_bounds = array<i64: 8, 32>}, {pipeline_mode = #tpu.pipeline_mode<synchronous>, transform_indices = @transform_3, window_bounds = array<i64: 8, 1>}, {pipeline_mode = #tpu.pipeline_mode<synchronous>, transform_indices = @transform_4, window_bounds = array<i64: 8, 32>}, {pipeline_mode = #tpu.pipeline_mode<synchronous>, transform_indices = @transform_5, window_bounds = array<i64: 8, 1>}, {pipeline_mode = #tpu.pipeline_mode<synchronous>, transform_indices = @transform_6, window_bounds = array<i64: 8, 32, 32>}, {pipeline_mode = #tpu.pipeline_mode<synchronous>, transform_indices = @transform_7, window_bounds = array<i64: 8, 1, 32>}, {pipeline_mode = #tpu.pipeline_mode<synchronous>, transform_indices = @transform_8, window_bounds = array<i64: 1, 32>}, {pipeline_mode = #tpu.pipeline_mode<synchronous>, transform_indices = @transform_9, window_bounds = array<i64: 32, 32>}, {pipeline_mode = #tpu.pipeline_mode<synchronous>, transform_indices = @transform_10, window_bounds = array<i64: 1, 32>}, {pipeline_mode = #tpu.pipeline_mode<synchronous>, transform_indices = @transform_11, window_bounds = array<i64: 32, 32>}, {pipeline_mode = #tpu.pipeline_mode<synchronous>, transform_indices = @transform_12, window_bounds = array<i64: 1, 32>}, {pipeline_mode = #tpu.pipeline_mode<synchronous>, transform_indices = @transform_13, window_bounds = array<i64: 8, 32>}, {pipeline_mode = #tpu.pipeline_mode<synchronous>, transform_indices = @transform_14, window_bounds = array<i64: 8, 1>}, {pipeline_mode = #tpu.pipeline_mode<synchronous>, transform_indices = @transform_15, window_bounds = array<i64: 8, 32>}, {pipeline_mode = #tpu.pipeline_mode<synchronous>, transform_indices = @transform_16, window_bounds = array<i64: 8, 1>}, {pipeline_mode = #tpu.pipeline_mode<synchronous>, transform_indices = @transform_17, window_bounds = array<i64: 8, 32, 32>}, {pipeline_mode = #tpu.pipeline_mode<synchronous>, transform_indices = @transform_18, window_bounds = array<i64: 8, 1, 32>}, {pipeline_mode = #tpu.pipeline_mode<synchronous>, transform_indices = @transform_19, window_bounds = array<i64: 1, 32>}, {pipeline_mode = #tpu.pipeline_mode<synchronous>, transform_indices = @transform_20, window_bounds = array<i64: 32, 32>}, {pipeline_mode = #tpu.pipeline_mode<synchronous>, transform_indices = @transform_21, window_bounds = array<i64: 1, 32>}, {pipeline_mode = #tpu.pipeline_mode<synchronous>, transform_indices = @transform_22, window_bounds = array<i64: 32, 32>}, {pipeline_mode = #tpu.pipeline_mode<synchronous>, transform_indices = @transform_23, window_bounds = array<i64: 1, 32>}, {pipeline_mode = #tpu.pipeline_mode<synchronous>, transform_indices = @transform_24, window_bounds = array<i64: 8, 32>}, {pipeline_mode = #tpu.pipeline_mode<synchronous>, transform_indices = @transform_25, window_bounds = array<i64: 8, 1>}, {pipeline_mode = #tpu.pipeline_mode<synchronous>, transform_indices = @transform_26, window_bounds = array<i64: 8, 32>}, {pipeline_mode = #tpu.pipeline_mode<synchronous>, transform_indices = @transform_27, window_bounds = array<i64: 8, 1>}, {pipeline_mode = #tpu.pipeline_mode<synchronous>, transform_indices = @transform_28, window_bounds = array<i64: 8, 32, 32>}, {pipeline_mode = #tpu.pipeline_mode<synchronous>, transform_indices = @transform_29, window_bounds = array<i64: 8, 1, 32>}, {pipeline_mode = #tpu.pipeline_mode<synchronous>, transform_indices = @transform_30, window_bounds = array<i64: 1, 32>}, {pipeline_mode = #tpu.pipeline_mode<synchronous>, transform_indices = @transform_31, window_bounds = array<i64: 32, 3>}, {pipeline_mode = #tpu.pipeline_mode<synchronous>, transform_indices = @transform_32, window_bounds = array<i64: 32, 3>}, {pipeline_mode = #tpu.pipeline_mode<synchronous>, transform_indices = @transform_33, window_bounds = array<i64: 32, 3>}, {pipeline_mode = #tpu.pipeline_mode<synchronous>, transform_indices = @transform_34, window_bounds = array<i64: 1, 3>}, {transform_indices = @transform_35, window_bounds = array<i64: 1, 1, 3>}]} {
    %c0 = arith.constant 0 : index
    %c0_0 = arith.constant 0 : index
    %0 = vector.load %arg5[%c0, %c0_0] : memref<8x32xf32, #tpu.memory_space<vmem>>, vector<8x32xf32>
    %c0_1 = arith.constant 0 : index
    %c0_2 = arith.constant 0 : index
    %1 = vector.load %arg6[%c0_1, %c0_2] : memref<8x1xf32, #tpu.memory_space<vmem>>, vector<8x1xf32>
    %c0_3 = arith.constant 0 : index
    %c0_4 = arith.constant 0 : index
    %2 = vector.load %arg7[%c0_3, %c0_4] : memref<8x32xf32, #tpu.memory_space<vmem>>, vector<8x32xf32>
    %c0_5 = arith.constant 0 : index
    %c0_6 = arith.constant 0 : index
    %3 = vector.load %arg8[%c0_5, %c0_6] : memref<8x1xf32, #tpu.memory_space<vmem>>, vector<8x1xf32>
    %c0_7 = arith.constant 0 : index
    %c0_8 = arith.constant 0 : index
    %c0_9 = arith.constant 0 : index
    %4 = vector.load %arg9[%c0_7, %c0_8, %c0_9] : memref<8x32x32xf32, #tpu.memory_space<vmem>>, vector<8x32x32xf32>
    %c0_10 = arith.constant 0 : index
    %c0_11 = arith.constant 0 : index
    %c0_12 = arith.constant 0 : index
    %5 = vector.load %arg10[%c0_10, %c0_11, %c0_12] : memref<8x1x32xf32, #tpu.memory_space<vmem>>, vector<8x1x32xf32>
    %c0_13 = arith.constant 0 : index
    %c0_14 = arith.constant 0 : index
    %6 = vector.load %arg11[%c0_13, %c0_14] : memref<1x32xf32, #tpu.memory_space<vmem>>, vector<1x32xf32>
    %c0_15 = arith.constant 0 : index
    %c0_16 = arith.constant 0 : index
    %7 = vector.load %arg12[%c0_15, %c0_16] : memref<32x32xf32, #tpu.memory_space<vmem>>, vector<32x32xf32>
    %c0_17 = arith.constant 0 : index
    %c0_18 = arith.constant 0 : index
    %8 = vector.load %arg13[%c0_17, %c0_18] : memref<1x32xf32, #tpu.memory_space<vmem>>, vector<1x32xf32>
    %c0_19 = arith.constant 0 : index
    %c0_20 = arith.constant 0 : index
    %9 = vector.load %arg14[%c0_19, %c0_20] : memref<32x32xf32, #tpu.memory_space<vmem>>, vector<32x32xf32>
    %c0_21 = arith.constant 0 : index
    %c0_22 = arith.constant 0 : index
    %10 = vector.load %arg15[%c0_21, %c0_22] : memref<1x32xf32, #tpu.memory_space<vmem>>, vector<1x32xf32>
    %c0_23 = arith.constant 0 : index
    %c0_24 = arith.constant 0 : index
    %11 = vector.load %arg16[%c0_23, %c0_24] : memref<8x32xf32, #tpu.memory_space<vmem>>, vector<8x32xf32>
    %c0_25 = arith.constant 0 : index
    %c0_26 = arith.constant 0 : index
    %12 = vector.load %arg17[%c0_25, %c0_26] : memref<8x1xf32, #tpu.memory_space<vmem>>, vector<8x1xf32>
    %c0_27 = arith.constant 0 : index
    %c0_28 = arith.constant 0 : index
    %13 = vector.load %arg18[%c0_27, %c0_28] : memref<8x32xf32, #tpu.memory_space<vmem>>, vector<8x32xf32>
    %c0_29 = arith.constant 0 : index
    %c0_30 = arith.constant 0 : index
    %14 = vector.load %arg19[%c0_29, %c0_30] : memref<8x1xf32, #tpu.memory_space<vmem>>, vector<8x1xf32>
    %c0_31 = arith.constant 0 : index
    %c0_32 = arith.constant 0 : index
    %c0_33 = arith.constant 0 : index
    %15 = vector.load %arg20[%c0_31, %c0_32, %c0_33] : memref<8x32x32xf32, #tpu.memory_space<vmem>>, vector<8x32x32xf32>
    %c0_34 = arith.constant 0 : index
    %c0_35 = arith.constant 0 : index
    %c0_36 = arith.constant 0 : index
    %16 = vector.load %arg21[%c0_34, %c0_35, %c0_36] : memref<8x1x32xf32, #tpu.memory_space<vmem>>, vector<8x1x32xf32>
    %c0_37 = arith.constant 0 : index
    %c0_38 = arith.constant 0 : index
    %17 = vector.load %arg22[%c0_37, %c0_38] : memref<1x32xf32, #tpu.memory_space<vmem>>, vector<1x32xf32>
    %c0_39 = arith.constant 0 : index
    %c0_40 = arith.constant 0 : index
    %18 = vector.load %arg23[%c0_39, %c0_40] : memref<32x32xf32, #tpu.memory_space<vmem>>, vector<32x32xf32>
    %c0_41 = arith.constant 0 : index
    %c0_42 = arith.constant 0 : index
    %19 = vector.load %arg24[%c0_41, %c0_42] : memref<1x32xf32, #tpu.memory_space<vmem>>, vector<1x32xf32>
    %c0_43 = arith.constant 0 : index
    %c0_44 = arith.constant 0 : index
    %20 = vector.load %arg25[%c0_43, %c0_44] : memref<32x32xf32, #tpu.memory_space<vmem>>, vector<32x32xf32>
    %c0_45 = arith.constant 0 : index
    %c0_46 = arith.constant 0 : index
    %21 = vector.load %arg26[%c0_45, %c0_46] : memref<1x32xf32, #tpu.memory_space<vmem>>, vector<1x32xf32>
    %c0_47 = arith.constant 0 : index
    %c0_48 = arith.constant 0 : index
    %22 = vector.load %arg27[%c0_47, %c0_48] : memref<8x32xf32, #tpu.memory_space<vmem>>, vector<8x32xf32>
    %c0_49 = arith.constant 0 : index
    %c0_50 = arith.constant 0 : index
    %23 = vector.load %arg28[%c0_49, %c0_50] : memref<8x1xf32, #tpu.memory_space<vmem>>, vector<8x1xf32>
    %c0_51 = arith.constant 0 : index
    %c0_52 = arith.constant 0 : index
    %24 = vector.load %arg29[%c0_51, %c0_52] : memref<8x32xf32, #tpu.memory_space<vmem>>, vector<8x32xf32>
    %c0_53 = arith.constant 0 : index
    %c0_54 = arith.constant 0 : index
    %25 = vector.load %arg30[%c0_53, %c0_54] : memref<8x1xf32, #tpu.memory_space<vmem>>, vector<8x1xf32>
    %c0_55 = arith.constant 0 : index
    %c0_56 = arith.constant 0 : index
    %c0_57 = arith.constant 0 : index
    %26 = vector.load %arg31[%c0_55, %c0_56, %c0_57] : memref<8x32x32xf32, #tpu.memory_space<vmem>>, vector<8x32x32xf32>
    %c0_58 = arith.constant 0 : index
    %c0_59 = arith.constant 0 : index
    %c0_60 = arith.constant 0 : index
    %27 = vector.load %arg32[%c0_58, %c0_59, %c0_60] : memref<8x1x32xf32, #tpu.memory_space<vmem>>, vector<8x1x32xf32>
    %c0_61 = arith.constant 0 : index
    %c0_62 = arith.constant 0 : index
    %28 = vector.load %arg33[%c0_61, %c0_62] : memref<1x32xf32, #tpu.memory_space<vmem>>, vector<1x32xf32>
    %c0_63 = arith.constant 0 : index
    %c0_64 = arith.constant 0 : index
    %29 = vector.load %arg34[%c0_63, %c0_64] : memref<32x3xf32, #tpu.memory_space<vmem>>, vector<32x3xf32>
    %c0_65 = arith.constant 0 : index
    %c0_66 = arith.constant 0 : index
    %30 = vector.load %arg35[%c0_65, %c0_66] : memref<32x3xf32, #tpu.memory_space<vmem>>, vector<32x3xf32>
    %c0_67 = arith.constant 0 : index
    %c0_68 = arith.constant 0 : index
    %31 = vector.load %arg36[%c0_67, %c0_68] : memref<32x3xf32, #tpu.memory_space<vmem>>, vector<32x3xf32>
    %c0_69 = arith.constant 0 : index
    %c0_70 = arith.constant 0 : index
    %32 = vector.load %arg37[%c0_69, %c0_70] : memref<1x3xf32, #tpu.memory_space<vmem>>, vector<1x3xf32>
    %c0_71 = arith.constant 0 : index
    %c0_72 = arith.constant 0 : index
    %c0_73 = arith.constant 0 : index
    %33 = vector.load %arg3[%c0_71, %c0_72, %c0_73] : memref<1x16x32xf32, #tpu.memory_space<vmem>>, vector<1x16x32xf32>
    %34 = vector.shape_cast %33 : vector<1x16x32xf32> to vector<16x32xf32>
    %c0_74 = arith.constant 0 : index
    %c0_75 = arith.constant 0 : index
    %c0_76 = arith.constant 0 : index
    %35 = vector.load %arg4[%c0_74, %c0_75, %c0_76] : memref<1x8x32xf32, #tpu.memory_space<vmem>>, vector<1x8x32xf32>
    %36 = vector.shape_cast %35 : vector<1x8x32xf32> to vector<8x32xf32>
    %cst = arith.constant dense<0.000000e+00> : vector<8x16xf32>
    %37 = tpu.matmul %0, %34, %cst {dimension_numbers = #tpu.dot_dimension_numbers<[1], [1], [0], [0], [0, 0, 1, 0], [], []>} : vector<8x32xf32>, vector<16x32xf32>, vector<8x16xf32> -> vector<8x16xf32>
    %38 = vector.broadcast %1 : vector<8x1xf32> to vector<8x16xf32>
    %39 = arith.addf %37, %38 : vector<8x16xf32>
    %cst_77 = arith.constant dense<0.000000e+00> : vector<8x16xf32>
    %40 = tpu.matmul %2, %34, %cst_77 {dimension_numbers = #tpu.dot_dimension_numbers<[1], [1], [0], [0], [0, 0, 1, 0], [], []>} : vector<8x32xf32>, vector<16x32xf32>, vector<8x16xf32> -> vector<8x16xf32>
    %41 = vector.broadcast %3 : vector<8x1xf32> to vector<8x16xf32>
    %42 = arith.addf %40, %41 : vector<8x16xf32>
    %43 = vector.shape_cast %42 : vector<8x16xf32> to vector<8x16x1xf32>
    %44 = vector.shape_cast %39 : vector<8x16xf32> to vector<8x1x16xf32>
    %45 = vector.broadcast %43 : vector<8x16x1xf32> to vector<8x16x16xf32>
    %46 = vector.broadcast %44 : vector<8x1x16xf32> to vector<8x16x16xf32>
    %47 = arith.addf %45, %46 : vector<8x16x16xf32>
    %48 = math.tanh %47 : vector<8x16x16xf32>
    %49 = math.exp %48 : vector<8x16x16xf32>
    %cst_78 = arith.constant dense<0.000000e+00> : vector<8x16xf32>
    %50 = vector.multi_reduction <add>, %49, %cst_78 [2] : vector<8x16x16xf32> to vector<8x16xf32>
    %51 = vector.shape_cast %50 : vector<8x16xf32> to vector<8x16x1xf32>
    %52 = tpu.reciprocal %51 {approx = true} : vector<8x16x1xf32> -> vector<8x16x1xf32>
    %53 = vector.broadcast %52 : vector<8x16x1xf32> to vector<8x16x16xf32>
    %54 = arith.mulf %49, %53 : vector<8x16x16xf32>
    %cst_79 = arith.constant 0.000000e+00 : f32
    %55 = vector.broadcast %cst_79 : f32 to vector<16x32xf32>
    %56 = vector.extract_strided_slice %4 {offsets = [0, 0, 0], sizes = [1, 32, 32], strides = [1, 1, 1]} : vector<8x32x32xf32> to vector<1x32x32xf32>
    %57 = vector.shape_cast %56 : vector<1x32x32xf32> to vector<32x32xf32>
    %cst_80 = arith.constant dense<0.000000e+00> : vector<16x32xf32>
    %58 = tpu.matmul %34, %57, %cst_80 {dimension_numbers = #tpu.dot_dimension_numbers<[1], [0], [0], [1], [0, 0, 1, 1], [], []>} : vector<16x32xf32>, vector<32x32xf32>, vector<16x32xf32> -> vector<16x32xf32>
    %59 = vector.extract_strided_slice %5 {offsets = [0, 0, 0], sizes = [1, 1, 32], strides = [1, 1, 1]} : vector<8x1x32xf32> to vector<1x1x32xf32>
    %60 = vector.shape_cast %59 : vector<1x1x32xf32> to vector<1x32xf32>
    %61 = vector.broadcast %60 : vector<1x32xf32> to vector<16x32xf32>
    %62 = arith.addf %58, %61 : vector<16x32xf32>
    %63 = vector.extract_strided_slice %54 {offsets = [0, 0, 0], sizes = [1, 16, 16], strides = [1, 1, 1]} : vector<8x16x16xf32> to vector<1x16x16xf32>
    %64 = vector.shape_cast %63 : vector<1x16x16xf32> to vector<16x16xf32>
    %cst_81 = arith.constant dense<0.000000e+00> : vector<16x32xf32>
    %65 = tpu.matmul %64, %62, %cst_81 {dimension_numbers = #tpu.dot_dimension_numbers<[1], [0], [0], [1], [0, 0, 1, 1], [], []>} : vector<16x16xf32>, vector<16x32xf32>, vector<16x32xf32> -> vector<16x32xf32>
    %66 = arith.addf %55, %65 : vector<16x32xf32>
    %67 = vector.extract_strided_slice %4 {offsets = [1, 0, 0], sizes = [1, 32, 32], strides = [1, 1, 1]} : vector<8x32x32xf32> to vector<1x32x32xf32>
    %68 = vector.shape_cast %67 : vector<1x32x32xf32> to vector<32x32xf32>
    %cst_82 = arith.constant dense<0.000000e+00> : vector<16x32xf32>
    %69 = tpu.matmul %34, %68, %cst_82 {dimension_numbers = #tpu.dot_dimension_numbers<[1], [0], [0], [1], [0, 0, 1, 1], [], []>} : vector<16x32xf32>, vector<32x32xf32>, vector<16x32xf32> -> vector<16x32xf32>
    %70 = vector.extract_strided_slice %5 {offsets = [1, 0, 0], sizes = [1, 1, 32], strides = [1, 1, 1]} : vector<8x1x32xf32> to vector<1x1x32xf32>
    %71 = vector.shape_cast %70 : vector<1x1x32xf32> to vector<1x32xf32>
    %72 = vector.broadcast %71 : vector<1x32xf32> to vector<16x32xf32>
    %73 = arith.addf %69, %72 : vector<16x32xf32>
    %74 = vector.extract_strided_slice %54 {offsets = [1, 0, 0], sizes = [1, 16, 16], strides = [1, 1, 1]} : vector<8x16x16xf32> to vector<1x16x16xf32>
    %75 = vector.shape_cast %74 : vector<1x16x16xf32> to vector<16x16xf32>
    %cst_83 = arith.constant dense<0.000000e+00> : vector<16x32xf32>
    %76 = tpu.matmul %75, %73, %cst_83 {dimension_numbers = #tpu.dot_dimension_numbers<[1], [0], [0], [1], [0, 0, 1, 1], [], []>} : vector<16x16xf32>, vector<16x32xf32>, vector<16x32xf32> -> vector<16x32xf32>
    %77 = arith.addf %66, %76 : vector<16x32xf32>
    %78 = vector.extract_strided_slice %4 {offsets = [2, 0, 0], sizes = [1, 32, 32], strides = [1, 1, 1]} : vector<8x32x32xf32> to vector<1x32x32xf32>
    %79 = vector.shape_cast %78 : vector<1x32x32xf32> to vector<32x32xf32>
    %cst_84 = arith.constant dense<0.000000e+00> : vector<16x32xf32>
    %80 = tpu.matmul %34, %79, %cst_84 {dimension_numbers = #tpu.dot_dimension_numbers<[1], [0], [0], [1], [0, 0, 1, 1], [], []>} : vector<16x32xf32>, vector<32x32xf32>, vector<16x32xf32> -> vector<16x32xf32>
    %81 = vector.extract_strided_slice %5 {offsets = [2, 0, 0], sizes = [1, 1, 32], strides = [1, 1, 1]} : vector<8x1x32xf32> to vector<1x1x32xf32>
    %82 = vector.shape_cast %81 : vector<1x1x32xf32> to vector<1x32xf32>
    %83 = vector.broadcast %82 : vector<1x32xf32> to vector<16x32xf32>
    %84 = arith.addf %80, %83 : vector<16x32xf32>
    %85 = vector.extract_strided_slice %54 {offsets = [2, 0, 0], sizes = [1, 16, 16], strides = [1, 1, 1]} : vector<8x16x16xf32> to vector<1x16x16xf32>
    %86 = vector.shape_cast %85 : vector<1x16x16xf32> to vector<16x16xf32>
    %cst_85 = arith.constant dense<0.000000e+00> : vector<16x32xf32>
    %87 = tpu.matmul %86, %84, %cst_85 {dimension_numbers = #tpu.dot_dimension_numbers<[1], [0], [0], [1], [0, 0, 1, 1], [], []>} : vector<16x16xf32>, vector<16x32xf32>, vector<16x32xf32> -> vector<16x32xf32>
    %88 = arith.addf %77, %87 : vector<16x32xf32>
    %89 = vector.extract_strided_slice %4 {offsets = [3, 0, 0], sizes = [1, 32, 32], strides = [1, 1, 1]} : vector<8x32x32xf32> to vector<1x32x32xf32>
    %90 = vector.shape_cast %89 : vector<1x32x32xf32> to vector<32x32xf32>
    %cst_86 = arith.constant dense<0.000000e+00> : vector<16x32xf32>
    %91 = tpu.matmul %34, %90, %cst_86 {dimension_numbers = #tpu.dot_dimension_numbers<[1], [0], [0], [1], [0, 0, 1, 1], [], []>} : vector<16x32xf32>, vector<32x32xf32>, vector<16x32xf32> -> vector<16x32xf32>
    %92 = vector.extract_strided_slice %5 {offsets = [3, 0, 0], sizes = [1, 1, 32], strides = [1, 1, 1]} : vector<8x1x32xf32> to vector<1x1x32xf32>
    %93 = vector.shape_cast %92 : vector<1x1x32xf32> to vector<1x32xf32>
    %94 = vector.broadcast %93 : vector<1x32xf32> to vector<16x32xf32>
    %95 = arith.addf %91, %94 : vector<16x32xf32>
    %96 = vector.extract_strided_slice %54 {offsets = [3, 0, 0], sizes = [1, 16, 16], strides = [1, 1, 1]} : vector<8x16x16xf32> to vector<1x16x16xf32>
    %97 = vector.shape_cast %96 : vector<1x16x16xf32> to vector<16x16xf32>
    %cst_87 = arith.constant dense<0.000000e+00> : vector<16x32xf32>
    %98 = tpu.matmul %97, %95, %cst_87 {dimension_numbers = #tpu.dot_dimension_numbers<[1], [0], [0], [1], [0, 0, 1, 1], [], []>} : vector<16x16xf32>, vector<16x32xf32>, vector<16x32xf32> -> vector<16x32xf32>
    %99 = arith.addf %88, %98 : vector<16x32xf32>
    %100 = vector.extract_strided_slice %4 {offsets = [4, 0, 0], sizes = [1, 32, 32], strides = [1, 1, 1]} : vector<8x32x32xf32> to vector<1x32x32xf32>
    %101 = vector.shape_cast %100 : vector<1x32x32xf32> to vector<32x32xf32>
    %cst_88 = arith.constant dense<0.000000e+00> : vector<16x32xf32>
    %102 = tpu.matmul %34, %101, %cst_88 {dimension_numbers = #tpu.dot_dimension_numbers<[1], [0], [0], [1], [0, 0, 1, 1], [], []>} : vector<16x32xf32>, vector<32x32xf32>, vector<16x32xf32> -> vector<16x32xf32>
    %103 = vector.extract_strided_slice %5 {offsets = [4, 0, 0], sizes = [1, 1, 32], strides = [1, 1, 1]} : vector<8x1x32xf32> to vector<1x1x32xf32>
    %104 = vector.shape_cast %103 : vector<1x1x32xf32> to vector<1x32xf32>
    %105 = vector.broadcast %104 : vector<1x32xf32> to vector<16x32xf32>
    %106 = arith.addf %102, %105 : vector<16x32xf32>
    %107 = vector.extract_strided_slice %54 {offsets = [4, 0, 0], sizes = [1, 16, 16], strides = [1, 1, 1]} : vector<8x16x16xf32> to vector<1x16x16xf32>
    %108 = vector.shape_cast %107 : vector<1x16x16xf32> to vector<16x16xf32>
    %cst_89 = arith.constant dense<0.000000e+00> : vector<16x32xf32>
    %109 = tpu.matmul %108, %106, %cst_89 {dimension_numbers = #tpu.dot_dimension_numbers<[1], [0], [0], [1], [0, 0, 1, 1], [], []>} : vector<16x16xf32>, vector<16x32xf32>, vector<16x32xf32> -> vector<16x32xf32>
    %110 = arith.addf %99, %109 : vector<16x32xf32>
    %111 = vector.extract_strided_slice %4 {offsets = [5, 0, 0], sizes = [1, 32, 32], strides = [1, 1, 1]} : vector<8x32x32xf32> to vector<1x32x32xf32>
    %112 = vector.shape_cast %111 : vector<1x32x32xf32> to vector<32x32xf32>
    %cst_90 = arith.constant dense<0.000000e+00> : vector<16x32xf32>
    %113 = tpu.matmul %34, %112, %cst_90 {dimension_numbers = #tpu.dot_dimension_numbers<[1], [0], [0], [1], [0, 0, 1, 1], [], []>} : vector<16x32xf32>, vector<32x32xf32>, vector<16x32xf32> -> vector<16x32xf32>
    %114 = vector.extract_strided_slice %5 {offsets = [5, 0, 0], sizes = [1, 1, 32], strides = [1, 1, 1]} : vector<8x1x32xf32> to vector<1x1x32xf32>
    %115 = vector.shape_cast %114 : vector<1x1x32xf32> to vector<1x32xf32>
    %116 = vector.broadcast %115 : vector<1x32xf32> to vector<16x32xf32>
    %117 = arith.addf %113, %116 : vector<16x32xf32>
    %118 = vector.extract_strided_slice %54 {offsets = [5, 0, 0], sizes = [1, 16, 16], strides = [1, 1, 1]} : vector<8x16x16xf32> to vector<1x16x16xf32>
    %119 = vector.shape_cast %118 : vector<1x16x16xf32> to vector<16x16xf32>
    %cst_91 = arith.constant dense<0.000000e+00> : vector<16x32xf32>
    %120 = tpu.matmul %119, %117, %cst_91 {dimension_numbers = #tpu.dot_dimension_numbers<[1], [0], [0], [1], [0, 0, 1, 1], [], []>} : vector<16x16xf32>, vector<16x32xf32>, vector<16x32xf32> -> vector<16x32xf32>
    %121 = arith.addf %110, %120 : vector<16x32xf32>
    %122 = vector.extract_strided_slice %4 {offsets = [6, 0, 0], sizes = [1, 32, 32], strides = [1, 1, 1]} : vector<8x32x32xf32> to vector<1x32x32xf32>
    %123 = vector.shape_cast %122 : vector<1x32x32xf32> to vector<32x32xf32>
    %cst_92 = arith.constant dense<0.000000e+00> : vector<16x32xf32>
    %124 = tpu.matmul %34, %123, %cst_92 {dimension_numbers = #tpu.dot_dimension_numbers<[1], [0], [0], [1], [0, 0, 1, 1], [], []>} : vector<16x32xf32>, vector<32x32xf32>, vector<16x32xf32> -> vector<16x32xf32>
    %125 = vector.extract_strided_slice %5 {offsets = [6, 0, 0], sizes = [1, 1, 32], strides = [1, 1, 1]} : vector<8x1x32xf32> to vector<1x1x32xf32>
    %126 = vector.shape_cast %125 : vector<1x1x32xf32> to vector<1x32xf32>
    %127 = vector.broadcast %126 : vector<1x32xf32> to vector<16x32xf32>
    %128 = arith.addf %124, %127 : vector<16x32xf32>
    %129 = vector.extract_strided_slice %54 {offsets = [6, 0, 0], sizes = [1, 16, 16], strides = [1, 1, 1]} : vector<8x16x16xf32> to vector<1x16x16xf32>
    %130 = vector.shape_cast %129 : vector<1x16x16xf32> to vector<16x16xf32>
    %cst_93 = arith.constant dense<0.000000e+00> : vector<16x32xf32>
    %131 = tpu.matmul %130, %128, %cst_93 {dimension_numbers = #tpu.dot_dimension_numbers<[1], [0], [0], [1], [0, 0, 1, 1], [], []>} : vector<16x16xf32>, vector<16x32xf32>, vector<16x32xf32> -> vector<16x32xf32>
    %132 = arith.addf %121, %131 : vector<16x32xf32>
    %133 = vector.extract_strided_slice %4 {offsets = [7, 0, 0], sizes = [1, 32, 32], strides = [1, 1, 1]} : vector<8x32x32xf32> to vector<1x32x32xf32>
    %134 = vector.shape_cast %133 : vector<1x32x32xf32> to vector<32x32xf32>
    %cst_94 = arith.constant dense<0.000000e+00> : vector<16x32xf32>
    %135 = tpu.matmul %34, %134, %cst_94 {dimension_numbers = #tpu.dot_dimension_numbers<[1], [0], [0], [1], [0, 0, 1, 1], [], []>} : vector<16x32xf32>, vector<32x32xf32>, vector<16x32xf32> -> vector<16x32xf32>
    %136 = vector.extract_strided_slice %5 {offsets = [7, 0, 0], sizes = [1, 1, 32], strides = [1, 1, 1]} : vector<8x1x32xf32> to vector<1x1x32xf32>
    %137 = vector.shape_cast %136 : vector<1x1x32xf32> to vector<1x32xf32>
    %138 = vector.broadcast %137 : vector<1x32xf32> to vector<16x32xf32>
    %139 = arith.addf %135, %138 : vector<16x32xf32>
    %140 = vector.extract_strided_slice %54 {offsets = [7, 0, 0], sizes = [1, 16, 16], strides = [1, 1, 1]} : vector<8x16x16xf32> to vector<1x16x16xf32>
    %141 = vector.shape_cast %140 : vector<1x16x16xf32> to vector<16x16xf32>
    %cst_95 = arith.constant dense<0.000000e+00> : vector<16x32xf32>
    %142 = tpu.matmul %141, %139, %cst_95 {dimension_numbers = #tpu.dot_dimension_numbers<[1], [0], [0], [1], [0, 0, 1, 1], [], []>} : vector<16x16xf32>, vector<16x32xf32>, vector<16x32xf32> -> vector<16x32xf32>
    %143 = arith.addf %132, %142 : vector<16x32xf32>
    %144 = vector.broadcast %6 : vector<1x32xf32> to vector<16x32xf32>
    %145 = arith.addf %143, %144 : vector<16x32xf32>
    %cst_96 = arith.constant dense<0.000000e+00> : vector<16x32xf32>
    %146 = tpu.matmul %145, %7, %cst_96 {dimension_numbers = #tpu.dot_dimension_numbers<[1], [0], [0], [1], [0, 0, 1, 1], [], []>} : vector<16x32xf32>, vector<32x32xf32>, vector<16x32xf32> -> vector<16x32xf32>
    %147 = vector.broadcast %8 : vector<1x32xf32> to vector<16x32xf32>
    %148 = arith.addf %146, %147 : vector<16x32xf32>
    %cst_97 = arith.constant 0.000000e+00 : f32
    %149 = vector.broadcast %cst_97 : f32 to vector<16x32xf32>
    %150 = arith.maximumf %148, %149 : vector<16x32xf32>
    %cst_98 = arith.constant dense<0.000000e+00> : vector<16x32xf32>
    %151 = tpu.matmul %150, %9, %cst_98 {dimension_numbers = #tpu.dot_dimension_numbers<[1], [0], [0], [1], [0, 0, 1, 1], [], []>} : vector<16x32xf32>, vector<32x32xf32>, vector<16x32xf32> -> vector<16x32xf32>
    %152 = vector.broadcast %10 : vector<1x32xf32> to vector<16x32xf32>
    %153 = arith.addf %151, %152 : vector<16x32xf32>
    %cst_99 = arith.constant dense<0.000000e+00> : vector<8x16xf32>
    %154 = tpu.matmul %11, %34, %cst_99 {dimension_numbers = #tpu.dot_dimension_numbers<[1], [1], [0], [0], [0, 0, 1, 0], [], []>} : vector<8x32xf32>, vector<16x32xf32>, vector<8x16xf32> -> vector<8x16xf32>
    %155 = vector.broadcast %12 : vector<8x1xf32> to vector<8x16xf32>
    %156 = arith.addf %154, %155 : vector<8x16xf32>
    %cst_100 = arith.constant dense<0.000000e+00> : vector<8x8xf32>
    %157 = tpu.matmul %13, %36, %cst_100 {dimension_numbers = #tpu.dot_dimension_numbers<[1], [1], [0], [0], [0, 0, 1, 0], [], []>} : vector<8x32xf32>, vector<8x32xf32>, vector<8x8xf32> -> vector<8x8xf32>
    %158 = vector.broadcast %14 : vector<8x1xf32> to vector<8x8xf32>
    %159 = arith.addf %157, %158 : vector<8x8xf32>
    %160 = vector.shape_cast %159 : vector<8x8xf32> to vector<8x8x1xf32>
    %161 = vector.shape_cast %156 : vector<8x16xf32> to vector<8x1x16xf32>
    %162 = vector.broadcast %160 : vector<8x8x1xf32> to vector<8x8x16xf32>
    %163 = vector.broadcast %161 : vector<8x1x16xf32> to vector<8x8x16xf32>
    %164 = arith.addf %162, %163 : vector<8x8x16xf32>
    %165 = math.tanh %164 : vector<8x8x16xf32>
    %166 = math.exp %165 : vector<8x8x16xf32>
    %cst_101 = arith.constant dense<0.000000e+00> : vector<8x8xf32>
    %167 = vector.multi_reduction <add>, %166, %cst_101 [2] : vector<8x8x16xf32> to vector<8x8xf32>
    %168 = vector.shape_cast %167 : vector<8x8xf32> to vector<8x8x1xf32>
    %169 = tpu.reciprocal %168 {approx = true} : vector<8x8x1xf32> -> vector<8x8x1xf32>
    %170 = vector.broadcast %169 : vector<8x8x1xf32> to vector<8x8x16xf32>
    %171 = arith.mulf %166, %170 : vector<8x8x16xf32>
    %cst_102 = arith.constant 0.000000e+00 : f32
    %172 = vector.broadcast %cst_102 : f32 to vector<8x32xf32>
    %173 = vector.extract_strided_slice %15 {offsets = [0, 0, 0], sizes = [1, 32, 32], strides = [1, 1, 1]} : vector<8x32x32xf32> to vector<1x32x32xf32>
    %174 = vector.shape_cast %173 : vector<1x32x32xf32> to vector<32x32xf32>
    %cst_103 = arith.constant dense<0.000000e+00> : vector<16x32xf32>
    %175 = tpu.matmul %34, %174, %cst_103 {dimension_numbers = #tpu.dot_dimension_numbers<[1], [0], [0], [1], [0, 0, 1, 1], [], []>} : vector<16x32xf32>, vector<32x32xf32>, vector<16x32xf32> -> vector<16x32xf32>
    %176 = vector.extract_strided_slice %16 {offsets = [0, 0, 0], sizes = [1, 1, 32], strides = [1, 1, 1]} : vector<8x1x32xf32> to vector<1x1x32xf32>
    %177 = vector.shape_cast %176 : vector<1x1x32xf32> to vector<1x32xf32>
    %178 = vector.broadcast %177 : vector<1x32xf32> to vector<16x32xf32>
    %179 = arith.addf %175, %178 : vector<16x32xf32>
    %180 = vector.extract_strided_slice %171 {offsets = [0, 0, 0], sizes = [1, 8, 16], strides = [1, 1, 1]} : vector<8x8x16xf32> to vector<1x8x16xf32>
    %181 = vector.shape_cast %180 : vector<1x8x16xf32> to vector<8x16xf32>
    %cst_104 = arith.constant dense<0.000000e+00> : vector<8x32xf32>
    %182 = tpu.matmul %181, %179, %cst_104 {dimension_numbers = #tpu.dot_dimension_numbers<[1], [0], [0], [1], [0, 0, 1, 1], [], []>} : vector<8x16xf32>, vector<16x32xf32>, vector<8x32xf32> -> vector<8x32xf32>
    %183 = arith.addf %172, %182 : vector<8x32xf32>
    %184 = vector.extract_strided_slice %15 {offsets = [1, 0, 0], sizes = [1, 32, 32], strides = [1, 1, 1]} : vector<8x32x32xf32> to vector<1x32x32xf32>
    %185 = vector.shape_cast %184 : vector<1x32x32xf32> to vector<32x32xf32>
    %cst_105 = arith.constant dense<0.000000e+00> : vector<16x32xf32>
    %186 = tpu.matmul %34, %185, %cst_105 {dimension_numbers = #tpu.dot_dimension_numbers<[1], [0], [0], [1], [0, 0, 1, 1], [], []>} : vector<16x32xf32>, vector<32x32xf32>, vector<16x32xf32> -> vector<16x32xf32>
    %187 = vector.extract_strided_slice %16 {offsets = [1, 0, 0], sizes = [1, 1, 32], strides = [1, 1, 1]} : vector<8x1x32xf32> to vector<1x1x32xf32>
    %188 = vector.shape_cast %187 : vector<1x1x32xf32> to vector<1x32xf32>
    %189 = vector.broadcast %188 : vector<1x32xf32> to vector<16x32xf32>
    %190 = arith.addf %186, %189 : vector<16x32xf32>
    %191 = vector.extract_strided_slice %171 {offsets = [1, 0, 0], sizes = [1, 8, 16], strides = [1, 1, 1]} : vector<8x8x16xf32> to vector<1x8x16xf32>
    %192 = vector.shape_cast %191 : vector<1x8x16xf32> to vector<8x16xf32>
    %cst_106 = arith.constant dense<0.000000e+00> : vector<8x32xf32>
    %193 = tpu.matmul %192, %190, %cst_106 {dimension_numbers = #tpu.dot_dimension_numbers<[1], [0], [0], [1], [0, 0, 1, 1], [], []>} : vector<8x16xf32>, vector<16x32xf32>, vector<8x32xf32> -> vector<8x32xf32>
    %194 = arith.addf %183, %193 : vector<8x32xf32>
    %195 = vector.extract_strided_slice %15 {offsets = [2, 0, 0], sizes = [1, 32, 32], strides = [1, 1, 1]} : vector<8x32x32xf32> to vector<1x32x32xf32>
    %196 = vector.shape_cast %195 : vector<1x32x32xf32> to vector<32x32xf32>
    %cst_107 = arith.constant dense<0.000000e+00> : vector<16x32xf32>
    %197 = tpu.matmul %34, %196, %cst_107 {dimension_numbers = #tpu.dot_dimension_numbers<[1], [0], [0], [1], [0, 0, 1, 1], [], []>} : vector<16x32xf32>, vector<32x32xf32>, vector<16x32xf32> -> vector<16x32xf32>
    %198 = vector.extract_strided_slice %16 {offsets = [2, 0, 0], sizes = [1, 1, 32], strides = [1, 1, 1]} : vector<8x1x32xf32> to vector<1x1x32xf32>
    %199 = vector.shape_cast %198 : vector<1x1x32xf32> to vector<1x32xf32>
    %200 = vector.broadcast %199 : vector<1x32xf32> to vector<16x32xf32>
    %201 = arith.addf %197, %200 : vector<16x32xf32>
    %202 = vector.extract_strided_slice %171 {offsets = [2, 0, 0], sizes = [1, 8, 16], strides = [1, 1, 1]} : vector<8x8x16xf32> to vector<1x8x16xf32>
    %203 = vector.shape_cast %202 : vector<1x8x16xf32> to vector<8x16xf32>
    %cst_108 = arith.constant dense<0.000000e+00> : vector<8x32xf32>
    %204 = tpu.matmul %203, %201, %cst_108 {dimension_numbers = #tpu.dot_dimension_numbers<[1], [0], [0], [1], [0, 0, 1, 1], [], []>} : vector<8x16xf32>, vector<16x32xf32>, vector<8x32xf32> -> vector<8x32xf32>
    %205 = arith.addf %194, %204 : vector<8x32xf32>
    %206 = vector.extract_strided_slice %15 {offsets = [3, 0, 0], sizes = [1, 32, 32], strides = [1, 1, 1]} : vector<8x32x32xf32> to vector<1x32x32xf32>
    %207 = vector.shape_cast %206 : vector<1x32x32xf32> to vector<32x32xf32>
    %cst_109 = arith.constant dense<0.000000e+00> : vector<16x32xf32>
    %208 = tpu.matmul %34, %207, %cst_109 {dimension_numbers = #tpu.dot_dimension_numbers<[1], [0], [0], [1], [0, 0, 1, 1], [], []>} : vector<16x32xf32>, vector<32x32xf32>, vector<16x32xf32> -> vector<16x32xf32>
    %209 = vector.extract_strided_slice %16 {offsets = [3, 0, 0], sizes = [1, 1, 32], strides = [1, 1, 1]} : vector<8x1x32xf32> to vector<1x1x32xf32>
    %210 = vector.shape_cast %209 : vector<1x1x32xf32> to vector<1x32xf32>
    %211 = vector.broadcast %210 : vector<1x32xf32> to vector<16x32xf32>
    %212 = arith.addf %208, %211 : vector<16x32xf32>
    %213 = vector.extract_strided_slice %171 {offsets = [3, 0, 0], sizes = [1, 8, 16], strides = [1, 1, 1]} : vector<8x8x16xf32> to vector<1x8x16xf32>
    %214 = vector.shape_cast %213 : vector<1x8x16xf32> to vector<8x16xf32>
    %cst_110 = arith.constant dense<0.000000e+00> : vector<8x32xf32>
    %215 = tpu.matmul %214, %212, %cst_110 {dimension_numbers = #tpu.dot_dimension_numbers<[1], [0], [0], [1], [0, 0, 1, 1], [], []>} : vector<8x16xf32>, vector<16x32xf32>, vector<8x32xf32> -> vector<8x32xf32>
    %216 = arith.addf %205, %215 : vector<8x32xf32>
    %217 = vector.extract_strided_slice %15 {offsets = [4, 0, 0], sizes = [1, 32, 32], strides = [1, 1, 1]} : vector<8x32x32xf32> to vector<1x32x32xf32>
    %218 = vector.shape_cast %217 : vector<1x32x32xf32> to vector<32x32xf32>
    %cst_111 = arith.constant dense<0.000000e+00> : vector<16x32xf32>
    %219 = tpu.matmul %34, %218, %cst_111 {dimension_numbers = #tpu.dot_dimension_numbers<[1], [0], [0], [1], [0, 0, 1, 1], [], []>} : vector<16x32xf32>, vector<32x32xf32>, vector<16x32xf32> -> vector<16x32xf32>
    %220 = vector.extract_strided_slice %16 {offsets = [4, 0, 0], sizes = [1, 1, 32], strides = [1, 1, 1]} : vector<8x1x32xf32> to vector<1x1x32xf32>
    %221 = vector.shape_cast %220 : vector<1x1x32xf32> to vector<1x32xf32>
    %222 = vector.broadcast %221 : vector<1x32xf32> to vector<16x32xf32>
    %223 = arith.addf %219, %222 : vector<16x32xf32>
    %224 = vector.extract_strided_slice %171 {offsets = [4, 0, 0], sizes = [1, 8, 16], strides = [1, 1, 1]} : vector<8x8x16xf32> to vector<1x8x16xf32>
    %225 = vector.shape_cast %224 : vector<1x8x16xf32> to vector<8x16xf32>
    %cst_112 = arith.constant dense<0.000000e+00> : vector<8x32xf32>
    %226 = tpu.matmul %225, %223, %cst_112 {dimension_numbers = #tpu.dot_dimension_numbers<[1], [0], [0], [1], [0, 0, 1, 1], [], []>} : vector<8x16xf32>, vector<16x32xf32>, vector<8x32xf32> -> vector<8x32xf32>
    %227 = arith.addf %216, %226 : vector<8x32xf32>
    %228 = vector.extract_strided_slice %15 {offsets = [5, 0, 0], sizes = [1, 32, 32], strides = [1, 1, 1]} : vector<8x32x32xf32> to vector<1x32x32xf32>
    %229 = vector.shape_cast %228 : vector<1x32x32xf32> to vector<32x32xf32>
    %cst_113 = arith.constant dense<0.000000e+00> : vector<16x32xf32>
    %230 = tpu.matmul %34, %229, %cst_113 {dimension_numbers = #tpu.dot_dimension_numbers<[1], [0], [0], [1], [0, 0, 1, 1], [], []>} : vector<16x32xf32>, vector<32x32xf32>, vector<16x32xf32> -> vector<16x32xf32>
    %231 = vector.extract_strided_slice %16 {offsets = [5, 0, 0], sizes = [1, 1, 32], strides = [1, 1, 1]} : vector<8x1x32xf32> to vector<1x1x32xf32>
    %232 = vector.shape_cast %231 : vector<1x1x32xf32> to vector<1x32xf32>
    %233 = vector.broadcast %232 : vector<1x32xf32> to vector<16x32xf32>
    %234 = arith.addf %230, %233 : vector<16x32xf32>
    %235 = vector.extract_strided_slice %171 {offsets = [5, 0, 0], sizes = [1, 8, 16], strides = [1, 1, 1]} : vector<8x8x16xf32> to vector<1x8x16xf32>
    %236 = vector.shape_cast %235 : vector<1x8x16xf32> to vector<8x16xf32>
    %cst_114 = arith.constant dense<0.000000e+00> : vector<8x32xf32>
    %237 = tpu.matmul %236, %234, %cst_114 {dimension_numbers = #tpu.dot_dimension_numbers<[1], [0], [0], [1], [0, 0, 1, 1], [], []>} : vector<8x16xf32>, vector<16x32xf32>, vector<8x32xf32> -> vector<8x32xf32>
    %238 = arith.addf %227, %237 : vector<8x32xf32>
    %239 = vector.extract_strided_slice %15 {offsets = [6, 0, 0], sizes = [1, 32, 32], strides = [1, 1, 1]} : vector<8x32x32xf32> to vector<1x32x32xf32>
    %240 = vector.shape_cast %239 : vector<1x32x32xf32> to vector<32x32xf32>
    %cst_115 = arith.constant dense<0.000000e+00> : vector<16x32xf32>
    %241 = tpu.matmul %34, %240, %cst_115 {dimension_numbers = #tpu.dot_dimension_numbers<[1], [0], [0], [1], [0, 0, 1, 1], [], []>} : vector<16x32xf32>, vector<32x32xf32>, vector<16x32xf32> -> vector<16x32xf32>
    %242 = vector.extract_strided_slice %16 {offsets = [6, 0, 0], sizes = [1, 1, 32], strides = [1, 1, 1]} : vector<8x1x32xf32> to vector<1x1x32xf32>
    %243 = vector.shape_cast %242 : vector<1x1x32xf32> to vector<1x32xf32>
    %244 = vector.broadcast %243 : vector<1x32xf32> to vector<16x32xf32>
    %245 = arith.addf %241, %244 : vector<16x32xf32>
    %246 = vector.extract_strided_slice %171 {offsets = [6, 0, 0], sizes = [1, 8, 16], strides = [1, 1, 1]} : vector<8x8x16xf32> to vector<1x8x16xf32>
    %247 = vector.shape_cast %246 : vector<1x8x16xf32> to vector<8x16xf32>
    %cst_116 = arith.constant dense<0.000000e+00> : vector<8x32xf32>
    %248 = tpu.matmul %247, %245, %cst_116 {dimension_numbers = #tpu.dot_dimension_numbers<[1], [0], [0], [1], [0, 0, 1, 1], [], []>} : vector<8x16xf32>, vector<16x32xf32>, vector<8x32xf32> -> vector<8x32xf32>
    %249 = arith.addf %238, %248 : vector<8x32xf32>
    %250 = vector.extract_strided_slice %15 {offsets = [7, 0, 0], sizes = [1, 32, 32], strides = [1, 1, 1]} : vector<8x32x32xf32> to vector<1x32x32xf32>
    %251 = vector.shape_cast %250 : vector<1x32x32xf32> to vector<32x32xf32>
    %cst_117 = arith.constant dense<0.000000e+00> : vector<16x32xf32>
    %252 = tpu.matmul %34, %251, %cst_117 {dimension_numbers = #tpu.dot_dimension_numbers<[1], [0], [0], [1], [0, 0, 1, 1], [], []>} : vector<16x32xf32>, vector<32x32xf32>, vector<16x32xf32> -> vector<16x32xf32>
    %253 = vector.extract_strided_slice %16 {offsets = [7, 0, 0], sizes = [1, 1, 32], strides = [1, 1, 1]} : vector<8x1x32xf32> to vector<1x1x32xf32>
    %254 = vector.shape_cast %253 : vector<1x1x32xf32> to vector<1x32xf32>
    %255 = vector.broadcast %254 : vector<1x32xf32> to vector<16x32xf32>
    %256 = arith.addf %252, %255 : vector<16x32xf32>
    %257 = vector.extract_strided_slice %171 {offsets = [7, 0, 0], sizes = [1, 8, 16], strides = [1, 1, 1]} : vector<8x8x16xf32> to vector<1x8x16xf32>
    %258 = vector.shape_cast %257 : vector<1x8x16xf32> to vector<8x16xf32>
    %cst_118 = arith.constant dense<0.000000e+00> : vector<8x32xf32>
    %259 = tpu.matmul %258, %256, %cst_118 {dimension_numbers = #tpu.dot_dimension_numbers<[1], [0], [0], [1], [0, 0, 1, 1], [], []>} : vector<8x16xf32>, vector<16x32xf32>, vector<8x32xf32> -> vector<8x32xf32>
    %260 = arith.addf %249, %259 : vector<8x32xf32>
    %261 = vector.broadcast %17 : vector<1x32xf32> to vector<8x32xf32>
    %262 = arith.addf %260, %261 : vector<8x32xf32>
    %cst_119 = arith.constant dense<0.000000e+00> : vector<8x32xf32>
    %263 = tpu.matmul %262, %18, %cst_119 {dimension_numbers = #tpu.dot_dimension_numbers<[1], [0], [0], [1], [0, 0, 1, 1], [], []>} : vector<8x32xf32>, vector<32x32xf32>, vector<8x32xf32> -> vector<8x32xf32>
    %264 = vector.broadcast %19 : vector<1x32xf32> to vector<8x32xf32>
    %265 = arith.addf %263, %264 : vector<8x32xf32>
    %cst_120 = arith.constant 0.000000e+00 : f32
    %266 = vector.broadcast %cst_120 : f32 to vector<8x32xf32>
    %267 = arith.maximumf %265, %266 : vector<8x32xf32>
    %cst_121 = arith.constant dense<0.000000e+00> : vector<8x32xf32>
    %268 = tpu.matmul %267, %20, %cst_121 {dimension_numbers = #tpu.dot_dimension_numbers<[1], [0], [0], [1], [0, 0, 1, 1], [], []>} : vector<8x32xf32>, vector<32x32xf32>, vector<8x32xf32> -> vector<8x32xf32>
    %269 = vector.broadcast %21 : vector<1x32xf32> to vector<8x32xf32>
    %270 = arith.addf %268, %269 : vector<8x32xf32>
    %cst_122 = arith.constant dense<0.000000e+00> : vector<8x16xf32>
    %271 = tpu.matmul %22, %153, %cst_122 {dimension_numbers = #tpu.dot_dimension_numbers<[1], [1], [0], [0], [0, 0, 1, 0], [], []>} : vector<8x32xf32>, vector<16x32xf32>, vector<8x16xf32> -> vector<8x16xf32>
    %272 = vector.broadcast %23 : vector<8x1xf32> to vector<8x16xf32>
    %273 = arith.addf %271, %272 : vector<8x16xf32>
    %cst_123 = arith.constant dense<0.000000e+00> : vector<8x8xf32>
    %274 = tpu.matmul %24, %270, %cst_123 {dimension_numbers = #tpu.dot_dimension_numbers<[1], [1], [0], [0], [0, 0, 1, 0], [], []>} : vector<8x32xf32>, vector<8x32xf32>, vector<8x8xf32> -> vector<8x8xf32>
    %275 = vector.broadcast %25 : vector<8x1xf32> to vector<8x8xf32>
    %276 = arith.addf %274, %275 : vector<8x8xf32>
    %277 = vector.shape_cast %276 : vector<8x8xf32> to vector<8x8x1xf32>
    %278 = vector.shape_cast %273 : vector<8x16xf32> to vector<8x1x16xf32>
    %279 = vector.broadcast %277 : vector<8x8x1xf32> to vector<8x8x16xf32>
    %280 = vector.broadcast %278 : vector<8x1x16xf32> to vector<8x8x16xf32>
    %281 = arith.addf %279, %280 : vector<8x8x16xf32>
    %282 = math.tanh %281 : vector<8x8x16xf32>
    %283 = math.exp %282 : vector<8x8x16xf32>
    %cst_124 = arith.constant dense<0.000000e+00> : vector<8x8xf32>
    %284 = vector.multi_reduction <add>, %283, %cst_124 [2] : vector<8x8x16xf32> to vector<8x8xf32>
    %285 = vector.shape_cast %284 : vector<8x8xf32> to vector<8x8x1xf32>
    %286 = tpu.reciprocal %285 {approx = true} : vector<8x8x1xf32> -> vector<8x8x1xf32>
    %287 = vector.broadcast %286 : vector<8x8x1xf32> to vector<8x8x16xf32>
    %288 = arith.mulf %283, %287 : vector<8x8x16xf32>
    %cst_125 = arith.constant 0.000000e+00 : f32
    %289 = vector.broadcast %cst_125 : f32 to vector<8x32xf32>
    %290 = vector.extract_strided_slice %26 {offsets = [0, 0, 0], sizes = [1, 32, 32], strides = [1, 1, 1]} : vector<8x32x32xf32> to vector<1x32x32xf32>
    %291 = vector.shape_cast %290 : vector<1x32x32xf32> to vector<32x32xf32>
    %cst_126 = arith.constant dense<0.000000e+00> : vector<16x32xf32>
    %292 = tpu.matmul %153, %291, %cst_126 {dimension_numbers = #tpu.dot_dimension_numbers<[1], [0], [0], [1], [0, 0, 1, 1], [], []>} : vector<16x32xf32>, vector<32x32xf32>, vector<16x32xf32> -> vector<16x32xf32>
    %293 = vector.extract_strided_slice %27 {offsets = [0, 0, 0], sizes = [1, 1, 32], strides = [1, 1, 1]} : vector<8x1x32xf32> to vector<1x1x32xf32>
    %294 = vector.shape_cast %293 : vector<1x1x32xf32> to vector<1x32xf32>
    %295 = vector.broadcast %294 : vector<1x32xf32> to vector<16x32xf32>
    %296 = arith.addf %292, %295 : vector<16x32xf32>
    %297 = vector.extract_strided_slice %288 {offsets = [0, 0, 0], sizes = [1, 8, 16], strides = [1, 1, 1]} : vector<8x8x16xf32> to vector<1x8x16xf32>
    %298 = vector.shape_cast %297 : vector<1x8x16xf32> to vector<8x16xf32>
    %cst_127 = arith.constant dense<0.000000e+00> : vector<8x32xf32>
    %299 = tpu.matmul %298, %296, %cst_127 {dimension_numbers = #tpu.dot_dimension_numbers<[1], [0], [0], [1], [0, 0, 1, 1], [], []>} : vector<8x16xf32>, vector<16x32xf32>, vector<8x32xf32> -> vector<8x32xf32>
    %300 = arith.addf %289, %299 : vector<8x32xf32>
    %301 = vector.extract_strided_slice %26 {offsets = [1, 0, 0], sizes = [1, 32, 32], strides = [1, 1, 1]} : vector<8x32x32xf32> to vector<1x32x32xf32>
    %302 = vector.shape_cast %301 : vector<1x32x32xf32> to vector<32x32xf32>
    %cst_128 = arith.constant dense<0.000000e+00> : vector<16x32xf32>
    %303 = tpu.matmul %153, %302, %cst_128 {dimension_numbers = #tpu.dot_dimension_numbers<[1], [0], [0], [1], [0, 0, 1, 1], [], []>} : vector<16x32xf32>, vector<32x32xf32>, vector<16x32xf32> -> vector<16x32xf32>
    %304 = vector.extract_strided_slice %27 {offsets = [1, 0, 0], sizes = [1, 1, 32], strides = [1, 1, 1]} : vector<8x1x32xf32> to vector<1x1x32xf32>
    %305 = vector.shape_cast %304 : vector<1x1x32xf32> to vector<1x32xf32>
    %306 = vector.broadcast %305 : vector<1x32xf32> to vector<16x32xf32>
    %307 = arith.addf %303, %306 : vector<16x32xf32>
    %308 = vector.extract_strided_slice %288 {offsets = [1, 0, 0], sizes = [1, 8, 16], strides = [1, 1, 1]} : vector<8x8x16xf32> to vector<1x8x16xf32>
    %309 = vector.shape_cast %308 : vector<1x8x16xf32> to vector<8x16xf32>
    %cst_129 = arith.constant dense<0.000000e+00> : vector<8x32xf32>
    %310 = tpu.matmul %309, %307, %cst_129 {dimension_numbers = #tpu.dot_dimension_numbers<[1], [0], [0], [1], [0, 0, 1, 1], [], []>} : vector<8x16xf32>, vector<16x32xf32>, vector<8x32xf32> -> vector<8x32xf32>
    %311 = arith.addf %300, %310 : vector<8x32xf32>
    %312 = vector.extract_strided_slice %26 {offsets = [2, 0, 0], sizes = [1, 32, 32], strides = [1, 1, 1]} : vector<8x32x32xf32> to vector<1x32x32xf32>
    %313 = vector.shape_cast %312 : vector<1x32x32xf32> to vector<32x32xf32>
    %cst_130 = arith.constant dense<0.000000e+00> : vector<16x32xf32>
    %314 = tpu.matmul %153, %313, %cst_130 {dimension_numbers = #tpu.dot_dimension_numbers<[1], [0], [0], [1], [0, 0, 1, 1], [], []>} : vector<16x32xf32>, vector<32x32xf32>, vector<16x32xf32> -> vector<16x32xf32>
    %315 = vector.extract_strided_slice %27 {offsets = [2, 0, 0], sizes = [1, 1, 32], strides = [1, 1, 1]} : vector<8x1x32xf32> to vector<1x1x32xf32>
    %316 = vector.shape_cast %315 : vector<1x1x32xf32> to vector<1x32xf32>
    %317 = vector.broadcast %316 : vector<1x32xf32> to vector<16x32xf32>
    %318 = arith.addf %314, %317 : vector<16x32xf32>
    %319 = vector.extract_strided_slice %288 {offsets = [2, 0, 0], sizes = [1, 8, 16], strides = [1, 1, 1]} : vector<8x8x16xf32> to vector<1x8x16xf32>
    %320 = vector.shape_cast %319 : vector<1x8x16xf32> to vector<8x16xf32>
    %cst_131 = arith.constant dense<0.000000e+00> : vector<8x32xf32>
    %321 = tpu.matmul %320, %318, %cst_131 {dimension_numbers = #tpu.dot_dimension_numbers<[1], [0], [0], [1], [0, 0, 1, 1], [], []>} : vector<8x16xf32>, vector<16x32xf32>, vector<8x32xf32> -> vector<8x32xf32>
    %322 = arith.addf %311, %321 : vector<8x32xf32>
    %323 = vector.extract_strided_slice %26 {offsets = [3, 0, 0], sizes = [1, 32, 32], strides = [1, 1, 1]} : vector<8x32x32xf32> to vector<1x32x32xf32>
    %324 = vector.shape_cast %323 : vector<1x32x32xf32> to vector<32x32xf32>
    %cst_132 = arith.constant dense<0.000000e+00> : vector<16x32xf32>
    %325 = tpu.matmul %153, %324, %cst_132 {dimension_numbers = #tpu.dot_dimension_numbers<[1], [0], [0], [1], [0, 0, 1, 1], [], []>} : vector<16x32xf32>, vector<32x32xf32>, vector<16x32xf32> -> vector<16x32xf32>
    %326 = vector.extract_strided_slice %27 {offsets = [3, 0, 0], sizes = [1, 1, 32], strides = [1, 1, 1]} : vector<8x1x32xf32> to vector<1x1x32xf32>
    %327 = vector.shape_cast %326 : vector<1x1x32xf32> to vector<1x32xf32>
    %328 = vector.broadcast %327 : vector<1x32xf32> to vector<16x32xf32>
    %329 = arith.addf %325, %328 : vector<16x32xf32>
    %330 = vector.extract_strided_slice %288 {offsets = [3, 0, 0], sizes = [1, 8, 16], strides = [1, 1, 1]} : vector<8x8x16xf32> to vector<1x8x16xf32>
    %331 = vector.shape_cast %330 : vector<1x8x16xf32> to vector<8x16xf32>
    %cst_133 = arith.constant dense<0.000000e+00> : vector<8x32xf32>
    %332 = tpu.matmul %331, %329, %cst_133 {dimension_numbers = #tpu.dot_dimension_numbers<[1], [0], [0], [1], [0, 0, 1, 1], [], []>} : vector<8x16xf32>, vector<16x32xf32>, vector<8x32xf32> -> vector<8x32xf32>
    %333 = arith.addf %322, %332 : vector<8x32xf32>
    %334 = vector.extract_strided_slice %26 {offsets = [4, 0, 0], sizes = [1, 32, 32], strides = [1, 1, 1]} : vector<8x32x32xf32> to vector<1x32x32xf32>
    %335 = vector.shape_cast %334 : vector<1x32x32xf32> to vector<32x32xf32>
    %cst_134 = arith.constant dense<0.000000e+00> : vector<16x32xf32>
    %336 = tpu.matmul %153, %335, %cst_134 {dimension_numbers = #tpu.dot_dimension_numbers<[1], [0], [0], [1], [0, 0, 1, 1], [], []>} : vector<16x32xf32>, vector<32x32xf32>, vector<16x32xf32> -> vector<16x32xf32>
    %337 = vector.extract_strided_slice %27 {offsets = [4, 0, 0], sizes = [1, 1, 32], strides = [1, 1, 1]} : vector<8x1x32xf32> to vector<1x1x32xf32>
    %338 = vector.shape_cast %337 : vector<1x1x32xf32> to vector<1x32xf32>
    %339 = vector.broadcast %338 : vector<1x32xf32> to vector<16x32xf32>
    %340 = arith.addf %336, %339 : vector<16x32xf32>
    %341 = vector.extract_strided_slice %288 {offsets = [4, 0, 0], sizes = [1, 8, 16], strides = [1, 1, 1]} : vector<8x8x16xf32> to vector<1x8x16xf32>
    %342 = vector.shape_cast %341 : vector<1x8x16xf32> to vector<8x16xf32>
    %cst_135 = arith.constant dense<0.000000e+00> : vector<8x32xf32>
    %343 = tpu.matmul %342, %340, %cst_135 {dimension_numbers = #tpu.dot_dimension_numbers<[1], [0], [0], [1], [0, 0, 1, 1], [], []>} : vector<8x16xf32>, vector<16x32xf32>, vector<8x32xf32> -> vector<8x32xf32>
    %344 = arith.addf %333, %343 : vector<8x32xf32>
    %345 = vector.extract_strided_slice %26 {offsets = [5, 0, 0], sizes = [1, 32, 32], strides = [1, 1, 1]} : vector<8x32x32xf32> to vector<1x32x32xf32>
    %346 = vector.shape_cast %345 : vector<1x32x32xf32> to vector<32x32xf32>
    %cst_136 = arith.constant dense<0.000000e+00> : vector<16x32xf32>
    %347 = tpu.matmul %153, %346, %cst_136 {dimension_numbers = #tpu.dot_dimension_numbers<[1], [0], [0], [1], [0, 0, 1, 1], [], []>} : vector<16x32xf32>, vector<32x32xf32>, vector<16x32xf32> -> vector<16x32xf32>
    %348 = vector.extract_strided_slice %27 {offsets = [5, 0, 0], sizes = [1, 1, 32], strides = [1, 1, 1]} : vector<8x1x32xf32> to vector<1x1x32xf32>
    %349 = vector.shape_cast %348 : vector<1x1x32xf32> to vector<1x32xf32>
    %350 = vector.broadcast %349 : vector<1x32xf32> to vector<16x32xf32>
    %351 = arith.addf %347, %350 : vector<16x32xf32>
    %352 = vector.extract_strided_slice %288 {offsets = [5, 0, 0], sizes = [1, 8, 16], strides = [1, 1, 1]} : vector<8x8x16xf32> to vector<1x8x16xf32>
    %353 = vector.shape_cast %352 : vector<1x8x16xf32> to vector<8x16xf32>
    %cst_137 = arith.constant dense<0.000000e+00> : vector<8x32xf32>
    %354 = tpu.matmul %353, %351, %cst_137 {dimension_numbers = #tpu.dot_dimension_numbers<[1], [0], [0], [1], [0, 0, 1, 1], [], []>} : vector<8x16xf32>, vector<16x32xf32>, vector<8x32xf32> -> vector<8x32xf32>
    %355 = arith.addf %344, %354 : vector<8x32xf32>
    %356 = vector.extract_strided_slice %26 {offsets = [6, 0, 0], sizes = [1, 32, 32], strides = [1, 1, 1]} : vector<8x32x32xf32> to vector<1x32x32xf32>
    %357 = vector.shape_cast %356 : vector<1x32x32xf32> to vector<32x32xf32>
    %cst_138 = arith.constant dense<0.000000e+00> : vector<16x32xf32>
    %358 = tpu.matmul %153, %357, %cst_138 {dimension_numbers = #tpu.dot_dimension_numbers<[1], [0], [0], [1], [0, 0, 1, 1], [], []>} : vector<16x32xf32>, vector<32x32xf32>, vector<16x32xf32> -> vector<16x32xf32>
    %359 = vector.extract_strided_slice %27 {offsets = [6, 0, 0], sizes = [1, 1, 32], strides = [1, 1, 1]} : vector<8x1x32xf32> to vector<1x1x32xf32>
    %360 = vector.shape_cast %359 : vector<1x1x32xf32> to vector<1x32xf32>
    %361 = vector.broadcast %360 : vector<1x32xf32> to vector<16x32xf32>
    %362 = arith.addf %358, %361 : vector<16x32xf32>
    %363 = vector.extract_strided_slice %288 {offsets = [6, 0, 0], sizes = [1, 8, 16], strides = [1, 1, 1]} : vector<8x8x16xf32> to vector<1x8x16xf32>
    %364 = vector.shape_cast %363 : vector<1x8x16xf32> to vector<8x16xf32>
    %cst_139 = arith.constant dense<0.000000e+00> : vector<8x32xf32>
    %365 = tpu.matmul %364, %362, %cst_139 {dimension_numbers = #tpu.dot_dimension_numbers<[1], [0], [0], [1], [0, 0, 1, 1], [], []>} : vector<8x16xf32>, vector<16x32xf32>, vector<8x32xf32> -> vector<8x32xf32>
    %366 = arith.addf %355, %365 : vector<8x32xf32>
    %367 = vector.extract_strided_slice %26 {offsets = [7, 0, 0], sizes = [1, 32, 32], strides = [1, 1, 1]} : vector<8x32x32xf32> to vector<1x32x32xf32>
    %368 = vector.shape_cast %367 : vector<1x32x32xf32> to vector<32x32xf32>
    %cst_140 = arith.constant dense<0.000000e+00> : vector<16x32xf32>
    %369 = tpu.matmul %153, %368, %cst_140 {dimension_numbers = #tpu.dot_dimension_numbers<[1], [0], [0], [1], [0, 0, 1, 1], [], []>} : vector<16x32xf32>, vector<32x32xf32>, vector<16x32xf32> -> vector<16x32xf32>
    %370 = vector.extract_strided_slice %27 {offsets = [7, 0, 0], sizes = [1, 1, 32], strides = [1, 1, 1]} : vector<8x1x32xf32> to vector<1x1x32xf32>
    %371 = vector.shape_cast %370 : vector<1x1x32xf32> to vector<1x32xf32>
    %372 = vector.broadcast %371 : vector<1x32xf32> to vector<16x32xf32>
    %373 = arith.addf %369, %372 : vector<16x32xf32>
    %374 = vector.extract_strided_slice %288 {offsets = [7, 0, 0], sizes = [1, 8, 16], strides = [1, 1, 1]} : vector<8x8x16xf32> to vector<1x8x16xf32>
    %375 = vector.shape_cast %374 : vector<1x8x16xf32> to vector<8x16xf32>
    %cst_141 = arith.constant dense<0.000000e+00> : vector<8x32xf32>
    %376 = tpu.matmul %375, %373, %cst_141 {dimension_numbers = #tpu.dot_dimension_numbers<[1], [0], [0], [1], [0, 0, 1, 1], [], []>} : vector<8x16xf32>, vector<16x32xf32>, vector<8x32xf32> -> vector<8x32xf32>
    %377 = arith.addf %366, %376 : vector<8x32xf32>
    %378 = vector.broadcast %28 : vector<1x32xf32> to vector<8x32xf32>
    %379 = arith.addf %377, %378 : vector<8x32xf32>
    %380 = arith.index_cast %arg0 : i32 to index
    %381 = memref.load %arg1[%380] : memref<2xi32, #tpu.memory_space<smem>>
    %c1_i32 = arith.constant 1 : i32
    %382 = arith.maxsi %381, %c1_i32 : i32
    %383 = arith.sitofp %382 : i32 to f32
    %cst_142 = arith.constant 1.000000e+00 : f32
    %384 = arith.divf %cst_142, %383 : f32
    %385 = arith.index_cast %arg0 : i32 to index
    %386 = memref.load %arg2[%385] : memref<2xi32, #tpu.memory_space<smem>>
    %c1_i32_143 = arith.constant 1 : i32
    %387 = arith.maxsi %386, %c1_i32_143 : i32
    %388 = arith.sitofp %387 : i32 to f32
    %cst_144 = arith.constant 1.000000e+00 : f32
    %389 = arith.divf %cst_144, %388 : f32
    %cst_145 = arith.constant dense<0.000000e+00> : vector<32xf32>
    %390 = vector.multi_reduction <add>, %153, %cst_145 [0] : vector<16x32xf32> to vector<32xf32>
    %391 = vector.shape_cast %390 : vector<32xf32> to vector<1x32xf32>
    %392 = vector.broadcast %384 : f32 to vector<1x32xf32>
    %393 = arith.mulf %391, %392 : vector<1x32xf32>
    %cst_146 = arith.constant dense<0.000000e+00> : vector<32xf32>
    %394 = vector.multi_reduction <add>, %270, %cst_146 [0] : vector<8x32xf32> to vector<32xf32>
    %395 = vector.shape_cast %394 : vector<32xf32> to vector<1x32xf32>
    %396 = vector.broadcast %389 : f32 to vector<1x32xf32>
    %397 = arith.mulf %395, %396 : vector<1x32xf32>
    %cst_147 = arith.constant dense<0.000000e+00> : vector<32xf32>
    %398 = vector.multi_reduction <add>, %379, %cst_147 [0] : vector<8x32xf32> to vector<32xf32>
    %399 = vector.shape_cast %398 : vector<32xf32> to vector<1x32xf32>
    %400 = vector.broadcast %384 : f32 to vector<1x32xf32>
    %401 = arith.mulf %399, %400 : vector<1x32xf32>
    %cst_148 = arith.constant dense<0.000000e+00> : vector<1x3xf32>
    %402 = tpu.matmul %393, %29, %cst_148 {dimension_numbers = #tpu.dot_dimension_numbers<[1], [0], [0], [1], [0, 0, 1, 1], [], []>} : vector<1x32xf32>, vector<32x3xf32>, vector<1x3xf32> -> vector<1x3xf32>
    %cst_149 = arith.constant dense<0.000000e+00> : vector<1x3xf32>
    %403 = tpu.matmul %401, %30, %cst_149 {dimension_numbers = #tpu.dot_dimension_numbers<[1], [0], [0], [1], [0, 0, 1, 1], [], []>} : vector<1x32xf32>, vector<32x3xf32>, vector<1x3xf32> -> vector<1x3xf32>
    %404 = arith.addf %402, %403 : vector<1x3xf32>
    %cst_150 = arith.constant dense<0.000000e+00> : vector<1x3xf32>
    %405 = tpu.matmul %397, %31, %cst_150 {dimension_numbers = #tpu.dot_dimension_numbers<[1], [0], [0], [1], [0, 0, 1, 1], [], []>} : vector<1x32xf32>, vector<32x3xf32>, vector<1x3xf32> -> vector<1x3xf32>
    %406 = arith.addf %404, %405 : vector<1x3xf32>
    %407 = arith.addf %406, %32 : vector<1x3xf32>
    %c0_151 = arith.constant 0 : index
    %c0_152 = arith.constant 0 : index
    %c0_153 = arith.constant 0 : index
    %408 = vector.load %arg38[%c0_151, %c0_152, %c0_153] : memref<1x1x3xf32, #tpu.memory_space<vmem>>, vector<1x1x3xf32>
    %409 = vector.shape_cast %408 : vector<1x1x3xf32> to vector<1x3xf32>
    %410 = vector.shape_cast %407 : vector<1x3xf32> to vector<1x1x3xf32>
    tpu.vector_store %arg38[%c0_151, %c0_152, %c0_153], %410 {strides = array<i32>} : memref<1x1x3xf32, #tpu.memory_space<vmem>>, vector<1x1x3xf32>,
    return
  }
  func.func @transform_0(%arg0: i32, %arg1: memref<2xi32, #tpu.memory_space<smem>>, %arg2: memref<2xi32, #tpu.memory_space<smem>>) -> (i32, i32, i32) {
    %c0_i32 = arith.constant 0 : i32
    %c0_i32_0 = arith.constant 0 : i32
    %c0_i32_1 = arith.constant 0 : i32
    return %arg0, %c0_i32, %c0_i32_0 : i32, i32, i32
  }
  func.func @transform_1(%arg0: i32, %arg1: memref<2xi32, #tpu.memory_space<smem>>, %arg2: memref<2xi32, #tpu.memory_space<smem>>) -> (i32, i32, i32) {
    %c0_i32 = arith.constant 0 : i32
    %c0_i32_0 = arith.constant 0 : i32
    %c0_i32_1 = arith.constant 0 : i32
    return %arg0, %c0_i32, %c0_i32_0 : i32, i32, i32
  }
  func.func @transform_2(%arg0: i32, %arg1: memref<2xi32, #tpu.memory_space<smem>>, %arg2: memref<2xi32, #tpu.memory_space<smem>>) -> (i32, i32) {
    %c0_i32 = arith.constant 0 : i32
    %c0_i32_0 = arith.constant 0 : i32
    %c0_i32_1 = arith.constant 0 : i32
    return %c0_i32, %c0_i32_0 : i32, i32
  }
  func.func @transform_3(%arg0: i32, %arg1: memref<2xi32, #tpu.memory_space<smem>>, %arg2: memref<2xi32, #tpu.memory_space<smem>>) -> (i32, i32) {
    %c0_i32 = arith.constant 0 : i32
    %c0_i32_0 = arith.constant 0 : i32
    %c0_i32_1 = arith.constant 0 : i32
    return %c0_i32, %c0_i32_0 : i32, i32
  }
  func.func @transform_4(%arg0: i32, %arg1: memref<2xi32, #tpu.memory_space<smem>>, %arg2: memref<2xi32, #tpu.memory_space<smem>>) -> (i32, i32) {
    %c0_i32 = arith.constant 0 : i32
    %c0_i32_0 = arith.constant 0 : i32
    %c0_i32_1 = arith.constant 0 : i32
    return %c0_i32, %c0_i32_0 : i32, i32
  }
  func.func @transform_5(%arg0: i32, %arg1: memref<2xi32, #tpu.memory_space<smem>>, %arg2: memref<2xi32, #tpu.memory_space<smem>>) -> (i32, i32) {
    %c0_i32 = arith.constant 0 : i32
    %c0_i32_0 = arith.constant 0 : i32
    %c0_i32_1 = arith.constant 0 : i32
    return %c0_i32, %c0_i32_0 : i32, i32
  }
  func.func @transform_6(%arg0: i32, %arg1: memref<2xi32, #tpu.memory_space<smem>>, %arg2: memref<2xi32, #tpu.memory_space<smem>>) -> (i32, i32, i32) {
    %c0_i32 = arith.constant 0 : i32
    %c0_i32_0 = arith.constant 0 : i32
    %c0_i32_1 = arith.constant 0 : i32
    %c0_i32_2 = arith.constant 0 : i32
    return %c0_i32, %c0_i32_0, %c0_i32_1 : i32, i32, i32
  }
  func.func @transform_7(%arg0: i32, %arg1: memref<2xi32, #tpu.memory_space<smem>>, %arg2: memref<2xi32, #tpu.memory_space<smem>>) -> (i32, i32, i32) {
    %c0_i32 = arith.constant 0 : i32
    %c0_i32_0 = arith.constant 0 : i32
    %c0_i32_1 = arith.constant 0 : i32
    %c0_i32_2 = arith.constant 0 : i32
    return %c0_i32, %c0_i32_0, %c0_i32_1 : i32, i32, i32
  }
  func.func @transform_8(%arg0: i32, %arg1: memref<2xi32, #tpu.memory_space<smem>>, %arg2: memref<2xi32, #tpu.memory_space<smem>>) -> (i32, i32) {
    %c0_i32 = arith.constant 0 : i32
    %c0_i32_0 = arith.constant 0 : i32
    %c0_i32_1 = arith.constant 0 : i32
    return %c0_i32, %c0_i32_0 : i32, i32
  }
  func.func @transform_9(%arg0: i32, %arg1: memref<2xi32, #tpu.memory_space<smem>>, %arg2: memref<2xi32, #tpu.memory_space<smem>>) -> (i32, i32) {
    %c0_i32 = arith.constant 0 : i32
    %c0_i32_0 = arith.constant 0 : i32
    %c0_i32_1 = arith.constant 0 : i32
    return %c0_i32, %c0_i32_0 : i32, i32
  }
  func.func @transform_10(%arg0: i32, %arg1: memref<2xi32, #tpu.memory_space<smem>>, %arg2: memref<2xi32, #tpu.memory_space<smem>>) -> (i32, i32) {
    %c0_i32 = arith.constant 0 : i32
    %c0_i32_0 = arith.constant 0 : i32
    %c0_i32_1 = arith.constant 0 : i32
    return %c0_i32, %c0_i32_0 : i32, i32
  }
  func.func @transform_11(%arg0: i32, %arg1: memref<2xi32, #tpu.memory_space<smem>>, %arg2: memref<2xi32, #tpu.memory_space<smem>>) -> (i32, i32) {
    %c0_i32 = arith.constant 0 : i32
    %c0_i32_0 = arith.constant 0 : i32
    %c0_i32_1 = arith.constant 0 : i32
    return %c0_i32, %c0_i32_0 : i32, i32
  }
  func.func @transform_12(%arg0: i32, %arg1: memref<2xi32, #tpu.memory_space<smem>>, %arg2: memref<2xi32, #tpu.memory_space<smem>>) -> (i32, i32) {
    %c0_i32 = arith.constant 0 : i32
    %c0_i32_0 = arith.constant 0 : i32
    %c0_i32_1 = arith.constant 0 : i32
    return %c0_i32, %c0_i32_0 : i32, i32
  }
  func.func @transform_13(%arg0: i32, %arg1: memref<2xi32, #tpu.memory_space<smem>>, %arg2: memref<2xi32, #tpu.memory_space<smem>>) -> (i32, i32) {
    %c0_i32 = arith.constant 0 : i32
    %c0_i32_0 = arith.constant 0 : i32
    %c0_i32_1 = arith.constant 0 : i32
    return %c0_i32, %c0_i32_0 : i32, i32
  }
  func.func @transform_14(%arg0: i32, %arg1: memref<2xi32, #tpu.memory_space<smem>>, %arg2: memref<2xi32, #tpu.memory_space<smem>>) -> (i32, i32) {
    %c0_i32 = arith.constant 0 : i32
    %c0_i32_0 = arith.constant 0 : i32
    %c0_i32_1 = arith.constant 0 : i32
    return %c0_i32, %c0_i32_0 : i32, i32
  }
  func.func @transform_15(%arg0: i32, %arg1: memref<2xi32, #tpu.memory_space<smem>>, %arg2: memref<2xi32, #tpu.memory_space<smem>>) -> (i32, i32) {
    %c0_i32 = arith.constant 0 : i32
    %c0_i32_0 = arith.constant 0 : i32
    %c0_i32_1 = arith.constant 0 : i32
    return %c0_i32, %c0_i32_0 : i32, i32
  }
  func.func @transform_16(%arg0: i32, %arg1: memref<2xi32, #tpu.memory_space<smem>>, %arg2: memref<2xi32, #tpu.memory_space<smem>>) -> (i32, i32) {
    %c0_i32 = arith.constant 0 : i32
    %c0_i32_0 = arith.constant 0 : i32
    %c0_i32_1 = arith.constant 0 : i32
    return %c0_i32, %c0_i32_0 : i32, i32
  }
  func.func @transform_17(%arg0: i32, %arg1: memref<2xi32, #tpu.memory_space<smem>>, %arg2: memref<2xi32, #tpu.memory_space<smem>>) -> (i32, i32, i32) {
    %c0_i32 = arith.constant 0 : i32
    %c0_i32_0 = arith.constant 0 : i32
    %c0_i32_1 = arith.constant 0 : i32
    %c0_i32_2 = arith.constant 0 : i32
    return %c0_i32, %c0_i32_0, %c0_i32_1 : i32, i32, i32
  }
  func.func @transform_18(%arg0: i32, %arg1: memref<2xi32, #tpu.memory_space<smem>>, %arg2: memref<2xi32, #tpu.memory_space<smem>>) -> (i32, i32, i32) {
    %c0_i32 = arith.constant 0 : i32
    %c0_i32_0 = arith.constant 0 : i32
    %c0_i32_1 = arith.constant 0 : i32
    %c0_i32_2 = arith.constant 0 : i32
    return %c0_i32, %c0_i32_0, %c0_i32_1 : i32, i32, i32
  }
  func.func @transform_19(%arg0: i32, %arg1: memref<2xi32, #tpu.memory_space<smem>>, %arg2: memref<2xi32, #tpu.memory_space<smem>>) -> (i32, i32) {
    %c0_i32 = arith.constant 0 : i32
    %c0_i32_0 = arith.constant 0 : i32
    %c0_i32_1 = arith.constant 0 : i32
    return %c0_i32, %c0_i32_0 : i32, i32
  }
  func.func @transform_20(%arg0: i32, %arg1: memref<2xi32, #tpu.memory_space<smem>>, %arg2: memref<2xi32, #tpu.memory_space<smem>>) -> (i32, i32) {
    %c0_i32 = arith.constant 0 : i32
    %c0_i32_0 = arith.constant 0 : i32
    %c0_i32_1 = arith.constant 0 : i32
    return %c0_i32, %c0_i32_0 : i32, i32
  }
  func.func @transform_21(%arg0: i32, %arg1: memref<2xi32, #tpu.memory_space<smem>>, %arg2: memref<2xi32, #tpu.memory_space<smem>>) -> (i32, i32) {
    %c0_i32 = arith.constant 0 : i32
    %c0_i32_0 = arith.constant 0 : i32
    %c0_i32_1 = arith.constant 0 : i32
    return %c0_i32, %c0_i32_0 : i32, i32
  }
  func.func @transform_22(%arg0: i32, %arg1: memref<2xi32, #tpu.memory_space<smem>>, %arg2: memref<2xi32, #tpu.memory_space<smem>>) -> (i32, i32) {
    %c0_i32 = arith.constant 0 : i32
    %c0_i32_0 = arith.constant 0 : i32
    %c0_i32_1 = arith.constant 0 : i32
    return %c0_i32, %c0_i32_0 : i32, i32
  }
  func.func @transform_23(%arg0: i32, %arg1: memref<2xi32, #tpu.memory_space<smem>>, %arg2: memref<2xi32, #tpu.memory_space<smem>>) -> (i32, i32) {
    %c0_i32 = arith.constant 0 : i32
    %c0_i32_0 = arith.constant 0 : i32
    %c0_i32_1 = arith.constant 0 : i32
    return %c0_i32, %c0_i32_0 : i32, i32
  }
  func.func @transform_24(%arg0: i32, %arg1: memref<2xi32, #tpu.memory_space<smem>>, %arg2: memref<2xi32, #tpu.memory_space<smem>>) -> (i32, i32) {
    %c0_i32 = arith.constant 0 : i32
    %c0_i32_0 = arith.constant 0 : i32
    %c0_i32_1 = arith.constant 0 : i32
    return %c0_i32, %c0_i32_0 : i32, i32
  }
  func.func @transform_25(%arg0: i32, %arg1: memref<2xi32, #tpu.memory_space<smem>>, %arg2: memref<2xi32, #tpu.memory_space<smem>>) -> (i32, i32) {
    %c0_i32 = arith.constant 0 : i32
    %c0_i32_0 = arith.constant 0 : i32
    %c0_i32_1 = arith.constant 0 : i32
    return %c0_i32, %c0_i32_0 : i32, i32
  }
  func.func @transform_26(%arg0: i32, %arg1: memref<2xi32, #tpu.memory_space<smem>>, %arg2: memref<2xi32, #tpu.memory_space<smem>>) -> (i32, i32) {
    %c0_i32 = arith.constant 0 : i32
    %c0_i32_0 = arith.constant 0 : i32
    %c0_i32_1 = arith.constant 0 : i32
    return %c0_i32, %c0_i32_0 : i32, i32
  }
  func.func @transform_27(%arg0: i32, %arg1: memref<2xi32, #tpu.memory_space<smem>>, %arg2: memref<2xi32, #tpu.memory_space<smem>>) -> (i32, i32) {
    %c0_i32 = arith.constant 0 : i32
    %c0_i32_0 = arith.constant 0 : i32
    %c0_i32_1 = arith.constant 0 : i32
    return %c0_i32, %c0_i32_0 : i32, i32
  }
  func.func @transform_28(%arg0: i32, %arg1: memref<2xi32, #tpu.memory_space<smem>>, %arg2: memref<2xi32, #tpu.memory_space<smem>>) -> (i32, i32, i32) {
    %c0_i32 = arith.constant 0 : i32
    %c0_i32_0 = arith.constant 0 : i32
    %c0_i32_1 = arith.constant 0 : i32
    %c0_i32_2 = arith.constant 0 : i32
    return %c0_i32, %c0_i32_0, %c0_i32_1 : i32, i32, i32
  }
  func.func @transform_29(%arg0: i32, %arg1: memref<2xi32, #tpu.memory_space<smem>>, %arg2: memref<2xi32, #tpu.memory_space<smem>>) -> (i32, i32, i32) {
    %c0_i32 = arith.constant 0 : i32
    %c0_i32_0 = arith.constant 0 : i32
    %c0_i32_1 = arith.constant 0 : i32
    %c0_i32_2 = arith.constant 0 : i32
    return %c0_i32, %c0_i32_0, %c0_i32_1 : i32, i32, i32
  }
  func.func @transform_30(%arg0: i32, %arg1: memref<2xi32, #tpu.memory_space<smem>>, %arg2: memref<2xi32, #tpu.memory_space<smem>>) -> (i32, i32) {
    %c0_i32 = arith.constant 0 : i32
    %c0_i32_0 = arith.constant 0 : i32
    %c0_i32_1 = arith.constant 0 : i32
    return %c0_i32, %c0_i32_0 : i32, i32
  }
  func.func @transform_31(%arg0: i32, %arg1: memref<2xi32, #tpu.memory_space<smem>>, %arg2: memref<2xi32, #tpu.memory_space<smem>>) -> (i32, i32) {
    %c0_i32 = arith.constant 0 : i32
    %c0_i32_0 = arith.constant 0 : i32
    %c0_i32_1 = arith.constant 0 : i32
    return %c0_i32, %c0_i32_0 : i32, i32
  }
  func.func @transform_32(%arg0: i32, %arg1: memref<2xi32, #tpu.memory_space<smem>>, %arg2: memref<2xi32, #tpu.memory_space<smem>>) -> (i32, i32) {
    %c0_i32 = arith.constant 0 : i32
    %c0_i32_0 = arith.constant 0 : i32
    %c0_i32_1 = arith.constant 0 : i32
    return %c0_i32, %c0_i32_0 : i32, i32
  }
  func.func @transform_33(%arg0: i32, %arg1: memref<2xi32, #tpu.memory_space<smem>>, %arg2: memref<2xi32, #tpu.memory_space<smem>>) -> (i32, i32) {
    %c0_i32 = arith.constant 0 : i32
    %c0_i32_0 = arith.constant 0 : i32
    %c0_i32_1 = arith.constant 0 : i32
    return %c0_i32, %c0_i32_0 : i32, i32
  }
  func.func @transform_34(%arg0: i32, %arg1: memref<2xi32, #tpu.memory_space<smem>>, %arg2: memref<2xi32, #tpu.memory_space<smem>>) -> (i32, i32) {
    %c0_i32 = arith.constant 0 : i32
    %c0_i32_0 = arith.constant 0 : i32
    %c0_i32_1 = arith.constant 0 : i32
    return %c0_i32, %c0_i32_0 : i32, i32
  }
  func.func @transform_35(%arg0: i32, %arg1: memref<2xi32, #tpu.memory_space<smem>>, %arg2: memref<2xi32, #tpu.memory_space<smem>>) -> (i32, i32, i32) {
    %c0_i32 = arith.constant 0 : i32
    %c0_i32_0 = arith.constant 0 : i32
    %c0_i32_1 = arith.constant 0 : i32
    return %arg0, %c0_i32, %c0_i32_0 : i32, i32, i32
  }
}

</mosaic_0001>

<bundles_post_ra>
// kernel: aen_glove_forward.1
= control target key start
LH: loop header
LB: loop body
LE: loop exit
PB: predicated region body
PF: predicated region fallthrough
CT: control target
= control target key end

     0   :  { %s8384_s6 = smov 2   ;;  %s8385_s10 = smov 3   ;;  %s9478_s0 = inlined_call_operand.smem [shape: u32[38], index: -1, kind: input, shape index: {}] }
   0x1   :  { %s8436_s5 = sld [smem:[%s9478_s0]]   ;;  %s8386_s14 = smov 4  }
   0x2   :  { %s8441_s9 = sld [smem:[%s9478_s0 + %s8384_s6]]   ;;  %s8387_s18 = smov 5  }
   0x3   :  { %s8446_s13 = sld [smem:[%s9478_s0 + %s8385_s10]]   ;;  %s8388_s22 = smov 6  }
   0x4   :  { %s8451_s17 = sld [smem:[%s9478_s0 + %s8386_s14]]   ;;  %s8389_s26 = smov 7  }
   0x5   :  { %s8456_s21 = sld [smem:[%s9478_s0 + %s8387_s18]]   ;;  %s8390_s30 = smov 8  }
   0x6   :  { %s8461_s25 = sld [smem:[%s9478_s0 + %s8388_s22]]   ;;  %s8391_s4 = smov 9  }
   0x7   :  { %s8466_s29 = sld [smem:[%s9478_s0 + %s8389_s26]]   ;;  %s8392_s10 = smov 10  }
   0x8   :  { %9494 = sst [smem:[#allocation9_spill]] %s8441_s9  ;;  %s8393_s15 = smov 11  }
   0x9   :  { %9495 = sst [smem:[#allocation10_spill]] %s8446_s13  ;;  %s8394_s20 = smov 12  }
   0xa   :  { %s8471_s3 = sld [smem:[%s9478_s0 + %s8390_s30]]   ;;  %s8395_s26 = smov 13  }
   0xb   :  { %s8476_s8 = sld [smem:[%s9478_s0 + %s8391_s4]]   ;;  %s8396_s1 = smov 14  }
   0xc   :  { %s8481_s14 = sld [smem:[%s9478_s0 + %s8392_s10]]   ;;  %s8397_s7 = smov 15  }
   0xd   :  { %s8486_s19 = sld [smem:[%s9478_s0 + %s8393_s15]]   ;;  %s8398_s15 = smov 16  }
   0xe   :  { %s8491_s24 = sld [smem:[%s9478_s0 + %s8394_s20]]   ;;  %s8399_s22 = smov 17  }
   0xf   :  { %s8496_s30 = sld [smem:[%s9478_s0 + %s8395_s26]]   ;;  %s8400_s28 = smov 18  }
  0x10   :  { %9496 = sst [smem:[#allocation11_spill]] %s8471_s3 }
  0x11   :  { %9497 = sst [smem:[#allocation12_spill]] %s8476_s8 }
  0x12   :  { %9498 = sst [smem:[#allocation13_spill]] %s8481_s14 }
  0x13   :  { %s8501_s6 = sld [smem:[%s9478_s0 + %s8396_s1]]  }
  0x14   :  { %9499 = sst [smem:[#allocation14_spill]] %s8491_s24 }
  0x15   :  { %s8506_s12 = sld [smem:[%s9478_s0 + %s8397_s7]]   ;;  %s8401_s7 = smov 19  }
  0x16   :  { %s8511_s20 = sld [smem:[%s9478_s0 + %s8398_s15]]   ;;  %s8402_s15 = smov 20  }
  0x17   :  { %s8516_s27 = sld [smem:[%s9478_s0 + %s8399_s22]]   ;;  %s8403_s22 = smov 21  }
  0x18   :  { %s8521_s4 = sld [smem:[%s9478_s0 + %s8400_s28]]   ;;  %s8404_s28 = smov 22  }
  0x19   :  { %9500 = sst [smem:[#allocation15_spill]] %s8501_s6 }
  0x1a   :  { %s8526_s6 = sld [smem:[%s9478_s0 + %s8401_s7]]   ;;  %s8405_s7 = smov 23  }
  0x1b   :  { %9501 = sst [smem:[#allocation16_spill]] %s8506_s12 }
  0x1c   :  { %s8531_s13 = sld [smem:[%s9478_s0 + %s8402_s15]]   ;;  %s8406_s15 = smov 24  }
  0x1d   :  { %9502 = sst [smem:[#allocation17_spill]] %s8516_s27 }
  0x1e   :  { %9503 = sst [smem:[#allocation18_spill]] %s8521_s4 }
  0x1f   :  { %s8536_s27 = sld [smem:[%s9478_s0 + %s8403_s22]]   ;;  %s8407_s22 = smov 25  }
  0x20   :  { %9504 = sst [smem:[#allocation19_spill]] %s8526_s6 }
  0x21   :  { %s8541_s24 = sld [smem:[%s9478_s0 + %s8404_s28]]   ;;  %s8408_s28 = smov 26  }
  0x22   :  { %9505 = sst [smem:[#allocation20_spill]] %s8531_s13 }
  0x23   :  { %s8546_s6 = sld [smem:[%s9478_s0 + %s8405_s7]]   ;;  %s8409_s7 = smov 27  }
  0x24   :  { %s8551_s13 = sld [smem:[%s9478_s0 + %s8406_s15]]   ;;  %s8410_s15 = smov 28  }
  0x25   :  { %9506 = sst [smem:[#allocation21_spill]] %s8536_s27 }
  0x26   :  { %s8556_s27 = sld [smem:[%s9478_s0 + %s8407_s22]]   ;;  %s8411_s22 = smov 29  }
  0x27   :  { %9507 = sst [smem:[#allocation22_spill]] %s8541_s24 }
  0x28   :  { %s8561_s24 = sld [smem:[%s9478_s0 + %s8408_s28]]   ;;  %s8412_s28 = smov 30  }
  0x29   :  { %9508 = sst [smem:[#allocation23_spill]] %s8546_s6 }
  0x2a   :  { %9509 = sst [smem:[#allocation24_spill]] %s8551_s13  ;;  %s8417_s13 = smov 35  }
  0x2b   :  { %s8566_s6 = sld [smem:[%s9478_s0 + %s8409_s7]]   ;;  %s8413_s7 = smov 31  }
  0x2c   :  { %9510 = sst [smem:[#allocation25_spill]] %s8556_s27  ;;  %s8415_s27 = smov 33  }
  0x2d   :  { %s8571_s23 = sld [smem:[%s9478_s0 + %s8410_s15]]   ;;  %s8414_s15 = smov 32  }
  0x2e   :  { %9511 = sst [smem:[#allocation26_spill]] %s8561_s24  ;;  %s8416_s24 = smov 34  }
  0x2f   :  { %s8576_s1 = sld [smem:[%s9478_s0 + %s8411_s22]]  }
  0x30   :  { %s8581_s10 = sld [smem:[%s9478_s0 + %s8412_s28]]  }
  0x31   :  { %9512 = sst [smem:[#allocation27_spill]] %s8566_s6 }
  0x32   :  { %s8586_s16 = sld [smem:[%s9478_s0 + %s8413_s7]]  }
  0x33   :  { %9513 = sst [smem:[#allocation28_spill]] %s8571_s23  ;;  %s80_s23 = sshll.u32 %s8436_s5, 4  ;;  %s81_s23 = int_to_ptr.vmem [resolvable:$true] %s80_s23 }
  0x34   :  { %s8591_s6 = sld [smem:[%s9478_s0 + %s8414_s15]]   ;;  %s8418_s15 = smov 36  }
  0x35   :  { %9514 = sst [smem:[#allocation29_spill]] %s8576_s1  ;;  %s8296_s28 = scalar_lea.vmem %s81_s23, 16 }
  0x36   :  { %9515 = sst [smem:[#allocation30_spill]] %s8581_s10  ;;  %p8297_p0 = scmp.ne.s32.totalorder %s81_s23, %s8296_s28 }
  0x37   :  { %s8596_s1 = sld [smem:[%s9478_s0 + %s8415_s27]]   ;;  %s8419_s27 = smov 37  }
  0x38   :  { %9516 = sst [smem:[#allocation31_spill]] %s8586_s16  ;;  %p8301_p1 = scmp.lt.s32.totalorder %s81_s23, %s81_s23 }
  0x39   :  { %s8601_s10 = sld [smem:[%s9478_s0 + %s8416_s24]]   ;;  %p8302_p2 = scmp.lt.s32.totalorder %s8296_s28, %s8296_s28 }
  0x3a   :  { %9517 = sst [smem:[#allocation32_spill]] %s8591_s6 }
  0x3b   :  { %s8606_s16 = sld [smem:[%s9478_s0 + %s8417_s13]]   ;;  %p8303_p3 = por %p8302_p2, %p8301_p1 }
  0x3c   :  { %s8612_s22 = sld [smem:[%s9478_s0 + %s8418_s15]]  }
  0x3d   :  { %9518 = sst [smem:[#allocation33_spill]] %s8596_s1  ;;  %p8304_p4 = pnand %p8303_p3, %p8297_p0 }
  0x3e   :  { %s8617_s24 = sld [smem:[%s9478_s0 + %s8419_s27]]  }
  0x3f   :  { %9519 = sst [smem:[#allocation34_spill]] %s8601_s10 }
  0x40   :  { %8307 = shalt.err (!%p8304_p4)  }
  0x41   :  { %s8420_s5 = smov [#allocation3]   ;;  %s8421_s2 = smov 1  }
  0x42   :  { %83 = dma.vmem_to_smem %s81_s23, 16, %s8420_s5, [#allocation2] }
  0x43   :  { %s7001_s7 = sld [smem:[%s9478_s0 + %s8421_s2]]  }
  0x49   :  { %s84_s11 = sshll.u32 %s7001_s7, 4  ;;  %s85_s11 = int_to_ptr.vmem [resolvable:$true] %s84_s11 }
  0x4a   :  { %s8308_s15 = scalar_lea.vmem %s85_s11, 16  ;;  %p8313_p6 = scmp.lt.s32.totalorder %s85_s11, %s85_s11 }
  0x4b   :  { %p8309_p5 = scmp.ne.s32.totalorder %s85_s11, %s8308_s15  ;;  %p8314_p7 = scmp.lt.s32.totalorder %s8308_s15, %s8308_s15 }
  0x4d   :  { %p8315_p8 = por %p8314_p7, %p8313_p6 }
  0x4f   :  { %p8316_p9 = pnand %p8315_p8, %p8309_p5 }
  0x51   :  { %8319 = shalt.err (!%p8316_p9)  }
  0x52   :  { %s8422_s1 = smov [#allocation4]  }
  0x53   :  { %87 = dma.vmem_to_smem %s85_s11, 16, %s8422_s1, [#allocation2] }
  0x54   :  { %8362 = dma.done.wait [#allocation2], 32 }
  0x55   :  { %8363 = vsyncadd [#allocation2], 4294967264 }
  0x56   :  { %89 = sfence }
  0x57   :  { %90 = vsyncpa [#allocation6], 0 }
  0x58   :  { %92 = vsyncpa [#allocation6 + $0x1], 0  ;;  %s8622_s23 = smov 0   ;;  %s8624_s18 = smov 0  }
  0x59   :  { %s8626_s0 = smov 0   ;;  %s8628_s27 = smov 0  }
  0x5a LB: > { %s9520_s10 = sld [smem:[#allocation34_spill]]  ;;  %s8643_s26 = sadd.s32 4294967295, %s8382_s27   ;;  %s8378_s0 = sphi %s8626_s0, %s9550_s0   ;;  %s8374_s18 = sphi %s8624_s18, %s9549_s18   ;;  %s8370_s23 = sphi %s8622_s23, %s9548_s23   ;;  %s8382_s27 = sphi %s8628_s27, %s9551_s27  }
  0x5b   : > { %s9521_s8 = sld [smem:[#allocation12_spill]]  ;;  %s7039_s28 = sadd.s32 4294967294, %s8382_s27  }
  0x5c   : > { %s9522_s3 = sld [smem:[#allocation11_spill]]  ;;  %s8647_s5 = sadd.s32 1, %s8382_s27  }
  0x5d   : > { %s850_s2 = sadd.s32 1, %s8378_s0  ;;  %s847_s6 = ssub.s32 %s8382_s27, %s8647_s5 }
  0x5e   : > { %p860_p10 = scmp.ne.s32.totalorder %s8378_s0, %s8374_s18  ;;  %p848_p11 = scmp.eq.s32.totalorder %s847_s6, 0 }
  0x5f   : > { %p861_p12 = scmp.eq.s32.totalorder %s8643_s26, 1  ;;  %p866_p13 = scmp.ne.s32.totalorder %s8374_s18, %s8370_s23 }
  0x60   : > { %p867_p0 = scmp.eq.s32.totalorder %s7039_s28, 1  ;;  %p7042_p3 = scmp.ge.s32.totalorder %s8382_s27, 1 }
  0x61   : > { %s8658_s13 = scalar_select %p848_p11, %s8378_s0, %s850_s2  }
  0x62   : > { %p8660_p1 = por %p861_p12, %p860_p10  ;;  %p8664_p2 = por %p867_p0, %p866_p13 }
  0x63   : > { %p999_p4 = scmp.lt.s32.totalorder %s8382_s27, 3 }
  0x65   : > { %p1000_p5 = pnand %p7042_p3, %p999_p4 }
  0x66   : > { %s9525_s9 = sld [smem:[#allocation9_spill]] (!%p1000_p5)  ;;  %p1090_p6 = scmp.lt.s32.totalorder (!%p1000_p5), %s8643_s26, 1 }
  0x67   : > { %1003 = sbr.rel (%p1000_p5) target bundleno = 6563 (0x19a3), region = 160  ;;  %s9526_s14 = sld [smem:[#allocation13_spill]] (!%p1000_p5) }
  0x68   : > { %s9527_s12 = sld [smem:[#allocation16_spill]] (!%p1000_p5) }
  0x69   : > { %s9528_s4 = sld [smem:[#allocation18_spill]] (!%p1000_p5) }
  0x6a   : > { %s9529_s2 = sld [smem:[#allocation14_spill]] (!%p1000_p5) }
  0x6b   : > { %s9530_s6 = sld [smem:[#allocation10_spill]] (!%p1000_p5) }
  0x6c   : > { %v8423_v0 = vmov 0.0   ;;  %v1102_v1 = vld [vmem:[%s8466_s29] sm:$0xff]  ;;  %s8675_s15 = scalar_select %p1090_p6, %s8643_s26, 1  ;;  %vm8424_vm0 = vmmov 0   ;;  %v8425_v2 = vmov 0   ;;  %vm1275_vm1 = vcmask 261120  }
  0x6d   : > { %7463 = vmatprep.subr.mxu0 %v8423_v0  ;;  %7470 = vmatprep.subr.mxu1 %v8423_v0  ;;  %v1100_v4 = vld [vmem:[%s8456_s21] sm:$0xff]  ;;  %v1110_v8 = vld [vmem:[%s9522_s3 + $0x38] sm:$0xff]  ;;  %v1109_v10 = vld [vmem:[%s9522_s3 + $0x30] sm:$0xff]  ;;  %v1433_v20 = vlaneseq  ;;  %v8426_v34 = vmov 1966171168   ;;  %vm1675_vm2 = vcmask 130048  }
  0x6e   : > { %7467 = vmatprep.mubr.msk.f32.mxu0 %vm8424_vm0, %v8423_v0  ;;  %7474 = vmatprep.mubr.msk.f32.mxu1 %vm8424_vm0, %v8423_v0  ;;  %s7185_s1 = sshll.u32 %s8675_s15, 4  ;;  %v1099_v6 = vld [vmem:[%s8451_s17] sm:$0xff]  ;;  %v1106_v9 = vld [vmem:[%s9522_s3 + $0x18] sm:$0xff]  ;;  %v1105_v11 = vld [vmem:[%s9522_s3 + $0x10] sm:$0xff]  ;;  %v1524_v35 = vunpack.c.l.s4 %v8426_v34  ;;  %vm6920_vm3 = vcmask 16384  }
  0x6f   : > { %8096 = vset.pattern.permute.xlu0 %v8425_v2  ;;  %8097 = vset.pattern.permute.xlu1 %v8425_v2  ;;  %s8683_s28 = scalar_lea.vmem %s9525_s9, %s7185_s1  ;;  %v1101_v7 = vld [vmem:[%s8461_s25] sm:$0xff]  ;;  %v1108_v12 = vld [vmem:[%s9522_s3 + $0x28] sm:$0xff]  ;;  %v1114_v16 = vld [vmem:[%s9522_s3 + $0x58] sm:$0xff]  ;;  %v8730_v21 = vshrl.u32 %v1433_v20, 7  ;;  %s6657_s1 = sld [smem:[#allocation3 + %s8643_s26]] }
  0x70   : > { %1357 = vperm.xlu0 %8096, %v1102_v1   ;;  %v8686_v3 = vld [vmem:[%s8683_s28 + $0x8] sm:$0xff]  ;;  %v8696_v5 = vld [vmem:[%s8683_s28] sm:$0xff]  ;;  %v1113_v17 = vld [vmem:[%s9522_s3 + $0x50] sm:$0xff]  ;;  %v1525_v36 = vunpack.c.0.s8 %v1524_v35  ;;  %s9532_s9 = sld [smem:[#allocation19_spill]] }
  0x71   : > { %7464 = vmatpush3.xpose.msk.msra.mxu0 %vm1275_vm1, %v8686_v3  ;;  %7471 = vmatpush3.xpose.msk.msra.mxu1 %vm1275_vm1, %v8686_v3  ;;  %v1104_v13 = vld [vmem:[%s9522_s3 + $0x8] sm:$0xff]  ;;  %v1107_v14 = vld [vmem:[%s9522_s3 + $0x20] sm:$0xff]  ;;  %v8733_v23 = vsub.s32 0, %v8730_v21  ;;  %v8736_v24 = vsub.s32 1, %v8730_v21  ;;  %v8745_v32 = vsub.s32 2, %v8730_v21 }
  0x72   : > { %7465 = vmatprep.subr.mxu0 %v8423_v0  ;;  %7472 = vmatprep.subr.mxu1 %v8423_v0  ;;  %v1103_v15 = vld [vmem:[%s9522_s3] sm:$0xff]  ;;  %v1112_v18 = vld [vmem:[%s9522_s3 + $0x48] sm:$0xff]  ;;  %v8752_v39 = vsub.s32 %v1525_v36, %v8730_v21 }
  0x73   : > { %v1111_v19 = vld [vmem:[%s9522_s3 + $0x40] sm:$0xff] }
  0x74   : > { %1272 = vperm.xlu0 %8096, %v1100_v4   ;;  %v7052_v36 = vld [vmem:[%s9521_s8] ss:$0 sm:$0xff] }
  0x75   : > { %7466 = vmatpush3.xpose.msk.msra.mxu0 %vm1275_vm1, %v8696_v5  ;;  %7473 = vmatpush3.xpose.msk.msra.mxu1 %vm1275_vm1, %v8696_v5  ;;  %p6658_p7 = scmp.gt.s32.totalorder %s6657_s1, 1 }
  0x76   : > { %7488 = vmatprep.subr.mxu1 %v1110_v8  ;;  %7477 = vmatprep.subr.mxu0 %v1106_v9 }
  0x77   : > { %s9553_s1 = smov (!%p6658_p7, %s6657_s1), 1 }
  0x78   : > { %7468 = vmatmul.mubr.msk.f32.vlgmr.msra.gmra.mxu0 %vm1275_vm1, %v1099_v6  ;;  %7475 = vmatmul.mubr.msk.f32.vlgmr.msra.gmra.mxu1 %vm1275_vm1, %v1101_v7 }
  0x79   : > { %7496 = vmatprep.mubr.msk.f32.mxu1 %vm1275_vm1, %v8696_v5  ;;  %7485 = vmatprep.mubr.msk.f32.mxu0 %vm1275_vm1, %v8696_v5 }
  0x7a   : > { %7489 = vmatpush3.msra.mxu1 %v1110_v8  ;;  %7478 = vmatpush3.msra.mxu0 %v1106_v9 }
  0x7b   : > { %7490 = vmatprep.subr.mxu1 %v1109_v10  ;;  %7479 = vmatprep.subr.mxu0 %v1105_v11 }
  0x7c   : > { %7491 = vmatpush3.msra.mxu1 %v1109_v10  ;;  %7480 = vmatpush3.msra.mxu0 %v1105_v11 }
  0x7d   : > { %7492 = vmatprep.subr.mxu1 %v1108_v12  ;;  %7481 = vmatprep.subr.mxu0 %v1104_v13 }
  0x7e   : > { %7493 = vmatpush3.msra.mxu1 %v1108_v12  ;;  %7482 = vmatpush3.msra.mxu0 %v1104_v13 }
  0x7f   : > { %7494 = vmatprep.subr.mxu1 %v1107_v14  ;;  %7483 = vmatprep.subr.mxu0 %v1103_v15 }
  0x80   : > { %7495 = vmatpush3.msra.mxu1 %v1107_v14  ;;  %7484 = vmatpush3.msra.mxu0 %v1103_v15 }
  0x81   : > { %7497 = vmatmul.mubr.msk.f32.vlgmr.msra.gmra.mxu1 %vm1275_vm1, %v8686_v3  ;;  %7513 = vmatprep.subr.mxu0 %v1114_v16 }
  0x82   : > { %7486 = vmatmul.mubr.msk.f32.vlgmr.msra.gmra.mxu0 %vm1275_vm1, %v8686_v3 }
  0x83   : > { %7514 = vmatpush3.msra.mxu0 %v1114_v16  ;;  %7521 = vmatprep.mubr.msk.f32.mxu0 %vm1275_vm1, %v8696_v5 }
  0x84   : > { %7515 = vmatprep.subr.mxu0 %v1113_v17 }
  0x85   : > { %7516 = vmatpush3.msra.mxu0 %v1113_v17 }
  0x86   : > { %7517 = vmatprep.subr.mxu0 %v1112_v18 }
  0x87   : > { %7518 = vmatpush3.msra.mxu0 %v1112_v18 }
  0x88   : > { %7519 = vmatprep.subr.mxu0 %v1111_v19 }
  0x89   : > { %7520 = vmatpush3.msra.mxu0 %v1111_v19 }
  0x8a   : > { %7522 = vmatmul.mubr.msk.f32.vlgmr.msra.gmra.mxu0 %vm1275_vm1, %v8686_v3 }
  0xeb   : > { %v1358_v22 = vpop.permute.xlu0 %1357 }
  0xef   : > { %v1273_v37 = vpop.permute.xlu0 %1272 }
 0x138   : > { %v1351_v25 = vpop.f32.mrf.mxu0  ;;  %v1429_v26 = vpop.f32.mrf.mxu1 }
 0x139   : > { %v8738_v27 = vadd.f32 %v1429_v26, %v1358_v22  ;;  %v8749_v38 = vadd.f32 %v1351_v25, %v1273_v37  ;;  %v8780_v26 = vsub.s32 3, %v8730_v21 }
 0x13a   : > { %v7476_v28 = vpop.f32.mrf.mxu1  ;;  %v7469_v29 = vpop.f32.mrf.mxu0 }
 0x13b   : > { %v1447_v30 = vrot.slane %v8738_v27, %v8736_v24  ;;  %v1436_v31 = vrot.slane %v8738_v27, %v8733_v23  ;;  %v1458_v33 = vrot.slane %v8738_v27, %v8745_v32  ;;  %v1529_v40 = vrot.slane %v8749_v38, %v8752_v39  ;;  %v7055_v29 = vld [vmem:[%s9521_s8 + $0x1] ss:$0 sm:$0xff] }
 0x13c   : > { %v1469_v34 = vrot.slane %v8738_v27, %v8780_v26 }
 0x13d   : > { %1449 = vbcast.lane.b32.xlu1 %v1447_v30, 256  ;;  %1438 = vbcast.lane.b32.xlu0 %v1436_v31, 256  ;;  %v1537_v41 = vcombine.high %v1529_v40, %v1529_v40  ;;  %v1545_v43 = vrot.slane %v1529_v40, %v8752_v39 }
 0x13f   : > { %v8757_v42 = vrot.slane %v1537_v41, %v8752_v39  ;;  %v1574_v45 = vrot.slane %v1545_v43, %v8733_v23  ;;  %v1567_v46 = vcombine.high %v1545_v43, %v1545_v43 }
 0x141   : > { %1453 = vbcast.lane.b32.xlu1 %v1447_v30, 264  ;;  %1460 = vbcast.lane.b32.xlu0 %v1458_v33, 256  ;;  %v1578_v44 = vrot.slane %v8757_v42, %v8733_v23  ;;  %v1582_v51 = vrot.slane %v1567_v46, %v8733_v23  ;;  %v7498_v28 = vpop.f32.mrf.mxu1 }
 0x142   : > { %v1915_v30 = vadd.f32 %v7498_v28, %v7055_v29  ;;  %v7487_v35 = vpop.f32.mrf.mxu0 }
 0x143   : > { %v1834_v37 = vadd.f32 %v7487_v35, %v7052_v36 }
 0x144   : > { %7499 = vmatprep.subr.mxu1 %v1915_v30 }
 0x145   : > { %1442 = vbcast.lane.b32.xlu1 %v1436_v31, 264  ;;  %v1909_v31 = vpop.f32.mrf.mxu1  ;;  %7500 = vmatpush3.msra.mxu1 %v1915_v30 }
 0x149   : > { %1464 = vbcast.lane.b32.xlu1 %v1458_v33, 264  ;;  %v1910_v33 = vadd.f32 %v7055_v29, %v1909_v31  ;;  %v1522_v29 = vcombine.high %v8749_v38, %v8749_v38 }
 0x14b   : > { %7501 = vmatprep.subr.mxu1 %v1910_v33  ;;  %v8817_v30 = vrot.slane %v1522_v29, %v8752_v39 }
 0x14c   : > { %7502 = vmatpush3.msra.mxu1 %v1910_v33 }
 0x14d   : > { %7506 = vmatprep.subr.mxu1 %v1834_v37  ;;  %v8821_v31 = vrot.slane %v8817_v30, %v8752_v39 }
 0x1af   : > { %v1450_v47 = vpop.permute.xlu1 %1449  ;;  %v1439_v48 = vpop.permute.xlu0 %1438 }
 0x1b0   : > { %v1613_v49 = vadd.f32 %v1578_v44, %v1450_v47  ;;  %v1611_v50 = vadd.f32 %v1574_v45, %v1439_v48 }
 0x1b2   : > { %8098 = vtanh.f32 %v1613_v49 }
 0x1b3   : > { %8100 = vtanh.f32 %v1611_v50  ;;  %v1454_v52 = vpop.permute.xlu1 %1453  ;;  %v1461_v53 = vpop.permute.xlu0 %1460 }
 0x1b4   : > { %v1614_v54 = vadd.f32 %v1578_v44, %v1454_v52  ;;  %v1615_v55 = vadd.f32 %v1582_v51, %v1461_v53  ;;  %v1569_v44 = vcombine.high %v8757_v42, %v8757_v42 }
 0x1b6   : > { %8102 = vtanh.f32 %v1614_v54  ;;  %v1586_v47 = vrot.slane %v1569_v44, %v8733_v23  ;;  %v1828_v54 = vpop.f32.mrf.mxu0 }
 0x1b7   : > { %8104 = vtanh.f32 %v1615_v55  ;;  %v1443_v56 = vpop.permute.xlu1 %1442 }
 0x1b8   : > { %v1612_v57 = vadd.f32 %v1574_v45, %v1443_v56  ;;  %v7062_v56 = vld [vmem:[%s9521_s8 + $0x2] ss:$0 sm:$0xff] }
 0x1ba   : > { %8106 = vtanh.f32 %v1612_v57 }
 0x1bb   : > { %v1465_v58 = vpop.permute.xlu1 %1464 }
 0x1bc   : > { %v1616_v59 = vadd.f32 %v1582_v51, %v1465_v58  ;;  %v7523_v58 = vpop.f32.mrf.mxu0 }
 0x1be   : > { %8108 = vtanh.f32 %v1616_v59 }
 0x1bf   : > { %v8099_v60 = vpop.eup %8098 }
 0x1c0   : > { %v8101_v61 = vpop.eup %8100  ;;  %v1647_v62 = vmul.f32 1.442695, %v8099_v60 }
 0x1c1   : > { %v1643_v63 = vmul.f32 1.442695, %v8101_v61  ;;  %v1829_v61 = vadd.f32 %v7052_v36, %v1828_v54 }
 0x1c2   : > { %8110 = vpow2.f32 %v1647_v62  ;;  %v2158_v62 = vadd.f32 %v7523_v58, %v7062_v56 }
 0x1c3   : > { %v8103_v1 = vpop.eup %8102  ;;  %8112 = vpow2.f32 %v1643_v63 }
 0x1c4   : > { %v8105_v2 = vpop.eup %8104  ;;  %v1649_v4 = vmul.f32 1.442695, %v8103_v1 }
 0x1c5   : > { %v1651_v6 = vmul.f32 1.442695, %v8105_v2  ;;  %v2152_v2 = vpop.f32.mrf.mxu0 }
 0x1c6   : > { %8114 = vpow2.f32 %v1649_v4 }
 0x1c7   : > { %v8107_v7 = vpop.eup %8106  ;;  %8116 = vpow2.f32 %v1651_v6 }
 0x1c8   : > { %v1645_v8 = vmul.f32 1.442695, %v8107_v7 }
 0x1ca   : > { %8118 = vpow2.f32 %v1645_v8  ;;  %v2153_v8 = vadd.f32 %v7062_v56, %v2152_v2 }
 0x1cb   : > { %v8109_v9 = vpop.eup %8108 }
 0x1cc   : > { %v1653_v10 = vmul.f32 1.442695, %v8109_v9  ;;  %v1118_v9 = vld [vmem:[%s9522_s3 + $0x78] sm:$0xff] }
 0x1ce   : > { %8120 = vpow2.f32 %v1653_v10 }
 0x1cf   : > { %v8111_v11 = vpop.eup %8110 }
 0x1d0   : > { %v1682_v12 = vsel %vm1675_vm2, %v8111_v11, 0.0  ;;  %v8113_v13 = vpop.eup %8112 }
 0x1d1   : > { %1683 = vadd.xlane.f32.xlu0 %v1682_v12  ;;  %v1676_v16 = vsel %vm1675_vm2, %v8113_v13, 0.0 }
 0x1d3   : > { %v8115_v14 = vpop.eup %8114 }
 0x1d4   : > { %v1685_v15 = vsel %vm1675_vm2, %v8115_v14, 0.0  ;;  %v8767_v17 = vpop.eup %8116 }
 0x1d5   : > { %1686 = vadd.xlane.f32.xlu1 %v1685_v15  ;;  %1677 = vadd.xlane.f32.xlu0 %v1676_v16  ;;  %v1688_v19 = vsel %vm1675_vm2, %v8767_v17, 0.0 }
 0x1d7   : > { %v8769_v18 = vpop.eup %8118 }
 0x1d8   : > { %v1679_v20 = vsel %vm1675_vm2, %v8769_v18, 0.0 }
 0x1d9   : > { %1689 = vadd.xlane.f32.xlu1 %v1688_v19  ;;  %1680 = vadd.xlane.f32.xlu0 %v1679_v20 }
 0x1db   : > { %v8775_v22 = vpop.eup %8120 }
 0x1dc   : > { %v1691_v25 = vsel %vm1675_vm2, %v8775_v22, 0.0 }
 0x1dd   : > { %1692 = vadd.xlane.f32.xlu0 %v1691_v25  ;;  %v8810_v25 = vsub.s32 4, %v8730_v21 }
 0x1df   : > { %v1480_v28 = vrot.slane %v8738_v27, %v8810_v25 }
 0x1ea   : > { %1471 = vbcast.lane.b32.xlu1 %v1469_v34, 256 }
 0x1f3   : > { %1475 = vbcast.lane.b32.xlu0 %v1469_v34, 264  ;;  %v1590_v34 = vrot.slane %v8821_v31, %v8733_v23 }
 0x25a   : > { %v1684_v40 = vpop.xlane.xlu0 %1683 }
 0x25b   : > { %8122 = vrcp.f32 %v1684_v40 }
 0x25e   : > { %v1687_v41 = vpop.xlane.xlu1 %1686  ;;  %v1678_v43 = vpop.xlane.xlu0 %1677 }
 0x25f   : > { %8124 = vrcp.f32 %v1687_v41 }
 0x260   : > { %8126 = vrcp.f32 %v1678_v43 }
 0x262   : > { %v1690_v45 = vpop.xlane.xlu1 %1689  ;;  %v1681_v46 = vpop.xlane.xlu0 %1680 }
 0x263   : > { %8128 = vrcp.f32 %v1690_v45 }
 0x264   : > { %8130 = vrcp.f32 %v1681_v46 }
 0x266   : > { %v1472_v48 = vpop.permute.xlu1 %1471  ;;  %v1693_v49 = vpop.xlane.xlu0 %1692 }
 0x267   : > { %v1617_v50 = vadd.f32 %v1586_v47, %v1472_v48  ;;  %8132 = vrcp.f32 %v1693_v49 }
 0x268   : > { %v8123_v51 = vpop.eup %8122 }
 0x269   : > { %8134 = vtanh.f32 %v1617_v50  ;;  %v1742_v52 = vmul.f32 %v8123_v51, %v8111_v11 }
 0x26a   : > { %v1476_v53 = vpop.permute.xlu0 %1475 }
 0x26b   : > { %v1618_v55 = vadd.f32 %v1586_v47, %v1476_v53  ;;  %7503 = vmatprep.mubr.msk.f32.mxu1 %vm1675_vm2, %v1742_v52 }
 0x26c   : > { %v8125_v42 = vpop.eup %8124 }
 0x26d   : > { %v8127_v57 = vpop.eup %8126  ;;  %8136 = vtanh.f32 %v1618_v55  ;;  %v1743_v59 = vmul.f32 %v8125_v42, %v8115_v14  ;;  %v1116_v14 = vld [vmem:[%s9522_s3 + $0x68] sm:$0xff] }
 0x26e   : > { %v1740_v60 = vmul.f32 %v8127_v57, %v8113_v13  ;;  %v1117_v13 = vld [vmem:[%s9522_s3 + $0x70] sm:$0xff] }
 0x26f   : > { %7504 = vmatmul.mubr.msk.f32.vlgmr.msra.gmra.mxu1 %vm1675_vm2, %v1743_v59 }
 0x270   : > { %v8129_v63 = vpop.eup %8128  ;;  %7507 = vmatpush3.msra.mxu1 %v1834_v37  ;;  %7510 = vmatprep.mubr.msk.f32.mxu1 %vm1675_vm2, %v1740_v60 }
 0x271   : > { %v8131_v1 = vpop.eup %8130  ;;  %7508 = vmatprep.subr.mxu1 %v1829_v61  ;;  %v1744_v4 = vmul.f32 %v8129_v63, %v8767_v17  ;;  %v1115_v17 = vld [vmem:[%s9522_s3 + $0x60] sm:$0xff] }
 0x272   : > { %7509 = vmatpush3.msra.mxu1 %v1829_v61  ;;  %v1741_v6 = vmul.f32 %v8131_v1, %v8769_v18  ;;  %v7067_v61 = vld [vmem:[%s9521_s8 + $0x3] ss:$0 sm:$0xff] }
 0x273   : > { %7524 = vmatprep.subr.mxu1 %v2158_v62 }
 0x274   : > { %v8133_v7 = vpop.eup %8132  ;;  %7511 = vmatmul.mubr.msk.f32.vlgmr.msra.gmra.mxu1 %vm1675_vm2, %v1741_v6 }
 0x275   : > { %7525 = vmatpush3.msra.mxu1 %v2158_v62  ;;  %7528 = vmatprep.mubr.msk.f32.mxu1 %vm1675_vm2, %v1744_v4  ;;  %v1745_v10 = vmul.f32 %v8133_v7, %v8775_v22  ;;  %v8837_v4 = vsub.s32 5, %v8730_v21  ;;  %v1122_v7 = vld [vmem:[%s9522_s3 + $0x98] sm:$0xff] }
 0x276   : > { %v8135_v11 = vpop.eup %8134  ;;  %7526 = vmatprep.subr.mxu1 %v2153_v8 }
 0x277   : > { %v1655_v12 = vmul.f32 1.442695, %v8135_v11  ;;  %7527 = vmatpush3.msra.mxu1 %v2153_v8  ;;  %v1120_v11 = vld [vmem:[%s9522_s3 + $0x88] sm:$0xff] }
 0x278   : > { %7531 = vmatprep.subr.mxu1 %v1118_v9  ;;  %7529 = vmatmul.mubr.msk.f32.vlgmr.msra.gmra.mxu1 %vm1675_vm2, %v1745_v10  ;;  %v1491_v10 = vrot.slane %v8738_v27, %v8837_v4 }
 0x279   : > { %8138 = vpow2.f32 %v1655_v12  ;;  %7532 = vmatpush3.msra.mxu1 %v1118_v9  ;;  %7539 = vmatprep.mubr.msk.f32.mxu1 %vm1275_vm1, %v8696_v5  ;;  %v1121_v9 = vld [vmem:[%s9522_s3 + $0x90] sm:$0xff]  ;;  %v1119_v12 = vld [vmem:[%s9522_s3 + $0x80] sm:$0xff] }
 0x27a   : > { %v8137_v15 = vpop.eup %8136  ;;  %7533 = vmatprep.subr.mxu1 %v1117_v13 }
 0x27b   : > { %v1657_v16 = vmul.f32 1.442695, %v8137_v15  ;;  %7534 = vmatpush3.msra.mxu1 %v1117_v13  ;;  %v1538_v13 = vcombine.high %v8817_v30, %v8817_v30 }
 0x27c   : > { %7535 = vmatprep.subr.mxu1 %v1116_v14 }
 0x27d   : > { %8140 = vpow2.f32 %v1657_v16  ;;  %7536 = vmatpush3.msra.mxu1 %v1116_v14  ;;  %v8853_v14 = vrot.slane %v1538_v13, %v8752_v39 }
 0x27e   : > { %7537 = vmatprep.subr.mxu1 %v1115_v17 }
 0x27f   : > { %7538 = vmatpush3.msra.mxu1 %v1115_v17  ;;  %v1594_v16 = vrot.slane %v8853_v14, %v8733_v23 }
 0x280   : > { %7540 = vmatmul.mubr.msk.f32.vlgmr.msra.gmra.mxu1 %vm1275_vm1, %v8686_v3 }
 0x286   : > { %v8139_v18 = vpop.eup %8138 }
 0x287   : > { %v1694_v19 = vsel %vm1675_vm2, %v8139_v18, 0.0 }
 0x288   : > { %1695 = vadd.xlane.f32.xlu1 %v1694_v19 }
 0x28a   : > { %v8141_v20 = vpop.eup %8140 }
 0x28b   : > { %v1697_v22 = vsel %vm1675_vm2, %v8141_v20, 0.0 }
 0x28c   : > { %1698 = vadd.xlane.f32.xlu0 %v1697_v22 }
 0x299   : > { %1482 = vbcast.lane.b32.xlu1 %v1480_v28, 256 }
 0x2a2   : > { %1486 = vbcast.lane.b32.xlu0 %v1480_v28, 264 }
 0x311   : > { %v1696_v33 = vpop.xlane.xlu1 %1695 }
 0x312   : > { %8142 = vrcp.f32 %v1696_v33 }
 0x315   : > { %v1699_v35 = vpop.xlane.xlu0 %1698  ;;  %v1483_v36 = vpop.permute.xlu1 %1482 }
 0x316   : > { %v1619_v37 = vadd.f32 %v1590_v34, %v1483_v36 }
 0x318   : > { %8144 = vtanh.f32 %v1619_v37 }
 0x319   : > { %v1487_v40 = vpop.permute.xlu0 %1486 }
 0x31a   : > { %v1620_v41 = vadd.f32 %v1590_v34, %v1487_v40 }
 0x31c   : > { %8146 = vtanh.f32 %v1620_v41 }
 0x31f   : > { %v8143_v38 = vpop.eup %8142 }
 0x320   : > { %v1746_v43 = vmul.f32 %v8143_v38, %v8139_v18  ;;  %v8864_v38 = vsub.s32 6, %v8730_v21 }
 0x322   : > { %7546 = vmatprep.mubr.msk.f32.mxu0 %vm1675_vm2, %v1746_v43  ;;  %v1502_v43 = vrot.slane %v8738_v27, %v8864_v38 }
 0x325   : > { %v8145_v44 = vpop.eup %8144 }
 0x326   : > { %v1659_v45 = vmul.f32 1.442695, %v8145_v44 }
 0x328   : > { %8148 = vpow2.f32 %v1659_v45 }
 0x329   : > { %v8147_v46 = vpop.eup %8146 }
 0x32a   : > { %v1661_v47 = vmul.f32 1.442695, %v8147_v46 }
 0x32c   : > { %8150 = vpow2.f32 %v1661_v47 }
 0x32d   : > { %8152 = vrcp.f32 %v1699_v35 }
 0x32f   : > { %v7505_v48 = vpop.f32.mrf.mxu1 }
 0x331   : > { %v1990_v49 = vpop.f32.mrf.mxu1 }
 0x334   : > { %v7512_v50 = vpop.f32.mrf.mxu1 }
 0x335   : > { %v8149_v51 = vpop.eup %8148  ;;  %v2077_v52 = vadd.f32 %v7512_v50, %v7505_v48  ;;  %v7072_v48 = vld [vmem:[%s9521_s8 + $0x4] ss:$0 sm:$0xff] }
 0x336   : > { %v2071_v53 = vpop.f32.mrf.mxu1  ;;  %v1700_v54 = vsel %vm1675_vm2, %v8149_v51, 0.0 }
 0x337   : > { %v2072_v55 = vadd.f32 %v2071_v53, %v1990_v49  ;;  %1701 = vadd.xlane.f32.xlu1 %v1700_v54  ;;  %v1126_v54 = vld [vmem:[%s9522_s3 + $0xb8] sm:$0xff] }
 0x338   : > { %v7530_v42 = vpop.f32.mrf.mxu1 }
 0x339   : > { %v8827_v56 = vpop.eup %8150  ;;  %v8829_v57 = vadd.f32 %v7530_v42, %v2077_v52  ;;  %v1125_v42 = vld [vmem:[%s9522_s3 + $0xb0] sm:$0xff] }
 0x33a   : > { %v2233_v58 = vpop.f32.mrf.mxu1  ;;  %v1703_v59 = vsel %vm1675_vm2, %v8827_v56, 0.0  ;;  %v8153_v1 = vpop.eup %8152 }
 0x33b   : > { %v8833_v60 = vadd.f32 %v2233_v58, %v2072_v55  ;;  %1704 = vadd.xlane.f32.xlu0 %v1703_v59  ;;  %v1747_v8 = vmul.f32 %v8153_v1, %v8141_v20  ;;  %v1123_v58 = vld [vmem:[%s9522_s3 + $0xa0] sm:$0xff] }
 0x340   : > { %v7541_v62 = vpop.f32.mrf.mxu1 }
 0x341   : > { %v2322_v63 = vadd.f32 %v7541_v62, %v7067_v61 }
 0x342   : > { %v2316_v2 = vpop.f32.mrf.mxu1 }
 0x343   : > { %v2317_v6 = vadd.f32 %v7067_v61, %v2316_v2  ;;  %7542 = vmatprep.subr.mxu0 %v2322_v63 }
 0x344   : > { %7543 = vmatpush3.msra.mxu0 %v2322_v63 }
 0x345   : > { %7544 = vmatprep.subr.mxu0 %v2317_v6 }
 0x346   : > { %7545 = vmatpush3.msra.mxu0 %v2317_v6 }
 0x347   : > { %7547 = vmatmul.mubr.msk.f32.vlgmr.msra.gmra.mxu0 %vm1675_vm2, %v1747_v8  ;;  %7549 = vmatprep.subr.mxu0 %v1122_v7 }
 0x348   : > { %7550 = vmatpush3.msra.mxu0 %v1122_v7  ;;  %1493 = vbcast.lane.b32.xlu1 %v1491_v10, 256 }
 0x349   : > { %7551 = vmatprep.subr.mxu0 %v1121_v9  ;;  %7557 = vmatprep.mubr.msk.f32.mxu0 %vm1275_vm1, %v8696_v5 }
 0x34a   : > { %7552 = vmatpush3.msra.mxu0 %v1121_v9 }
 0x34b   : > { %7553 = vmatprep.subr.mxu0 %v1120_v11 }
 0x34c   : > { %7554 = vmatpush3.msra.mxu0 %v1120_v11 }
 0x34d   : > { %7555 = vmatprep.subr.mxu0 %v1119_v12 }
 0x34e   : > { %7556 = vmatpush3.msra.mxu0 %v1119_v12 }
 0x34f   : > { %7558 = vmatmul.mubr.msk.f32.vlgmr.msra.gmra.mxu0 %vm1275_vm1, %v8686_v3 }
 0x351   : > { %1497 = vbcast.lane.b32.xlu0 %v1491_v10, 264 }
 0x3c0   : > { %v1702_v15 = vpop.xlane.xlu1 %1701 }
 0x3c1   : > { %8154 = vrcp.f32 %v1702_v15 }
 0x3c4   : > { %v1705_v17 = vpop.xlane.xlu0 %1704  ;;  %v1494_v18 = vpop.permute.xlu1 %1493 }
 0x3c5   : > { %v1621_v19 = vadd.f32 %v1594_v16, %v1494_v18 }
 0x3c7   : > { %8156 = vtanh.f32 %v1621_v19 }
 0x3c8   : > { %v1498_v20 = vpop.permute.xlu0 %1497 }
 0x3c9   : > { %v1622_v22 = vadd.f32 %v1594_v16, %v1498_v20  ;;  %v8891_v16 = vsub.s32 7, %v8730_v21 }
 0x3cb   : > { %8158 = vtanh.f32 %v1622_v22 }
 0x3ce   : > { %v8155_v28 = vpop.eup %8154 }
 0x3cf   : > { %v1748_v29 = vmul.f32 %v8155_v28, %v8149_v51  ;;  %v7077_v28 = vld [vmem:[%s9521_s8 + $0x5] ss:$0 sm:$0xff] }
 0x3d1   : > { %7564 = vmatprep.mubr.msk.f32.mxu1 %vm1675_vm2, %v1748_v29 }
 0x3d4   : > { %v8157_v30 = vpop.eup %8156 }
 0x3d5   : > { %v1663_v33 = vmul.f32 1.442695, %v8157_v30 }
 0x3d7   : > { %8160 = vpow2.f32 %v1663_v33 }
 0x3d8   : > { %v8159_v34 = vpop.eup %8158 }
 0x3d9   : > { %v1665_v35 = vmul.f32 1.442695, %v8159_v34 }
 0x3db   : > { %8162 = vpow2.f32 %v1665_v35 }
 0x3dc   : > { %8164 = vrcp.f32 %v1705_v17  ;;  %v1513_v17 = vrot.slane %v8738_v27, %v8891_v16  ;;  %v1130_v27 = vld [vmem:[%s9522_s3 + $0xd8] sm:$0xff] }
 0x3e4   : > { %v8161_v36 = vpop.eup %8160 }
 0x3e5   : > { %v1706_v37 = vsel %vm1675_vm2, %v8161_v36, 0.0 }
 0x3e6   : > { %1707 = vadd.xlane.f32.xlu1 %v1706_v37  ;;  %v1128_v37 = vld [vmem:[%s9522_s3 + $0xc8] sm:$0xff] }
 0x3e8   : > { %v8859_v40 = vpop.eup %8162 }
 0x3e9   : > { %v1709_v41 = vsel %vm1675_vm2, %v8859_v40, 0.0  ;;  %v8165_v51 = vpop.eup %8164 }
 0x3ea   : > { %1710 = vadd.xlane.f32.xlu0 %v1709_v41  ;;  %v1749_v55 = vmul.f32 %v8165_v51, %v8827_v56  ;;  %v1568_v56 = vcombine.high %v8821_v31, %v8821_v31  ;;  %v1127_v41 = vld [vmem:[%s9522_s3 + $0xc0] sm:$0xff] }
 0x3f7   : > { %1504 = vbcast.lane.b32.xlu1 %v1502_v43, 256 }
 0x400   : > { %1508 = vbcast.lane.b32.xlu0 %v1502_v43, 264 }
 0x407   : > { %v7548_v44 = vpop.f32.mrf.mxu0 }
 0x408   : > { %v2407_v45 = vadd.f32 %v7548_v44, %v8829_v57  ;;  %v1124_v57 = vld [vmem:[%s9522_s3 + $0xa8] sm:$0xff] }
 0x409   : > { %v2397_v46 = vpop.f32.mrf.mxu0 }
 0x40a   : > { %v2406_v47 = vadd.f32 %v2397_v46, %v8833_v60  ;;  %v1598_v60 = vrot.slane %v1568_v56, %v8733_v23  ;;  %v1155_v56 = vld [vmem:[%s8511_s20] sm:$0xff] }
 0x40f   : > { %v7559_v49 = vpop.f32.mrf.mxu0 }
 0x410   : > { %v2486_v50 = vadd.f32 %v7559_v49, %v7072_v48 }
 0x411   : > { %v2480_v52 = vpop.f32.mrf.mxu0 }
 0x412   : > { %v2481_v53 = vadd.f32 %v7072_v48, %v2480_v52  ;;  %7560 = vmatprep.subr.mxu1 %v2486_v50 }
 0x413   : > { %7561 = vmatpush3.msra.mxu1 %v2486_v50 }
 0x414   : > { %7562 = vmatprep.subr.mxu1 %v2481_v53 }
 0x415   : > { %7563 = vmatpush3.msra.mxu1 %v2481_v53 }
 0x416   : > { %7565 = vmatmul.mubr.msk.f32.vlgmr.msra.gmra.mxu1 %vm1675_vm2, %v1749_v55  ;;  %7567 = vmatprep.subr.mxu1 %v1126_v54 }
 0x417   : > { %7568 = vmatpush3.msra.mxu1 %v1126_v54  ;;  %7575 = vmatprep.mubr.msk.f32.mxu1 %vm1275_vm1, %v8696_v5 }
 0x418   : > { %7569 = vmatprep.subr.mxu1 %v1125_v42 }
 0x419   : > { %7570 = vmatpush3.msra.mxu1 %v1125_v42 }
 0x41a   : > { %7571 = vmatprep.subr.mxu1 %v1124_v57 }
 0x41b   : > { %7572 = vmatpush3.msra.mxu1 %v1124_v57 }
 0x41c   : > { %7573 = vmatprep.subr.mxu1 %v1123_v58 }
 0x41d   : > { %7574 = vmatpush3.msra.mxu1 %v1123_v58 }
 0x41e   : > { %7576 = vmatmul.mubr.msk.f32.vlgmr.msra.gmra.mxu1 %vm1275_vm1, %v8686_v3 }
 0x46f   : > { %v1708_v59 = vpop.xlane.xlu1 %1707 }
 0x470   : > { %8166 = vrcp.f32 %v1708_v59 }
 0x473   : > { %v1711_v61 = vpop.xlane.xlu0 %1710  ;;  %v1505_v62 = vpop.permute.xlu1 %1504 }
 0x474   : > { %v1623_v63 = vadd.f32 %v1598_v60, %v1505_v62 }
 0x476   : > { %8168 = vtanh.f32 %v1623_v63  ;;  %v7082_v63 = vld [vmem:[%s9521_s8 + $0x6] ss:$0 sm:$0xff] }
 0x477   : > { %v1509_v1 = vpop.permute.xlu0 %1508 }
 0x478   : > { %v1624_v2 = vadd.f32 %v1598_v60, %v1509_v1 }
 0x47a   : > { %8170 = vtanh.f32 %v1624_v2 }
 0x47d   : > { %v8167_v6 = vpop.eup %8166 }
 0x47e   : > { %v1750_v7 = vmul.f32 %v8167_v6, %v8161_v36  ;;  %v1129_v36 = vld [vmem:[%s9522_s3 + $0xd0] sm:$0xff] }
 0x480   : > { %7582 = vmatprep.mubr.msk.f32.mxu0 %vm1675_vm2, %v1750_v7 }
 0x483   : > { %v8169_v8 = vpop.eup %8168 }
 0x484   : > { %v1667_v9 = vmul.f32 1.442695, %v8169_v8 }
 0x486   : > { %8172 = vpow2.f32 %v1667_v9  ;;  %v1134_v9 = vld [vmem:[%s9522_s3 + $0xf8] sm:$0xff] }
 0x487   : > { %v8171_v10 = vpop.eup %8170 }
 0x488   : > { %v1669_v31 = vmul.f32 1.442695, %v8171_v10 }
 0x48a   : > { %8174 = vpow2.f32 %v1669_v31  ;;  %v1133_v31 = vld [vmem:[%s9522_s3 + $0xf0] sm:$0xff] }
 0x48b   : > { %8176 = vrcp.f32 %v1711_v61 }
 0x493   : > { %v8173_v11 = vpop.eup %8172 }
 0x494   : > { %v1712_v12 = vsel %vm1675_vm2, %v8173_v11, 0.0 }
 0x495   : > { %1713 = vadd.xlane.f32.xlu1 %v1712_v12  ;;  %v1131_v12 = vld [vmem:[%s9522_s3 + $0xe0] sm:$0xff] }
 0x497   : > { %v8886_v13 = vpop.eup %8174 }
 0x498   : > { %v1715_v15 = vsel %vm1675_vm2, %v8886_v13, 0.0  ;;  %v8177_v33 = vpop.eup %8176 }
 0x499   : > { %1716 = vadd.xlane.f32.xlu0 %v1715_v15  ;;  %v1751_v35 = vmul.f32 %v8177_v33, %v8859_v40  ;;  %v1570_v40 = vcombine.high %v8853_v14, %v8853_v14 }
 0x49b   : > { %v1602_v44 = vrot.slane %v1570_v40, %v8733_v23 }
 0x4a6   : > { %1515 = vbcast.lane.b32.xlu1 %v1513_v17, 256 }
 0x4af   : > { %1519 = vbcast.lane.b32.xlu0 %v1513_v17, 264 }
 0x4d6   : > { %v7566_v18 = vpop.f32.mrf.mxu1 }
 0x4d7   : > { %v2571_v19 = vadd.f32 %v7566_v18, %v2407_v45 }
 0x4d8   : > { %v2561_v20 = vpop.f32.mrf.mxu1 }
 0x4d9   : > { %v2570_v22 = vadd.f32 %v2561_v20, %v2406_v47 }
 0x4de   : > { %v7577_v29 = vpop.f32.mrf.mxu1 }
 0x4df   : > { %v2650_v30 = vadd.f32 %v7577_v29, %v7077_v28 }
 0x4e0   : > { %v2644_v34 = vpop.f32.mrf.mxu1 }
 0x4e1   : > { %v2645_v21 = vadd.f32 %v7077_v28, %v2644_v34  ;;  %7578 = vmatprep.subr.mxu0 %v2650_v30  ;;  %v7087_v28 = vld [vmem:[%s9521_s8 + $0x7] ss:$0 sm:$0xff]  ;;  %s7045_s8 = sshll.u32 %s8675_s15, 3  ;;  %s9536_s15 = sld [smem:[#allocation22_spill]] }
 0x4e2   : > { %7579 = vmatpush3.msra.mxu0 %v2650_v30 }
 0x4e3   : > { %7580 = vmatprep.subr.mxu0 %v2645_v21 }
 0x4e4   : > { %7581 = vmatpush3.msra.mxu0 %v2645_v21  ;;  %v1147_v21 = vld [vmem:[%s8486_s19 + $0x18] sm:$0xff] }
 0x4e5   : > { %7583 = vmatmul.mubr.msk.f32.vlgmr.msra.gmra.mxu0 %vm1675_vm2, %v1751_v35  ;;  %7585 = vmatprep.subr.mxu0 %v1130_v27  ;;  %v1146_v35 = vld [vmem:[%s8486_s19 + $0x10] sm:$0xff] }
 0x4e6   : > { %7586 = vmatpush3.msra.mxu0 %v1130_v27  ;;  %7593 = vmatprep.mubr.msk.f32.mxu0 %vm1275_vm1, %v8696_v5 }
 0x4e7   : > { %7587 = vmatprep.subr.mxu0 %v1129_v36 }
 0x4e8   : > { %7588 = vmatpush3.msra.mxu0 %v1129_v36  ;;  %v1145_v36 = vld [vmem:[%s8486_s19 + $0x8] sm:$0xff] }
 0x4e9   : > { %7589 = vmatprep.subr.mxu0 %v1128_v37 }
 0x4ea   : > { %7590 = vmatpush3.msra.mxu0 %v1128_v37  ;;  %v1144_v37 = vld [vmem:[%s8486_s19] sm:$0xff] }
 0x4eb   : > { %7591 = vmatprep.subr.mxu0 %v1127_v41 }
 0x4ec   : > { %7592 = vmatpush3.msra.mxu0 %v1127_v41 }
 0x4ed   : > { %7594 = vmatmul.mubr.msk.f32.vlgmr.msra.gmra.mxu0 %vm1275_vm1, %v8686_v3 }
 0x51e   : > { %v1714_v43 = vpop.xlane.xlu1 %1713 }
 0x51f   : > { %8178 = vrcp.f32 %v1714_v43 }
 0x522   : > { %v1717_v45 = vpop.xlane.xlu0 %1716  ;;  %v1516_v46 = vpop.permute.xlu1 %1515 }
 0x523   : > { %v1625_v47 = vadd.f32 %v1602_v44, %v1516_v46 }
 0x525   : > { %8180 = vtanh.f32 %v1625_v47 }
 0x526   : > { %v1520_v48 = vpop.permute.xlu0 %1519 }
 0x527   : > { %v1626_v49 = vadd.f32 %v1602_v44, %v1520_v48  ;;  %v7092_v44 = vld [vmem:[%s9526_s14] ss:$0 sm:$0xff]  ;;  %v8936_v48 = vld [vmem:[%s8683_s28 + $0x8] sm:$0xff] }
 0x529   : > { %8182 = vtanh.f32 %v1626_v49  ;;  %v8944_v49 = vld [vmem:[%s8683_s28] sm:$0xff]  ;;  %s6660_s28 = scvt.s32.f32 %s9553_s1  ;;  %s9539_s1 = sld [smem:[#allocation15_spill]] }
 0x52c   : > { %v8179_v50 = vpop.eup %8178 }
 0x52d   : > { %v1752_v51 = vmul.f32 %v8179_v50, %v8173_v11  ;;  %v1132_v11 = vld [vmem:[%s9522_s3 + $0xe8] sm:$0xff]  ;;  %v1154_v50 = vld [vmem:[%s9527_s12] sm:$0xff]  ;;  %s9531_s3 = sld [smem:[#allocation17_spill]] }
 0x52f   : > { %7600 = vmatprep.mubr.msk.f32.mxu1 %vm1675_vm2, %v1752_v51  ;;  %v1152_v51 = vld [vmem:[%s8496_s30 + $0x18] sm:$0xff] }
 0x532   : > { %v8181_v52 = vpop.eup %8180 }
 0x533   : > { %v1671_v53 = vmul.f32 1.442695, %v8181_v52  ;;  %v1151_v52 = vld [vmem:[%s8496_s30 + $0x10] sm:$0xff] }
 0x535   : > { %8184 = vpow2.f32 %v1671_v53  ;;  %v1150_v53 = vld [vmem:[%s8496_s30 + $0x8] sm:$0xff] }
 0x536   : > { %v8183_v14 = vpop.eup %8182 }
 0x537   : > { %v1673_v54 = vmul.f32 1.442695, %v8183_v14  ;;  %v1149_v14 = vld [vmem:[%s8496_s30] sm:$0xff] }
 0x539   : > { %8186 = vpow2.f32 %v1673_v54  ;;  %v1157_v54 = vld [vmem:[%s9528_s4] sm:$0xff]  ;;  %s1098_s4 = scalar_lea.vmem %s9530_s6, %s7045_s8  ;;  %s9534_s8 = sld [smem:[#allocation29_spill]] }
 0x53a   : > { %8188 = vrcp.f32 %v1717_v45  ;;  %s9538_s6 = sld [smem:[#allocation21_spill]] }
 0x542   : > { %v8185_v55 = vpop.eup %8184 }
 0x543   : > { %v1718_v42 = vsel %vm1675_vm2, %v8185_v55, 0.0 }
 0x544   : > { %1719 = vadd.xlane.f32.xlu1 %v1718_v42 }
 0x546   : > { %v8187_v57 = vpop.eup %8186 }
 0x547   : > { %v1721_v58 = vsel %vm1675_vm2, %v8187_v57, 0.0  ;;  %v8189_v6 = vpop.eup %8188 }
 0x548   : > { %1722 = vadd.xlane.f32.xlu0 %v1721_v58  ;;  %v1753_v10 = vmul.f32 %v8189_v6, %v8886_v13 }
 0x555   : > { %3328 = vperm.xlu1 %8097, %v1157_v54  }
 0x55e   : > { %3250 = vperm.xlu0 %8096, %v1155_v56  }
 0x5a5   : > { %v7584_v59 = vpop.f32.mrf.mxu0 }
 0x5a6   : > { %v2735_v60 = vadd.f32 %v7584_v59, %v2571_v19 }
 0x5a7   : > { %v2725_v61 = vpop.f32.mrf.mxu0 }
 0x5a8   : > { %v2734_v62 = vadd.f32 %v2725_v61, %v2570_v22 }
 0x5ad   : > { %v7595_v1 = vpop.f32.mrf.mxu0 }
 0x5ae   : > { %v2814_v2 = vadd.f32 %v7595_v1, %v7082_v63 }
 0x5af   : > { %v2808_v7 = vpop.f32.mrf.mxu0 }
 0x5b0   : > { %v2809_v8 = vadd.f32 %v7082_v63, %v2808_v7  ;;  %7596 = vmatprep.subr.mxu1 %v2814_v2  ;;  %v1269_v63 = vld [vmem:[%s1098_s4] sm:$0xff]  ;;  %v1165_v7 = vld [vmem:[%s9532_s9 + $0x38] sm:$0xff]  ;;  %s9535_s4 = sld [smem:[#allocation27_spill]] }
 0x5b1   : > { %7597 = vmatpush3.msra.mxu1 %v2814_v2  ;;  %v1156_v2 = vld [vmem:[%s9531_s3] sm:$0xff]  ;;  %s9533_s3 = sld [smem:[#allocation20_spill]] }
 0x5b2   : > { %7598 = vmatprep.subr.mxu1 %v2809_v8 }
 0x5b3   : > { %7599 = vmatpush3.msra.mxu1 %v2809_v8  ;;  %v1164_v8 = vld [vmem:[%s9532_s9 + $0x30] sm:$0xff] }
 0x5b4   : > { %7601 = vmatmul.mubr.msk.f32.vlgmr.msra.gmra.mxu1 %vm1675_vm2, %v1753_v10  ;;  %7603 = vmatprep.subr.mxu1 %v1134_v9  ;;  %v1160_v10 = vld [vmem:[%s9532_s9 + $0x10] sm:$0xff] }
 0x5b5   : > { %7604 = vmatpush3.msra.mxu1 %v1134_v9  ;;  %7611 = vmatprep.mubr.msk.f32.mxu1 %vm1275_vm1, %v8696_v5  ;;  %v1161_v9 = vld [vmem:[%s9532_s9 + $0x18] sm:$0xff] }
 0x5b6   : > { %7605 = vmatprep.subr.mxu1 %v1133_v31 }
 0x5b7   : > { %7606 = vmatpush3.msra.mxu1 %v1133_v31  ;;  %v1163_v31 = vld [vmem:[%s9532_s9 + $0x28] sm:$0xff] }
 0x5b8   : > { %7607 = vmatprep.subr.mxu1 %v1132_v11 }
 0x5b9   : > { %7608 = vmatpush3.msra.mxu1 %v1132_v11  ;;  %v1159_v11 = vld [vmem:[%s9532_s9 + $0x8] sm:$0xff] }
 0x5ba   : > { %7609 = vmatprep.subr.mxu1 %v1131_v12 }
 0x5bb   : > { %7610 = vmatpush3.msra.mxu1 %v1131_v12  ;;  %v1162_v12 = vld [vmem:[%s9532_s9 + $0x20] sm:$0xff] }
 0x5bc   : > { %7612 = vmatmul.mubr.msk.f32.vlgmr.msra.gmra.mxu1 %vm1275_vm1, %v8686_v3  ;;  %7632 = vmatprep.subr.mxu1 %v1152_v51 }
 0x5bd   : > { %7633 = vmatpush3.msra.mxu1 %v1152_v51 }
 0x5be   : > { %7634 = vmatprep.subr.mxu1 %v1151_v52 }
 0x5bf   : > { %7635 = vmatpush3.msra.mxu1 %v1151_v52 }
 0x5c0   : > { %7636 = vmatprep.subr.mxu1 %v1150_v53 }
 0x5c1   : > { %7637 = vmatpush3.msra.mxu1 %v1150_v53 }
 0x5c2   : > { %7638 = vmatprep.subr.mxu1 %v1149_v14 }
 0x5c3   : > { %7639 = vmatpush3.msra.mxu1 %v1149_v14 }
 0x5c4   : > { %7650 = vmatprep.subr.mxu1 %v8423_v0 }
 0x5cd   : > { %v1720_v13 = vpop.xlane.xlu1 %1719 }
 0x5ce   : > { %8190 = vrcp.f32 %v1720_v13  ;;  %v1158_v13 = vld [vmem:[%s9532_s9] sm:$0xff] }
 0x5d1   : > { %v1723_v18 = vpop.xlane.xlu0 %1722 }
 0x5d2   : > { %8192 = vrcp.f32 %v1723_v18  ;;  %v3329_v18 = vpop.permute.xlu1 %3328 }
 0x5db   : > { %v8191_v15 = vpop.eup %8190 }
 0x5dc   : > { %v1754_v17 = vmul.f32 %v8191_v15, %v8185_v55  ;;  %v6661_v55 = vstv %s6660_s28  ;;  %s9540_s28 = sld [smem:[#allocation30_spill]] }
 0x5dd   : > { %8194 = vrcp.f32 %v6661_v55 }
 0x5de   : > { %7618 = vmatprep.mubr.msk.f32.mxu0 %vm1675_vm2, %v1754_v17 }
 0x5df   : > { %v8193_v33 = vpop.eup %8192 }
 0x5e0   : > { %v1755_v27 = vmul.f32 %v8193_v33, %v8187_v57  ;;  %v7093_v57 = vld [vmem:[%s9529_s2] ss:$0 sm:$0xff]  ;;  %s9537_s2 = sld [smem:[#allocation24_spill]] }
 0x5ea   : > { %v8195_v42 = vpop.eup %8194 }
 0x5eb   : > { %8010 = vpush %v8195_v42 }
 0x674   : > { %v7602_v5 = vpop.f32.mrf.mxu1 }
 0x675   : > { %v2899_v19 = vadd.f32 %v7602_v5, %v2735_v60 }
 0x676   : > { %v2889_v20 = vpop.f32.mrf.mxu1 }
 0x677   : > { %v2898_v22 = vadd.f32 %v2889_v20, %v2734_v62 }
 0x67c   : > { %v7613_v29 = vpop.f32.mrf.mxu1 }
 0x67d   : > { %v2978_v30 = vadd.f32 %v7613_v29, %v7087_v28 }
 0x67e   : > { %v2972_v3 = vpop.f32.mrf.mxu1 }
 0x67f   : > { %v2973_v34 = vadd.f32 %v7087_v28, %v2972_v3  ;;  %7614 = vmatprep.subr.mxu0 %v2978_v30 }
 0x680   : > { %7615 = vmatpush3.msra.mxu0 %v2978_v30  ;;  %v3251_v30 = vpop.permute.xlu0 %3250 }
 0x681   : > { %7616 = vmatprep.subr.mxu0 %v2973_v34 }
 0x682   : > { %7617 = vmatpush3.msra.mxu0 %v2973_v34 }
 0x683   : > { %7619 = vmatmul.mubr.msk.f32.vlgmr.msra.gmra.mxu0 %vm1675_vm2, %v1755_v27  ;;  %7621 = vmatprep.subr.mxu0 %v1147_v21 }
 0x684   : > { %7622 = vmatpush3.msra.mxu0 %v1147_v21 }
 0x685   : > { %7623 = vmatprep.subr.mxu0 %v1146_v35 }
 0x686   : > { %7624 = vmatpush3.msra.mxu0 %v1146_v35 }
 0x687   : > { %7625 = vmatprep.subr.mxu0 %v1145_v36 }
 0x688   : > { %7626 = vmatpush3.msra.mxu0 %v1145_v36 }
 0x689   : > { %7627 = vmatprep.subr.mxu0 %v1144_v37 }
 0x68a   : > { %7628 = vmatpush3.msra.mxu0 %v1144_v37 }
 0x68b   : > { %7643 = vmatprep.subr.mxu0 %v8423_v0 }
 0x743   : > { %v7620_v41 = vpop.f32.mrf.mxu0 }
 0x744   : > { %v3063_v40 = vadd.f32 %v7620_v41, %v2899_v19 }
 0x745   : > { %v3053_v43 = vpop.f32.mrf.mxu0 }
 0x746   : > { %v3062_v45 = vadd.f32 %v3053_v43, %v2898_v22  ;;  %v3071_v47 = vadd.f32 %v7092_v44, %v3063_v40 }
 0x748   : > { %v3070_v46 = vadd.f32 %v7092_v44, %v3062_v45 }
 0x74a   : > { %7629 = vmatprep.mubr.msk.f32.mxu0 %vm1275_vm1, %v3070_v46 }
 0x74b   : > { %7630 = vmatmul.mubr.msk.f32.vlgmr.msra.gmra.mxu0 %vm1275_vm1, %v3071_v47 }
 0x74c   : > { %7644 = vmatpush3.xpose.msk.msra.mxu0 %vm1275_vm1, %v8936_v48  ;;  %7647 = vmatprep.mubr.msk.f32.mxu0 %vm8424_vm0, %v8423_v0 }
 0x74d   : > { %7645 = vmatprep.subr.mxu0 %v8423_v0 }
 0x750   : > { %7646 = vmatpush3.xpose.msk.msra.mxu0 %vm1275_vm1, %v8944_v49 }
 0x751   : > { %7666 = vmatprep.subr.mxu0 %v1165_v7 }
 0x753   : > { %7648 = vmatmul.mubr.msk.f32.vlgmr.msra.gmra.mxu0 %vm1275_vm1, %v1154_v50 }
 0x754   : > { %7674 = vmatprep.mubr.msk.f32.mxu0 %vm1275_vm1, %v8944_v49  ;;  %7667 = vmatpush3.msra.mxu0 %v1165_v7  ;;  %v7104_v7 = vld [vmem:[%s9533_s3] ss:$0 sm:$0xff] }
 0x755   : > { %7668 = vmatprep.subr.mxu0 %v1164_v8 }
 0x756   : > { %7669 = vmatpush3.msra.mxu0 %v1164_v8 }
 0x757   : > { %7670 = vmatprep.subr.mxu0 %v1163_v31 }
 0x758   : > { %7671 = vmatpush3.msra.mxu0 %v1163_v31  ;;  %v1169_v31 = vld [vmem:[%s9532_s9 + $0x58] sm:$0xff] }
 0x759   : > { %7672 = vmatprep.subr.mxu0 %v1162_v12 }
 0x75a   : > { %7673 = vmatpush3.msra.mxu0 %v1162_v12 }
 0x75b   : > { %7675 = vmatmul.mubr.msk.f32.vlgmr.msra.gmra.mxu0 %vm1275_vm1, %v8936_v48  ;;  %7684 = vmatprep.subr.mxu0 %v8423_v0 }
 0x75c   : > { %7688 = vmatprep.mubr.msk.f32.mxu0 %vm8424_vm0, %v8423_v0 }
 0x80b   : > { %v7631_v58 = vpop.f32.mrf.mxu0 }
 0x80c   : > { %v3156_v56 = vadd.f32 %v7631_v58, %v7093_v57 }
 0x80d   : > { %v3150_v59 = vpop.f32.mrf.mxu0 }
 0x80e   : > { %v3151_v60 = vadd.f32 %v7093_v57, %v3150_v59  ;;  %v3160_v62 = vmax.f32 %v3156_v56, 0.0 }
 0x810   : > { %v3159_v61 = vmax.f32 %v3151_v60, 0.0 }
 0x812   : > { %7640 = vmatprep.mubr.msk.f32.mxu1 %vm1275_vm1, %v3159_v61  ;;  %v7107_v61 = vld [vmem:[%s9533_s3 + $0x1] ss:$0 sm:$0xff] }
 0x813   : > { %v3322_v1 = vpop.f32.mrf.mxu0  ;;  %7641 = vmatmul.mubr.msk.f32.vlgmr.msra.gmra.mxu1 %vm1275_vm1, %v3160_v62 }
 0x814   : > { %7651 = vmatpush3.xpose.msk.msra.mxu1 %vm1275_vm1, %v1269_v63  ;;  %7652 = vmatprep.mubr.msk.f32.mxu1 %vm8424_vm0, %v8423_v0  ;;  %v9001_v33 = vadd.f32 %v3322_v1, %v3251_v30 }
 0x815   : > { %v7649_v6 = vpop.f32.mrf.mxu0  ;;  %7655 = vmatprep.subr.mxu1 %v1161_v9 }
 0x816   : > { %v3471_v3 = vrot.slane %v9001_v33, %v8752_v39 }
 0x817   : > { %7653 = vmatmul.mubr.msk.f32.vlgmr.msra.gmra.mxu1 %vm1275_vm1, %v1156_v2 }
 0x818   : > { %7663 = vmatprep.mubr.msk.f32.mxu1 %vm1275_vm1, %v8944_v49  ;;  %7656 = vmatpush3.msra.mxu1 %v1161_v9  ;;  %v3479_v34 = vcombine.high %v3471_v3, %v3471_v3  ;;  %v3487_v27 = vrot.slane %v3471_v3, %v8752_v39 }
 0x819   : > { %7657 = vmatprep.subr.mxu1 %v1160_v10 }
 0x81a   : > { %7658 = vmatpush3.msra.mxu1 %v1160_v10  ;;  %v3501_v21 = vrot.slane %v3479_v34, %v8752_v39  ;;  %v3516_v36 = vrot.slane %v3487_v27, %v8733_v23  ;;  %v3509_v37 = vcombine.high %v3487_v27, %v3487_v27  ;;  %v1168_v34 = vld [vmem:[%s9532_s9 + $0x50] sm:$0xff]  ;;  %v1167_v27 = vld [vmem:[%s9532_s9 + $0x48] sm:$0xff] }
 0x81b   : > { %7659 = vmatprep.subr.mxu1 %v1159_v11  ;;  %v7676_v60 = vpop.f32.mrf.mxu0 }
 0x81c   : > { %7660 = vmatpush3.msra.mxu1 %v1159_v11  ;;  %v3520_v35 = vrot.slane %v3501_v21, %v8733_v23  ;;  %v3524_v45 = vrot.slane %v3509_v37, %v8733_v23  ;;  %v3784_v62 = vadd.f32 %v7676_v60, %v7107_v61 }
 0x81d   : > { %7661 = vmatprep.subr.mxu1 %v1158_v13  ;;  %v3778_v1 = vpop.f32.mrf.mxu0 }
 0x81e   : > { %7662 = vmatpush3.msra.mxu1 %v1158_v13  ;;  %v3779_v2 = vadd.f32 %v7107_v61, %v3778_v1  ;;  %v3511_v13 = vcombine.high %v3501_v21, %v3501_v21  ;;  %v1166_v21 = vld [vmem:[%s9532_s9 + $0x40] sm:$0xff] }
 0x81f   : > { %7664 = vmatmul.mubr.msk.f32.vlgmr.msra.gmra.mxu1 %vm1275_vm1, %v8936_v48  ;;  %7677 = vmatprep.subr.mxu1 %v8423_v0 }
 0x820   : > { %7681 = vmatprep.mubr.msk.f32.mxu1 %vm8424_vm0, %v8423_v0  ;;  %7678 = vmatpush3.msra.mxu1 %v3784_v62 }
 0x821   : > { %7679 = vmatprep.subr.mxu1 %v8423_v0 }
 0x822   : > { %7680 = vmatpush3.msra.mxu1 %v3779_v2 }
 0x823   : > { %7691 = vmatprep.subr.mxu1 %v1169_v31 }
 0x8d3   : > { %v8989_v15 = vpop.f32.mrf.mxu1 }
 0x8d5   : > { %v8991_v17 = vpop.f32.mrf.mxu1 }
 0x8d7   : > { %v3403_v5 = vpop.f32.mrf.mxu1 }
 0x8d8   : > { %v8993_v19 = vadd.f32 %v3403_v5, %v3329_v18  ;;  %v3528_v5 = vrot.slane %v3511_v13, %v8733_v23 }
 0x8d9   : > { %v7654_v20 = vpop.f32.mrf.mxu1 }
 0x8da   : > { %v3417_v22 = vrot.slane %v8993_v19, %v8736_v24  ;;  %v3410_v28 = vrot.slane %v8993_v19, %v8733_v23  ;;  %v3424_v29 = vrot.slane %v8993_v19, %v8745_v32  ;;  %v3431_v63 = vrot.slane %v8993_v19, %v8780_v26 }
 0x8dc   : > { %3419 = vbcast.lane.b32.xlu1 %v3417_v22, 256  ;;  %3412 = vbcast.lane.b32.xlu0 %v3410_v28, 256 }
 0x8df   : > { %v7665_v6 = vpop.f32.mrf.mxu1 }
 0x8e0   : > { %3426 = vbcast.lane.b32.xlu0 %v3424_v29, 256  ;;  %v3703_v8 = vadd.f32 %v7665_v6, %v7104_v7  ;;  %v7112_v6 = vld [vmem:[%s9533_s3 + $0x2] ss:$0 sm:$0xff] }
 0x8e1   : > { %v3697_v9 = vpop.f32.mrf.mxu1 }
 0x8e2   : > { %v3698_v10 = vadd.f32 %v7104_v7, %v3697_v9  ;;  %7685 = vmatpush3.msra.mxu0 %v3703_v8 }
 0x8e3   : > { %7686 = vmatprep.subr.mxu0 %v8423_v0 }
 0x8e4   : > { %7687 = vmatpush3.msra.mxu0 %v3698_v10 }
 0x8e5   : > { %7702 = vmatprep.subr.mxu0 %v8423_v0 }
 0x94e   : > { %v3420_v41 = vpop.permute.xlu1 %3419  ;;  %v3413_v40 = vpop.permute.xlu0 %3412 }
 0x94f   : > { %v3554_v43 = vadd.f32 %v3520_v35, %v3420_v41  ;;  %v3553_v44 = vadd.f32 %v3516_v36, %v3413_v40  ;;  %v3438_v40 = vrot.slane %v8993_v19, %v8810_v25 }
 0x951   : > { %8196 = vtanh.f32 %v3554_v43  ;;  %v3445_v43 = vrot.slane %v8993_v19, %v8837_v4 }
 0x952   : > { %8198 = vtanh.f32 %v3553_v44  ;;  %v3427_v46 = vpop.permute.xlu0 %3426  ;;  %v3464_v44 = vcombine.high %v9001_v33, %v9001_v33 }
 0x953   : > { %v3555_v47 = vadd.f32 %v3524_v45, %v3427_v46 }
 0x954   : > { %v3478_v45 = vrot.slane %v3464_v44, %v8752_v39  ;;  %v1212_v44 = vld [vmem:[%s9534_s8] sm:$0xff]  ;;  %s9541_s8 = sld [smem:[#allocation26_spill]] }
 0x955   : > { %8200 = vtanh.f32 %v3555_v47 }
 0x956   : > { %v3494_v46 = vrot.slane %v3478_v45, %v8752_v39  ;;  %v3480_v47 = vcombine.high %v3478_v45, %v3478_v45 }
 0x95e   : > { %v8197_v50 = vpop.eup %8196 }
 0x95f   : > { %v8199_v51 = vpop.eup %8198  ;;  %v3571_v52 = vmul.f32 1.442695, %v8197_v50 }
 0x960   : > { %v3569_v53 = vmul.f32 1.442695, %v8199_v51  ;;  %v3532_v51 = vrot.slane %v3494_v46, %v8733_v23 }
 0x961   : > { %8202 = vpow2.f32 %v3571_v52  ;;  %v9055_v52 = vrot.slane %v3480_v47, %v8752_v39  ;;  %v1210_v47 = vld [vmem:[%s9535_s4] sm:$0xff]  ;;  %s9542_s4 = sld [smem:[#allocation23_spill]] }
 0x962   : > { %v8201_v14 = vpop.eup %8200  ;;  %8204 = vpow2.f32 %v3569_v53 }
 0x963   : > { %v3573_v54 = vmul.f32 1.442695, %v8201_v14 }
 0x965   : > { %8206 = vpow2.f32 %v3573_v54  ;;  %v3536_v54 = vrot.slane %v9055_v52, %v8733_v23 }
 0x96e   : > { %v8203_v55 = vpop.eup %8202 }
 0x96f   : > { %v8205_v42 = vpop.eup %8204  ;;  %v3588_v57 = vsel %vm1675_vm2, %v8203_v55, 0.0 }
 0x970   : > { %3589 = vadd.xlane.f32.xlu1 %v3588_v57  ;;  %v3585_v58 = vsel %vm1675_vm2, %v8205_v42, 0.0 }
 0x971   : > { %3586 = vadd.xlane.f32.xlu0 %v3585_v58 }
 0x972   : > { %v9012_v56 = vpop.eup %8206 }
 0x973   : > { %v3591_v59 = vsel %vm1675_vm2, %v9012_v56, 0.0 }
 0x974   : > { %3592 = vadd.xlane.f32.xlu1 %v3591_v59 }
 0x985   : > { %3433 = vbcast.lane.b32.xlu1 %v3431_v63, 256 }
 0x9f9   : > { %v3590_v11 = vpop.xlane.xlu1 %3589 }
 0x9fa   : > { %8208 = vrcp.f32 %v3590_v11  ;;  %v3587_v12 = vpop.xlane.xlu0 %3586 }
 0x9fb   : > { %8210 = vrcp.f32 %v3587_v12 }
 0x9fd   : > { %v3593_v18 = vpop.xlane.xlu1 %3592 }
 0xa01   : > { %v3434_v20 = vpop.permute.xlu1 %3433 }
 0xa02   : > { %v3556_v22 = vadd.f32 %v3528_v5, %v3434_v20  ;;  %v1172_v20 = vld [vmem:[%s9532_s9 + $0x70] sm:$0xff] }
 0xa04   : > { %8212 = vtanh.f32 %v3556_v22  ;;  %v1171_v22 = vld [vmem:[%s9532_s9 + $0x68] sm:$0xff] }
 0xa07   : > { %v8209_v28 = vpop.eup %8208 }
 0xa08   : > { %v8211_v29 = vpop.eup %8210  ;;  %v3618_v30 = vmul.f32 %v8209_v28, %v8203_v55  ;;  %v1170_v28 = vld [vmem:[%s9532_s9 + $0x60] sm:$0xff] }
 0xa09   : > { %v3617_v3 = vmul.f32 %v8211_v29, %v8205_v42  ;;  %v3510_v29 = vcombine.high %v3494_v46, %v3494_v46 }
 0xa0a   : > { %7682 = vmatmul.mubr.msk.f32.vlgmr.msra.gmra.mxu1 %vm1675_vm2, %v3618_v30 }
 0xa0b   : > { %7689 = vmatmul.mubr.msk.f32.vlgmr.msra.gmra.mxu0 %vm1675_vm2, %v3617_v3  ;;  %7692 = vmatpush3.msra.mxu1 %v1169_v31  ;;  %v3540_v3 = vrot.slane %v3510_v29, %v8733_v23  ;;  %v1179_v29 = vld [vmem:[%s9532_s9 + $0xa8] sm:$0xff] }
 0xa0c   : > { %7693 = vmatprep.subr.mxu1 %v1168_v34  ;;  %7699 = vmatprep.mubr.msk.f32.mxu1 %vm1275_vm1, %v8944_v49 }
 0xa0d   : > { %7694 = vmatpush3.msra.mxu1 %v1168_v34  ;;  %7706 = vmatprep.mubr.msk.f32.mxu0 %vm8424_vm0, %v8423_v0 }
 0xa0e   : > { %7695 = vmatprep.subr.mxu1 %v1167_v27 }
 0xa0f   : > { %7696 = vmatpush3.msra.mxu1 %v1167_v27 }
 0xa10   : > { %7697 = vmatprep.subr.mxu1 %v1166_v21 }
 0xa11   : > { %v8213_v35 = vpop.eup %8212  ;;  %7698 = vmatpush3.msra.mxu1 %v1166_v21 }
 0xa12   : > { %v3575_v36 = vmul.f32 1.442695, %v8213_v35  ;;  %7700 = vmatmul.mubr.msk.f32.vlgmr.msra.gmra.mxu1 %vm1275_vm1, %v8936_v48  ;;  %7720 = vmatprep.subr.mxu1 %v8423_v0 }
 0xa13   : > { %7724 = vmatprep.mubr.msk.f32.mxu1 %vm8424_vm0, %v8423_v0 }
 0xa14   : > { %8214 = vpow2.f32 %v3575_v36 }
 0xa21   : > { %v9039_v37 = vpop.eup %8214 }
 0xa22   : > { %v3594_v41 = vsel %vm1675_vm2, %v9039_v37, 0.0 }
 0xa23   : > { %3595 = vadd.xlane.f32.xlu0 %v3594_v41 }
 0xa39   : > { %3440 = vbcast.lane.b32.xlu0 %v3438_v40, 256  ;;  %v3459_v40 = vrot.slane %v8993_v19, %v8891_v16 }
 0xa3d   : > { %3447 = vbcast.lane.b32.xlu0 %v3445_v43, 256 }
 0xaac   : > { %v9051_v50 = vpop.xlane.xlu0 %3595 }
 0xab0   : > { %v3441_v53 = vpop.permute.xlu0 %3440 }
 0xab1   : > { %v3557_v14 = vadd.f32 %v3532_v51, %v3441_v53  ;;  %v7116_v51 = vld [vmem:[%s9533_s3 + $0x3] ss:$0 sm:$0xff] }
 0xab3   : > { %8216 = vtanh.f32 %v3557_v14 }
 0xab4   : > { %v3448_v55 = vpop.permute.xlu0 %3447 }
 0xab5   : > { %v3558_v33 = vadd.f32 %v3536_v54, %v3448_v55 }
 0xab7   : > { %8218 = vtanh.f32 %v3558_v33 }
 0xac0   : > { %v8217_v42 = vpop.eup %8216 }
 0xac1   : > { %v3577_v57 = vmul.f32 1.442695, %v8217_v42  ;;  %v1176_v42 = vld [vmem:[%s9532_s9 + $0x90] sm:$0xff] }
 0xac3   : > { %8220 = vpow2.f32 %v3577_v57  ;;  %v1175_v57 = vld [vmem:[%s9532_s9 + $0x88] sm:$0xff] }
 0xac4   : > { %v8219_v58 = vpop.eup %8218  ;;  %8222 = vrcp.f32 %v3593_v18  ;;  %v1173_v18 = vld [vmem:[%s9532_s9 + $0x78] sm:$0xff] }
 0xac5   : > { %v3579_v59 = vmul.f32 1.442695, %v8219_v58  ;;  %v1174_v58 = vld [vmem:[%s9532_s9 + $0x80] sm:$0xff] }
 0xac7   : > { %8224 = vpow2.f32 %v3579_v59  ;;  %v3512_v59 = vcombine.high %v9055_v52, %v9055_v52 }
 0xaca   : > { %v3856_v60 = vpop.f32.mrf.mxu1 }
 0xacb   : > { %v3929_v61 = vpop.f32.mrf.mxu0 }
 0xacc   : > { %v3930_v62 = vadd.f32 %v3929_v61, %v3856_v60  ;;  %v7683_v63 = vpop.f32.mrf.mxu1  ;;  %v3544_v61 = vrot.slane %v3512_v59, %v8733_v23  ;;  %v1187_v59 = vld [vmem:[%s9532_s9 + $0xe8] sm:$0xff] }
 0xacd   : > { %v7690_v1 = vpop.f32.mrf.mxu0 }
 0xad0   : > { %v9059_v2 = vpop.eup %8220 }
 0xad1   : > { %v3597_v7 = vsel %vm1675_vm2, %v9059_v2, 0.0  ;;  %v8223_v9 = vpop.eup %8222 }
 0xad2   : > { %v7701_v8 = vpop.f32.mrf.mxu1  ;;  %3598 = vadd.xlane.f32.xlu1 %v3597_v7  ;;  %v3619_v5 = vmul.f32 %v8223_v9, %v9012_v56  ;;  %v3452_v56 = vrot.slane %v8993_v19, %v8864_v38  ;;  %v1177_v19 = vld [vmem:[%s9532_s9 + $0x98] sm:$0xff] }
 0xad3   : > { %v4011_v10 = vadd.f32 %v7701_v8, %v7112_v6 }
 0xad4   : > { %v9064_v31 = vpop.eup %8224  ;;  %v4005_v11 = vpop.f32.mrf.mxu1 }
 0xad5   : > { %v4006_v12 = vadd.f32 %v7112_v6, %v4005_v11  ;;  %7703 = vmatpush3.msra.mxu0 %v4011_v10  ;;  %v3600_v13 = vsel %vm1675_vm2, %v9064_v31, 0.0  ;;  %v7120_v11 = vld [vmem:[%s9533_s3 + $0x4] ss:$0 sm:$0xff] }
 0xad6   : > { %7704 = vmatprep.subr.mxu0 %v8423_v0  ;;  %3601 = vadd.xlane.f32.xlu0 %v3600_v13 }
 0xad7   : > { %7705 = vmatpush3.msra.mxu0 %v4006_v12 }
 0xad8   : > { %7707 = vmatmul.mubr.msk.f32.vlgmr.msra.gmra.mxu0 %vm1675_vm2, %v3619_v5  ;;  %7709 = vmatprep.subr.mxu0 %v1173_v18 }
 0xad9   : > { %7710 = vmatpush3.msra.mxu0 %v1173_v18  ;;  %7717 = vmatprep.mubr.msk.f32.mxu0 %vm1275_vm1, %v8944_v49 }
 0xada   : > { %7711 = vmatprep.subr.mxu0 %v1172_v20 }
 0xadb   : > { %7712 = vmatpush3.msra.mxu0 %v1172_v20 }
 0xadc   : > { %7713 = vmatprep.subr.mxu0 %v1171_v22 }
 0xadd   : > { %7714 = vmatpush3.msra.mxu0 %v1171_v22  ;;  %v1181_v22 = vld [vmem:[%s9532_s9 + $0xb8] sm:$0xff] }
 0xade   : > { %7715 = vmatprep.subr.mxu0 %v1170_v28 }
 0xadf   : > { %7716 = vmatpush3.msra.mxu0 %v1170_v28 }
 0xae0   : > { %7718 = vmatmul.mubr.msk.f32.vlgmr.msra.gmra.mxu0 %vm1275_vm1, %v8936_v48  ;;  %7738 = vmatprep.subr.mxu0 %v8423_v0 }
 0xae1   : > { %7742 = vmatprep.mubr.msk.f32.mxu0 %vm8424_vm0, %v8423_v0 }
 0xae3   : > { %3454 = vbcast.lane.b32.xlu1 %v3452_v56, 256  ;;  %v1180_v56 = vld [vmem:[%s9532_s9 + $0xb0] sm:$0xff] }
 0xb5b   : > { %v3599_v30 = vpop.xlane.xlu1 %3598 }
 0xb5f   : > { %v3455_v34 = vpop.permute.xlu1 %3454 }
 0xb60   : > { %v3559_v27 = vadd.f32 %v3540_v3, %v3455_v34 }
 0xb62   : > { %8226 = vtanh.f32 %v3559_v27  ;;  %v7124_v27 = vld [vmem:[%s9533_s3 + $0x5] ss:$0 sm:$0xff] }
 0xb6f   : > { %v8227_v21 = vpop.eup %8226 }
 0xb70   : > { %v3581_v35 = vmul.f32 1.442695, %v8227_v21 }
 0xb72   : > { %8228 = vpow2.f32 %v3581_v35 }
 0xb73   : > { %8230 = vrcp.f32 %v9051_v50 }
 0xb7f   : > { %v9085_v36 = vpop.eup %8228 }
 0xb80   : > { %v3603_v41 = vsel %vm1675_vm2, %v9085_v36, 0.0  ;;  %v8231_v14 = vpop.eup %8230 }
 0xb81   : > { %3604 = vadd.xlane.f32.xlu0 %v3603_v41  ;;  %v3620_v33 = vmul.f32 %v8231_v14, %v9039_v37  ;;  %v3602_v37 = vpop.xlane.xlu0 %3601 }
 0xb97   : > { %3461 = vbcast.lane.b32.xlu0 %v3459_v40, 256 }
 0xb98   : > { %v4083_v43 = vpop.f32.mrf.mxu0 }
 0xb99   : > { %v4087_v45 = vadd.f32 %v4083_v43, %v3930_v62 }
 0xb9a   : > { %v7708_v46 = vpop.f32.mrf.mxu0 }
 0xb9b   : > { %5115 = vperm.xlu0 %8096, %v1212_v44   ;;  %v1185_v44 = vld [vmem:[%s9532_s9 + $0xd8] sm:$0xff]  ;;  %v1184_v46 = vld [vmem:[%s9532_s9 + $0xd0] sm:$0xff] }
 0xb9f   : > { %5031 = vperm.xlu0 %8096, %v1210_v47   ;;  %v1183_v47 = vld [vmem:[%s9532_s9 + $0xc8] sm:$0xff] }
 0xba0   : > { %v7719_v53 = vpop.f32.mrf.mxu0 }
 0xba1   : > { %v4166_v54 = vadd.f32 %v7719_v53, %v7116_v51 }
 0xba2   : > { %v4160_v50 = vpop.f32.mrf.mxu0 }
 0xba3   : > { %v4161_v55 = vadd.f32 %v7116_v51, %v4160_v50  ;;  %7721 = vmatpush3.msra.mxu1 %v4166_v54  ;;  %v1182_v51 = vld [vmem:[%s9532_s9 + $0xc0] sm:$0xff] }
 0xba4   : > { %7722 = vmatprep.subr.mxu1 %v8423_v0  ;;  %v7128_v54 = vld [vmem:[%s9533_s3 + $0x6] ss:$0 sm:$0xff] }
 0xba5   : > { %7723 = vmatpush3.msra.mxu1 %v4161_v55 }
 0xba6   : > { %7725 = vmatmul.mubr.msk.f32.vlgmr.msra.gmra.mxu1 %vm1675_vm2, %v3620_v33  ;;  %7727 = vmatprep.subr.mxu1 %v1177_v19 }
 0xba7   : > { %7728 = vmatpush3.msra.mxu1 %v1177_v19  ;;  %7735 = vmatprep.mubr.msk.f32.mxu1 %vm1275_vm1, %v8944_v49 }
 0xba8   : > { %7729 = vmatprep.subr.mxu1 %v1176_v42 }
 0xba9   : > { %7730 = vmatpush3.msra.mxu1 %v1176_v42 }
 0xbaa   : > { %7731 = vmatprep.subr.mxu1 %v1175_v57 }
 0xbab   : > { %7732 = vmatpush3.msra.mxu1 %v1175_v57  ;;  %v1189_v57 = vld [vmem:[%s9532_s9 + $0xf8] sm:$0xff] }
 0xbac   : > { %7733 = vmatprep.subr.mxu1 %v1174_v58 }
 0xbad   : > { %7734 = vmatpush3.msra.mxu1 %v1174_v58 }
 0xbae   : > { %7736 = vmatmul.mubr.msk.f32.vlgmr.msra.gmra.mxu1 %vm1275_vm1, %v8936_v48  ;;  %7756 = vmatprep.subr.mxu1 %v8423_v0 }
 0xbaf   : > { %7760 = vmatprep.mubr.msk.f32.mxu1 %vm8424_vm0, %v8423_v0 }
 0xc0a   : > { %v9111_v60 = vpop.xlane.xlu0 %3604 }
 0xc0e   : > { %v3462_v62 = vpop.permute.xlu0 %3461 }
 0xc0f   : > { %v3560_v63 = vadd.f32 %v3544_v61, %v3462_v62 }
 0xc11   : > { %8232 = vtanh.f32 %v3560_v63  ;;  %v7132_v63 = vld [vmem:[%s9533_s3 + $0x7] ss:$0 sm:$0xff]  ;;  %s9544_s3 = sld [smem:[#allocation28_spill]] }
 0xc1e   : > { %v8233_v1 = vpop.eup %8232 }
 0xc1f   : > { %v3583_v6 = vmul.f32 1.442695, %v8233_v1 }
 0xc21   : > { %8234 = vpow2.f32 %v3583_v6 }
 0xc22   : > { %8236 = vrcp.f32 %v3599_v30  ;;  %v1178_v30 = vld [vmem:[%s9532_s9 + $0xa0] sm:$0xff] }
 0xc23   : > { %8238 = vrcp.f32 %v3602_v37  ;;  %v1188_v37 = vld [vmem:[%s9532_s9 + $0xf0] sm:$0xff] }
 0xc24   : > { %8240 = vrcp.f32 %v9111_v60  ;;  %v1186_v60 = vld [vmem:[%s9532_s9 + $0xe0] sm:$0xff] }
 0xc2e   : > { %v9114_v7 = vpop.eup %8234 }
 0xc2f   : > { %v3606_v8 = vsel %vm1675_vm2, %v9114_v7, 0.0  ;;  %v8237_v13 = vpop.eup %8236 }
 0xc30   : > { %3607 = vadd.xlane.f32.xlu1 %v3606_v8  ;;  %v3621_v28 = vmul.f32 %v8237_v13, %v9059_v2  ;;  %v8239_v35 = vpop.eup %8238  ;;  %v1207_v13 = vld [vmem:[%s9537_s2 + $0x18] sm:$0xff] }
 0xc31   : > { %v8241_v55 = vpop.eup %8240 }
 0xc32   : > { %v3623_v58 = vmul.f32 %v8241_v55, %v9085_v36 }
 0xc66   : > { %v4238_v52 = vpop.f32.mrf.mxu1 }
 0xc67   : > { %v4242_v9 = vadd.f32 %v4238_v52, %v4087_v45  ;;  %v3622_v45 = vmul.f32 %v8239_v35, %v9064_v31  ;;  %v1204_v35 = vld [vmem:[%s9537_s2] sm:$0xff] }
 0xc68   : > { %v7726_v10 = vpop.f32.mrf.mxu1 }
 0xc69   : > { %v1202_v10 = vld [vmem:[%s9536_s15 + $0x18] sm:$0xff] }
 0xc6e   : > { %v7737_v12 = vpop.f32.mrf.mxu1 }
 0xc6f   : > { %v4321_v18 = vadd.f32 %v7737_v12, %v7120_v11  ;;  %v1199_v12 = vld [vmem:[%s9536_s15] sm:$0xff] }
 0xc70   : > { %v4315_v5 = vpop.f32.mrf.mxu1 }
 0xc71   : > { %v4316_v20 = vadd.f32 %v7120_v11, %v4315_v5  ;;  %7739 = vmatpush3.msra.mxu0 %v4321_v18  ;;  %v1201_v11 = vld [vmem:[%s9536_s15 + $0x10] sm:$0xff]  ;;  %v7136_v18 = vld [vmem:[%s9538_s6] ss:$0 sm:$0xff]  ;;  %s6664_s6 = sld [smem:[#allocation4 + %s8643_s26]] }
 0xc72   : > { %7740 = vmatprep.subr.mxu0 %v8423_v0 }
 0xc73   : > { %7741 = vmatpush3.msra.mxu0 %v4316_v20  ;;  %v7096_v20 = vld [vmem:[%s9539_s1] ss:$0 sm:$0xff]  ;;  %s9543_s1 = sld [smem:[#allocation25_spill]] }
 0xc74   : > { %7743 = vmatmul.mubr.msk.f32.vlgmr.msra.gmra.mxu0 %vm1675_vm2, %v3621_v28  ;;  %7745 = vmatprep.subr.mxu0 %v1181_v22 }
 0xc75   : > { %7746 = vmatpush3.msra.mxu0 %v1181_v22  ;;  %7753 = vmatprep.mubr.msk.f32.mxu0 %vm1275_vm1, %v8944_v49 }
 0xc76   : > { %7747 = vmatprep.subr.mxu0 %v1180_v56 }
 0xc77   : > { %7748 = vmatpush3.msra.mxu0 %v1180_v56  ;;  %p6665_p8 = scmp.gt.s32.totalorder %s6664_s6, 1 }
 0xc78   : > { %7749 = vmatprep.subr.mxu0 %v1179_v29 }
 0xc79   : > { %7750 = vmatpush3.msra.mxu0 %v1179_v29  ;;  %v9184_v29 = vadd.f32 %v8989_v15, %v7096_v20  ;;  %v1209_v15 = vld [vmem:[%s9541_s8] sm:$0xff]  ;;  %s9555_s6 = smov (!%p6665_p8, %s6664_s6), 1 }
 0xc7a   : > { %7751 = vmatprep.subr.mxu0 %v1178_v30  ;;  %s6667_s8 = scvt.s32.f32 %s9555_s6  ;;  %s9545_s6 = sld [smem:[#allocation31_spill]] }
 0xc7b   : > { %7752 = vmatpush3.msra.mxu0 %v1178_v30  ;;  %v9193_v30 = vadd.f32 %v7096_v20, %v8991_v17  ;;  %v1217_v17 = vld [vmem:[%s9540_s28 + $0x20] sm:$0xff] }
 0xc7c   : > { %7754 = vmatmul.mubr.msk.f32.vlgmr.msra.gmra.mxu0 %vm1275_vm1, %v8936_v48  ;;  %7774 = vmatprep.subr.mxu0 %v8423_v0 }
 0xc7d   : > { %7778 = vmatprep.mubr.msk.f32.mxu0 %vm8424_vm0, %v8423_v0 }
 0xcb9   : > { %v3608_v36 = vpop.xlane.xlu1 %3607 }
 0xcba   : > { %8242 = vrcp.f32 %v3608_v36 }
 0xcc7   : > { %v8243_v6 = vpop.eup %8242 }
 0xd34   : > { %v4393_v2 = vpop.f32.mrf.mxu0 }
 0xd35   : > { %v4397_v3 = vadd.f32 %v4393_v2, %v4242_v9  ;;  %v1220_v2 = vld [vmem:[%s9540_s28 + $0x38] sm:$0xff] }
 0xd36   : > { %v7744_v34 = vpop.f32.mrf.mxu0 }
 0xd37   : > { %v1218_v34 = vld [vmem:[%s9540_s28 + $0x28] sm:$0xff] }
 0xd3c   : > { %v7755_v21 = vpop.f32.mrf.mxu0 }
 0xd3d   : > { %v4476_v41 = vadd.f32 %v7755_v21, %v7124_v27  ;;  %v1205_v21 = vld [vmem:[%s9537_s2 + $0x8] sm:$0xff] }
 0xd3e   : > { %v4470_v40 = vpop.f32.mrf.mxu0 }
 0xd3f   : > { %v4471_v43 = vadd.f32 %v7124_v27, %v4470_v40  ;;  %7757 = vmatpush3.msra.mxu1 %v4476_v41  ;;  %v1206_v27 = vld [vmem:[%s9537_s2 + $0x10] sm:$0xff]  ;;  %v6668_v41 = vstv %s6667_s8 }
 0xd40   : > { %7758 = vmatprep.subr.mxu1 %v8423_v0  ;;  %8244 = vrcp.f32 %v6668_v41 }
 0xd41   : > { %7759 = vmatpush3.msra.mxu1 %v4471_v43  ;;  %v7137_v43 = vld [vmem:[%s9542_s4] ss:$0 sm:$0xff]  ;;  %s9404_s4 = spop %8010 }
 0xd42   : > { %7761 = vmatmul.mubr.msk.f32.vlgmr.msra.gmra.mxu1 %vm1675_vm2, %v3622_v45  ;;  %7763 = vmatprep.subr.mxu1 %v1185_v44 }
 0xd43   : > { %7764 = vmatpush3.msra.mxu1 %v1185_v44  ;;  %7771 = vmatprep.mubr.msk.f32.mxu1 %vm1275_vm1, %v8944_v49 }
 0xd44   : > { %7765 = vmatprep.subr.mxu1 %v1184_v46 }
 0xd45   : > { %7766 = vmatpush3.msra.mxu1 %v1184_v46 }
 0xd46   : > { %7767 = vmatprep.subr.mxu1 %v1183_v47 }
 0xd47   : > { %7768 = vmatpush3.msra.mxu1 %v1183_v47 }
 0xd48   : > { %7769 = vmatprep.subr.mxu1 %v1182_v51 }
 0xd49   : > { %7770 = vmatpush3.msra.mxu1 %v1182_v51 }
 0xd4a   : > { %7772 = vmatmul.mubr.msk.f32.vlgmr.msra.gmra.mxu1 %vm1275_vm1, %v8936_v48  ;;  %7792 = vmatprep.subr.mxu1 %v8423_v0 }
 0xd4b   : > { %7796 = vmatprep.mubr.msk.f32.mxu1 %vm8424_vm0, %v8423_v0 }
 0xd4d   : > { %v8245_v40 = vpop.eup %8244 }
 0xd4e   : > { %8012 = vpush %v8245_v40 }
 0xd7f   : > { %s8013_s8 = spop %8012 }
 0xe02   : > { %v4548_v31 = vpop.f32.mrf.mxu1 }
 0xe03   : > { %v4552_v53 = vadd.f32 %v4548_v31, %v4397_v3  ;;  %v1219_v3 = vld [vmem:[%s9540_s28 + $0x30] sm:$0xff] }
 0xe04   : > { %v7762_v14 = vpop.f32.mrf.mxu1 }
 0xe0a   : > { %v7773_v50 = vpop.f32.mrf.mxu1 }
 0xe0b   : > { %v4631_v19 = vadd.f32 %v7773_v50, %v7128_v54  ;;  %v1216_v50 = vld [vmem:[%s9540_s28 + $0x18] sm:$0xff] }
 0xe0c   : > { %v4625_v33 = vpop.f32.mrf.mxu1 }
 0xe0d   : > { %v4626_v42 = vadd.f32 %v7128_v54, %v4625_v33  ;;  %7775 = vmatpush3.msra.mxu0 %v4631_v19  ;;  %v1211_v19 = vld [vmem:[%s9544_s3] sm:$0xff]  ;;  %v1215_v33 = vld [vmem:[%s9540_s28 + $0x10] sm:$0xff]  ;;  %s9546_s3 = sld [smem:[#allocation33_spill]] }
 0xe0e   : > { %7776 = vmatprep.subr.mxu0 %v8423_v0 }
 0xe0f   : > { %7777 = vmatpush3.msra.mxu0 %v4626_v42  ;;  %v1214_v42 = vld [vmem:[%s9540_s28 + $0x8] sm:$0xff] }
 0xe10   : > { %7779 = vmatmul.mubr.msk.f32.vlgmr.msra.gmra.mxu0 %vm1675_vm2, %v3623_v58  ;;  %7781 = vmatprep.subr.mxu0 %v1189_v57  ;;  %v1213_v58 = vld [vmem:[%s9540_s28] sm:$0xff] }
 0xe11   : > { %7782 = vmatpush3.msra.mxu0 %v1189_v57  ;;  %7789 = vmatprep.mubr.msk.f32.mxu0 %vm1275_vm1, %v8944_v49 }
 0xe12   : > { %7783 = vmatprep.subr.mxu0 %v1188_v37 }
 0xe13   : > { %7784 = vmatpush3.msra.mxu0 %v1188_v37  ;;  %v7149_v37 = vld [vmem:[%s9545_s6 + $0x1] ss:$0 sm:$0xff] }
 0xe14   : > { %7785 = vmatprep.subr.mxu0 %v1187_v59 }
 0xe15   : > { %7786 = vmatpush3.msra.mxu0 %v1187_v59 }
 0xe16   : > { %7787 = vmatprep.subr.mxu0 %v1186_v60 }
 0xe17   : > { %7788 = vmatpush3.msra.mxu0 %v1186_v60 }
 0xe18   : > { %7790 = vmatmul.mubr.msk.f32.vlgmr.msra.gmra.mxu0 %vm1275_vm1, %v8936_v48  ;;  %7810 = vmatprep.subr.mxu0 %v8423_v0  ;;  %v3624_v48 = vmul.f32 %v8243_v6, %v9114_v7  ;;  %v1200_v7 = vld [vmem:[%s9536_s15 + $0x8] sm:$0xff] }
 0xe19   : > { %7818 = vmatprep.mubr.msk.f32.mxu0 %vm8424_vm0, %v8423_v0  ;;  %7811 = vmatpush3.msra.mxu0 %v1207_v13 }
 0xe1a   : > { %7812 = vmatprep.subr.mxu0 %v8423_v0 }
 0xe1b   : > { %7813 = vmatpush3.msra.mxu0 %v1206_v27 }
 0xe1c   : > { %7814 = vmatprep.subr.mxu0 %v8423_v0 }
 0xe1d   : > { %7815 = vmatpush3.msra.mxu0 %v1205_v21 }
 0xe1e   : > { %7816 = vmatprep.subr.mxu0 %v8423_v0 }
 0xe1f   : > { %7817 = vmatpush3.msra.mxu0 %v1204_v35 }
 0xe20   : > { %7828 = vmatprep.subr.mxu0 %v8423_v0 }
 0xed0   : > { %v4703_v49 = vpop.f32.mrf.mxu0 }
 0xed1   : > { %v4707_v61 = vadd.f32 %v4703_v49, %v4552_v53  ;;  %v7139_v53 = vld [vmem:[%s9543_s1] ss:$0 sm:$0xff]  ;;  %v5116_v49 = vpop.permute.xlu0 %5115  ;;  %s9547_s1 = sld [smem:[#allocation32_spill]] }
 0xed2   : > { %v7780_v62 = vpop.f32.mrf.mxu0 }
 0xed8   : > { %v7791_v1 = vpop.f32.mrf.mxu0 }
 0xed9   : > { %v4786_v8 = vadd.f32 %v7791_v1, %v7132_v63 }
 0xeda   : > { %v4780_v52 = vpop.f32.mrf.mxu0 }
 0xedb   : > { %v4781_v9 = vadd.f32 %v7132_v63, %v4780_v52  ;;  %7793 = vmatpush3.msra.mxu1 %v4786_v8  ;;  %v7146_v8 = vld [vmem:[%s9545_s6] ss:$0 sm:$0xff] }
 0xedc   : > { %7794 = vmatprep.subr.mxu1 %v8423_v0 }
 0xedd   : > { %7795 = vmatpush3.msra.mxu1 %v4781_v9 }
 0xede   : > { %7797 = vmatmul.mubr.msk.f32.vlgmr.msra.gmra.mxu1 %vm1675_vm2, %v3624_v48  ;;  %7799 = vmatprep.subr.mxu1 %v8423_v0 }
 0xedf   : > { %7800 = vmatpush3.msra.mxu1 %v1202_v10  ;;  %7807 = vmatprep.mubr.msk.f32.mxu1 %vm8424_vm0, %v8423_v0 }
 0xee0   : > { %7801 = vmatprep.subr.mxu1 %v8423_v0 }
 0xee1   : > { %7802 = vmatpush3.msra.mxu1 %v1201_v11 }
 0xee2   : > { %7803 = vmatprep.subr.mxu1 %v8423_v0 }
 0xee3   : > { %7804 = vmatpush3.msra.mxu1 %v1200_v7 }
 0xee4   : > { %7805 = vmatprep.subr.mxu1 %v8423_v0 }
 0xee5   : > { %7806 = vmatpush3.msra.mxu1 %v1199_v12 }
 0xee6   : > { %7821 = vmatprep.subr.mxu1 %v8423_v0 }
 0xf9e   : > { %v4858_v5 = vpop.f32.mrf.mxu1 }
 0xf9f   : > { %v4862_v22 = vadd.f32 %v4858_v5, %v4707_v61 }
 0xfa0   : > { %v7798_v28 = vpop.f32.mrf.mxu1 }
 0xfa1   : > { %v4869_v56 = vadd.f32 %v7136_v18, %v4862_v22 }
 0xfa3   : > { %7808 = vmatmul.mubr.msk.f32.vlgmr.msra.gmra.mxu1 %vm1275_vm1, %v4869_v56 }
 0xfa4   : > { %7822 = vmatpush3.xpose.msk.msra.mxu1 %vm1275_vm1, %v9184_v29  ;;  %7825 = vmatprep.mubr.msk.f32.mxu1 %vm8424_vm0, %v8423_v0 }
 0xfa5   : > { %7823 = vmatprep.subr.mxu1 %v8423_v0 }
 0xfa8   : > { %7824 = vmatpush3.xpose.msk.msra.mxu1 %vm1275_vm1, %v9193_v30 }
 0xfa9   : > { %7844 = vmatprep.subr.mxu1 %v1220_v2 }
 0xfab   : > { %7826 = vmatmul.mubr.msk.f32.vlgmr.msra.gmra.mxu1 %vm1275_vm1, %v1209_v15 }
 0xfac   : > { %7845 = vmatpush3.msra.mxu1 %v1220_v2  ;;  %7852 = vmatprep.mubr.msk.f32.mxu1 %vm1275_vm1, %v9193_v30 }
 0xfad   : > { %7846 = vmatprep.subr.mxu1 %v1219_v3 }
 0xfae   : > { %7847 = vmatpush3.msra.mxu1 %v1219_v3 }
 0xfaf   : > { %7848 = vmatprep.subr.mxu1 %v1218_v34 }
 0xfb0   : > { %7849 = vmatpush3.msra.mxu1 %v1218_v34 }
 0xfb1   : > { %7850 = vmatprep.subr.mxu1 %v1217_v17 }
 0xfb2   : > { %7851 = vmatpush3.msra.mxu1 %v1217_v17 }
 0xfb3   : > { %7853 = vmatmul.mubr.msk.f32.vlgmr.msra.gmra.mxu1 %vm1275_vm1, %v9184_v29  ;;  %7862 = vmatprep.subr.mxu1 %v8423_v0 }
 0xfb4   : > { %7866 = vmatprep.mubr.msk.f32.mxu1 %vm8424_vm0, %v8423_v0 }
0x1063   : > { %v4945_v44 = vpop.f32.mrf.mxu1 }
0x1064   : > { %v4946_v45 = vadd.f32 %v7137_v43, %v4945_v44 }
0x1065   : > { %v7809_v46 = vpop.f32.mrf.mxu1 }
0x1066   : > { %v4949_v47 = vmax.f32 %v4946_v45, 0.0 }
0x1068   : > { %7819 = vmatmul.mubr.msk.f32.vlgmr.msra.gmra.mxu0 %vm1275_vm1, %v4949_v47 }
0x1069   : > { %7830 = vmatprep.mubr.msk.f32.mxu0 %vm8424_vm0, %v8423_v0 }
0x106b   : > { %v5109_v51 = vpop.f32.mrf.mxu1 }
0x106d   : > { %v7827_v31 = vpop.f32.mrf.mxu1 }
0x1073   : > { %v7854_v57 = vpop.f32.mrf.mxu1 }
0x1074   : > { %v5571_v60 = vadd.f32 %v7854_v57, %v7149_v37 }
0x1075   : > { %v5565_v59 = vpop.f32.mrf.mxu1 }
0x1076   : > { %v5566_v36 = vadd.f32 %v7149_v37, %v5565_v59 }
0x1128   : > { %v5025_v14 = vpop.f32.mrf.mxu0 }
0x1129   : > { %v9222_v54 = vadd.f32 %v7139_v53, %v5025_v14 }
0x112a   : > { %v7820_v55 = vpop.f32.mrf.mxu0 }
0x112b   : > { %7829 = vmatpush3.xpose.msk.msra.mxu0 %vm1275_vm1, %v9222_v54 }
0x112c   : > { %7833 = vmatprep.subr.mxu0 %v1216_v50 }
0x112e   : > { %7831 = vmatmul.mubr.msk.f32.vlgmr.msra.gmra.mxu0 %vm1275_vm1, %v1211_v19 }
0x112f   : > { %7834 = vmatpush3.msra.mxu0 %v1216_v50  ;;  %7841 = vmatprep.mubr.msk.f32.mxu0 %vm1275_vm1, %v9193_v30  ;;  %v1224_v50 = vld [vmem:[%s9540_s28 + $0x58] sm:$0xff] }
0x1130   : > { %7835 = vmatprep.subr.mxu0 %v1215_v33 }
0x1131   : > { %7836 = vmatpush3.msra.mxu0 %v1215_v33 }
0x1132   : > { %7837 = vmatprep.subr.mxu0 %v1214_v42 }
0x1133   : > { %7838 = vmatpush3.msra.mxu0 %v1214_v42 }
0x1134   : > { %7839 = vmatprep.subr.mxu0 %v1213_v58 }
0x1135   : > { %7840 = vmatpush3.msra.mxu0 %v1213_v58 }
0x1136   : > { %7842 = vmatmul.mubr.msk.f32.vlgmr.msra.gmra.mxu0 %vm1275_vm1, %v9184_v29  ;;  %7855 = vmatprep.subr.mxu0 %v8423_v0 }
0x1137   : > { %7856 = vmatpush3.msra.mxu0 %v5571_v60  ;;  %7859 = vmatprep.mubr.msk.f32.mxu0 %vm8424_vm0, %v8423_v0 }
0x1138   : > { %7857 = vmatprep.subr.mxu0 %v8423_v0 }
0x1139   : > { %7858 = vmatpush3.msra.mxu0 %v5566_v36 }
0x113a   : > { %7869 = vmatprep.subr.mxu0 %v1224_v50 }
0x11ee   : > { %v5190_v61 = vpop.f32.mrf.mxu0 }
0x11ef   : > { %v9241_v62 = vadd.f32 %v5190_v61, %v5116_v49 }
0x11f0   : > { %v7832_v63 = vpop.f32.mrf.mxu0 }
0x11f1   : > { %v5204_v1 = vrot.slane %v9241_v62, %v8736_v24  ;;  %v5197_v6 = vrot.slane %v9241_v62, %v8733_v23  ;;  %v5211_v52 = vrot.slane %v9241_v62, %v8745_v32  ;;  %v5032_v24 = vpop.permute.xlu0 %5031  ;;  %v5225_v53 = vrot.slane %v9241_v62, %v8810_v25 }
0x11f2   : > { %v5110_v7 = vadd.f32 %v5109_v51, %v5032_v24  ;;  %v5218_v14 = vrot.slane %v9241_v62, %v8780_v26 }
0x11f3   : > { %5206 = vbcast.lane.b32.xlu0 %v5204_v1, 256  ;;  %5199 = vbcast.lane.b32.xlu1 %v5197_v6, 256 }
0x11f4   : > { %v5258_v12 = vrot.slane %v5110_v7, %v8752_v39  ;;  %v5251_v55 = vcombine.high %v5110_v7, %v5110_v7 }
0x11f6   : > { %v7843_v9 = vpop.f32.mrf.mxu0  ;;  %v5266_v13 = vcombine.high %v5258_v12, %v5258_v12  ;;  %v5274_v32 = vrot.slane %v5258_v12, %v8752_v39  ;;  %v5265_v19 = vrot.slane %v5251_v55, %v8752_v39 }
0x11f7   : > { %v5490_v48 = vadd.f32 %v7843_v9, %v7146_v8  ;;  %5213 = vbcast.lane.b32.xlu1 %v5211_v52, 256  ;;  %v1222_v52 = vld [vmem:[%s9540_s28 + $0x48] sm:$0xff]  ;;  %v1221_v9 = vld [vmem:[%s9540_s28 + $0x40] sm:$0xff] }
0x11f8   : > { %v5484_v10 = vpop.f32.mrf.mxu0  ;;  %v5288_v18 = vrot.slane %v5266_v13, %v8752_v39  ;;  %v5303_v20 = vrot.slane %v5274_v32, %v8733_v23  ;;  %v5296_v22 = vcombine.high %v5274_v32, %v5274_v32  ;;  %v5281_v42 = vrot.slane %v5265_v19, %v8752_v39 }
0x11f9   : > { %v5485_v11 = vadd.f32 %v7146_v8, %v5484_v10  ;;  %7863 = vmatpush3.msra.mxu1 %v5490_v48  ;;  %v1223_v8 = vld [vmem:[%s9540_s28 + $0x50] sm:$0xff]  ;;  %v5239_v32 = vrot.slane %v9241_v62, %v8864_v38 }
0x11fa   : > { %7864 = vmatprep.subr.mxu1 %v8423_v0  ;;  %v5307_v5 = vrot.slane %v5288_v18, %v8733_v23  ;;  %v5311_v3 = vrot.slane %v5296_v22, %v8733_v23  ;;  %v5298_v58 = vcombine.high %v5288_v18, %v5288_v18  ;;  %v5319_v25 = vrot.slane %v5281_v42, %v8733_v23 }
0x11fb   : > { %7865 = vmatpush3.msra.mxu1 %v5485_v11  ;;  %v5297_v22 = vcombine.high %v5281_v42, %v5281_v42 }
0x11fc   : > { %7880 = vmatprep.subr.mxu1 %v8423_v0  ;;  %v5315_v60 = vrot.slane %v5298_v58, %v8733_v23 }
0x1265   : > { %v5207_v28 = vpop.permute.xlu0 %5206  ;;  %v5200_v56 = vpop.permute.xlu1 %5199 }
0x1266   : > { %v5341_v2 = vadd.f32 %v5307_v5, %v5207_v28  ;;  %v5340_v15 = vadd.f32 %v5303_v20, %v5200_v56  ;;  %v5232_v5 = vrot.slane %v9241_v62, %v8837_v4  ;;  %v5267_v20 = vcombine.high %v5265_v19, %v5265_v19 }
0x1268   : > { %8246 = vtanh.f32 %v5341_v2  ;;  %v5295_v56 = vrot.slane %v5267_v20, %v8752_v39  ;;  %v1229_v20 = vld [vmem:[%s9540_s28 + $0x80] sm:$0xff] }
0x1269   : > { %8248 = vtanh.f32 %v5340_v15  ;;  %v5214_v34 = vpop.permute.xlu1 %5213  ;;  %v5327_v15 = vrot.slane %v5297_v22, %v8733_v23 }
0x126a   : > { %v5342_v17 = vadd.f32 %v5311_v3, %v5214_v34 }
0x126c   : > { %8250 = vtanh.f32 %v5342_v17  ;;  %v5323_v17 = vrot.slane %v5295_v56, %v8733_v23 }
0x1275   : > { %v8247_v27 = vpop.eup %8246 }
0x1276   : > { %v8249_v21 = vpop.eup %8248  ;;  %v5358_v35 = vmul.f32 1.442695, %v8247_v27 }
0x1277   : > { %v5356_v41 = vmul.f32 1.442695, %v8249_v21 }
0x1278   : > { %8252 = vpow2.f32 %v5358_v35 }
0x1279   : > { %v8251_v40 = vpop.eup %8250  ;;  %8254 = vpow2.f32 %v5356_v41 }
0x127a   : > { %v5360_v43 = vmul.f32 1.442695, %v8251_v40 }
0x127c   : > { %8256 = vpow2.f32 %v5360_v43 }
0x1285   : > { %v8253_v44 = vpop.eup %8252 }
0x1286   : > { %v8255_v45 = vpop.eup %8254  ;;  %v5375_v46 = vsel %vm1675_vm2, %v8253_v44, 0.0 }
0x1287   : > { %v5372_v47 = vsel %vm1675_vm2, %v8255_v45, 0.0  ;;  %5376 = vadd.xlane.f32.xlu0 %v5375_v46 }
0x1288   : > { %5373 = vadd.xlane.f32.xlu1 %v5372_v47 }
0x1289   : > { %v9260_v51 = vpop.eup %8256 }
0x128a   : > { %v5378_v31 = vsel %vm1675_vm2, %v9260_v51, 0.0 }
0x128b   : > { %5379 = vadd.xlane.f32.xlu0 %v5378_v31 }
0x1299   : > { %5227 = vbcast.lane.b32.xlu1 %v5225_v53, 256  ;;  %v7154_v53 = vld [vmem:[%s9545_s6 + $0x2] ss:$0 sm:$0xff] }
0x12a1   : > { %5220 = vbcast.lane.b32.xlu0 %v5218_v14, 256 }
0x1310   : > { %v5377_v33 = vpop.xlane.xlu0 %5376 }
0x1311   : > { %v5374_v57 = vpop.xlane.xlu1 %5373  ;;  %8258 = vrcp.f32 %v5377_v33 }
0x1312   : > { %8260 = vrcp.f32 %v5374_v57  ;;  %v1228_v57 = vld [vmem:[%s9540_s28 + $0x78] sm:$0xff] }
0x1314   : > { %v9272_v37 = vpop.xlane.xlu0 %5379 }
0x1315   : > { %v5228_v26 = vpop.permute.xlu1 %5227 }
0x1316   : > { %v5344_v59 = vadd.f32 %v5319_v25, %v5228_v26  ;;  %v1227_v25 = vld [vmem:[%s9540_s28 + $0x70] sm:$0xff]  ;;  %v1225_v26 = vld [vmem:[%s9540_s28 + $0x60] sm:$0xff] }
0x1318   : > { %8262 = vtanh.f32 %v5344_v59  ;;  %v5221_v36 = vpop.permute.xlu0 %5220  ;;  %v5299_v59 = vcombine.high %v5295_v56, %v5295_v56 }
0x1319   : > { %v5343_v49 = vadd.f32 %v5315_v60, %v5221_v36 }
0x131a   : > { %v5331_v36 = vrot.slane %v5299_v59, %v8733_v23  ;;  %v7158_v23 = vld [vmem:[%s9545_s6 + $0x3] ss:$0 sm:$0xff]  ;;  %v7170_v59 = vld [vmem:[%s9545_s6 + $0x6] ss:$0 sm:$0xff] }
0x131b   : > { %8264 = vtanh.f32 %v5343_v49 }
0x131e   : > { %v8259_v61 = vpop.eup %8258 }
0x131f   : > { %v8261_v63 = vpop.eup %8260  ;;  %v5405_v1 = vmul.f32 %v8259_v61, %v8253_v44 }
0x1320   : > { %v5404_v6 = vmul.f32 %v8261_v63, %v8255_v45 }
0x1321   : > { %7860 = vmatmul.mubr.msk.f32.vlgmr.msra.gmra.mxu0 %vm1675_vm2, %v5405_v1 }
0x1322   : > { %7867 = vmatmul.mubr.msk.f32.vlgmr.msra.gmra.mxu1 %vm1675_vm2, %v5404_v6  ;;  %7870 = vmatpush3.msra.mxu0 %v1224_v50 }
0x1323   : > { %7871 = vmatprep.subr.mxu0 %v1223_v8  ;;  %7877 = vmatprep.mubr.msk.f32.mxu0 %vm1275_vm1, %v9193_v30 }
0x1324   : > { %7872 = vmatpush3.msra.mxu0 %v1223_v8  ;;  %7884 = vmatprep.mubr.msk.f32.mxu1 %vm8424_vm0, %v8423_v0 }
0x1325   : > { %v8263_v48 = vpop.eup %8262  ;;  %7873 = vmatprep.subr.mxu0 %v1222_v52 }
0x1326   : > { %v5364_v10 = vmul.f32 1.442695, %v8263_v48  ;;  %7874 = vmatpush3.msra.mxu0 %v1222_v52 }
0x1327   : > { %7875 = vmatprep.subr.mxu0 %v1221_v9 }
0x1328   : > { %v8265_v11 = vpop.eup %8264  ;;  %8266 = vpow2.f32 %v5364_v10  ;;  %7876 = vmatpush3.msra.mxu0 %v1221_v9 }
0x1329   : > { %v5362_v24 = vmul.f32 1.442695, %v8265_v11  ;;  %7878 = vmatmul.mubr.msk.f32.vlgmr.msra.gmra.mxu0 %vm1275_vm1, %v9184_v29  ;;  %7898 = vmatprep.subr.mxu0 %v8423_v0 }
0x132a   : > { %7902 = vmatprep.mubr.msk.f32.mxu0 %vm8424_vm0, %v8423_v0 }
0x132b   : > { %8268 = vpow2.f32 %v5362_v24 }
0x1335   : > { %v9289_v7 = vpop.eup %8266 }
0x1336   : > { %v5384_v12 = vsel %vm1675_vm2, %v9289_v7, 0.0 }
0x1337   : > { %5385 = vadd.xlane.f32.xlu1 %v5384_v12  ;;  %v1232_v12 = vld [vmem:[%s9540_s28 + $0x98] sm:$0xff] }
0x1338   : > { %v9293_v13 = vpop.eup %8268 }
0x1339   : > { %v5381_v18 = vsel %vm1675_vm2, %v9293_v13, 0.0 }
0x133a   : > { %5382 = vadd.xlane.f32.xlu0 %v5381_v18 }
0x1348   : > { %5241 = vbcast.lane.b32.xlu1 %v5239_v32, 256  ;;  %v1231_v32 = vld [vmem:[%s9540_s28 + $0x90] sm:$0xff] }
0x1350   : > { %5234 = vbcast.lane.b32.xlu0 %v5232_v5, 256  ;;  %v1230_v5 = vld [vmem:[%s9540_s28 + $0x88] sm:$0xff] }
0x13c0   : > { %v9301_v28 = vpop.xlane.xlu1 %5385 }
0x13c3   : > { %v9304_v2 = vpop.xlane.xlu0 %5382 }
0x13c4   : > { %v5242_v3 = vpop.permute.xlu1 %5241 }
0x13c5   : > { %v5346_v34 = vadd.f32 %v5327_v15, %v5242_v3 }
0x13c7   : > { %8270 = vtanh.f32 %v5346_v34  ;;  %v5235_v38 = vpop.permute.xlu0 %5234 }
0x13c8   : > { %v5345_v27 = vadd.f32 %v5323_v17, %v5235_v38 }
0x13ca   : > { %8272 = vtanh.f32 %v5345_v27  ;;  %v1236_v27 = vld [vmem:[%s9540_s28 + $0xb8] sm:$0xff] }
0x13d4   : > { %v8271_v4 = vpop.eup %8270 }
0x13d5   : > { %v5368_v21 = vmul.f32 1.442695, %v8271_v4 }
0x13d7   : > { %v8273_v35 = vpop.eup %8272  ;;  %8274 = vpow2.f32 %v5368_v21  ;;  %v1235_v21 = vld [vmem:[%s9540_s28 + $0xb0] sm:$0xff] }
0x13d8   : > { %v5366_v41 = vmul.f32 1.442695, %v8273_v35  ;;  %v1233_v35 = vld [vmem:[%s9540_s28 + $0xa0] sm:$0xff] }
0x13da   : > { %8276 = vpow2.f32 %v5366_v41 }
0x13db   : > { %8278 = vrcp.f32 %v9272_v37  ;;  %v1226_v37 = vld [vmem:[%s9540_s28 + $0x68] sm:$0xff] }
0x13e1   : > { %v5643_v39 = vpop.f32.mrf.mxu0 }
0x13e2   : > { %v5716_v40 = vpop.f32.mrf.mxu1 }
0x13e3   : > { %v5717_v43 = vadd.f32 %v5716_v40, %v5643_v39  ;;  %v7861_v44 = vpop.f32.mrf.mxu0  ;;  %v7166_v40 = vld [vmem:[%s9545_s6 + $0x5] ss:$0 sm:$0xff] }
0x13e4   : > { %v9309_v45 = vpop.eup %8274  ;;  %v7868_v46 = vpop.f32.mrf.mxu1 }
0x13e5   : > { %v5390_v47 = vsel %vm1675_vm2, %v9309_v45, 0.0 }
0x13e6   : > { %5391 = vadd.xlane.f32.xlu1 %v5390_v47 }
0x13e7   : > { %v9313_v31 = vpop.eup %8276 }
0x13e8   : > { %v5387_v14 = vsel %vm1675_vm2, %v9313_v31, 0.0  ;;  %v8279_v55 = vpop.eup %8278 }
0x13e9   : > { %v7879_v50 = vpop.f32.mrf.mxu0  ;;  %5388 = vadd.xlane.f32.xlu0 %v5387_v14  ;;  %v5406_v58 = vmul.f32 %v8279_v55, %v9260_v51  ;;  %v5246_v51 = vrot.slane %v9241_v62, %v8891_v16  ;;  %v1240_v14 = vld [vmem:[%s9540_s28 + $0xd8] sm:$0xff]  ;;  %v1239_v55 = vld [vmem:[%s9540_s28 + $0xd0] sm:$0xff] }
0x13ea   : > { %v5798_v19 = vadd.f32 %v7879_v50, %v7154_v53 }
0x13eb   : > { %v5792_v33 = vpop.f32.mrf.mxu0 }
0x13ec   : > { %v5793_v42 = vadd.f32 %v7154_v53, %v5792_v33  ;;  %7881 = vmatpush3.msra.mxu1 %v5798_v19  ;;  %v1238_v19 = vld [vmem:[%s9540_s28 + $0xc8] sm:$0xff]  ;;  %v1237_v33 = vld [vmem:[%s9540_s28 + $0xc0] sm:$0xff] }
0x13ed   : > { %7882 = vmatprep.subr.mxu1 %v8423_v0 }
0x13ee   : > { %7883 = vmatpush3.msra.mxu1 %v5793_v42  ;;  %v6671_v42 = vsel %vm1275_vm1, %v9193_v30, 0.0 }
0x13ef   : > { %7885 = vmatmul.mubr.msk.f32.vlgmr.msra.gmra.mxu1 %vm1675_vm2, %v5406_v58  ;;  %7887 = vmatprep.subr.mxu1 %v1228_v57 }
0x13f0   : > { %7888 = vmatpush3.msra.mxu1 %v1228_v57  ;;  %7895 = vmatprep.mubr.msk.f32.mxu1 %vm1275_vm1, %v9193_v30  ;;  %v6672_v57 = vsel %vm1275_vm1, %v9184_v29, 0.0 }
0x13f1   : > { %7889 = vmatprep.subr.mxu1 %v1227_v25  ;;  %v6673_v58 = vadd.f32 %v6672_v57, %v6671_v42 }
0x13f2   : > { %7890 = vmatpush3.msra.mxu1 %v1227_v25 }
0x13f3   : > { %7891 = vmatprep.subr.mxu1 %v1226_v37 }
0x13f4   : > { %7892 = vmatpush3.msra.mxu1 %v1226_v37 }
0x13f5   : > { %7893 = vmatprep.subr.mxu1 %v1225_v26 }
0x13f6   : > { %7894 = vmatpush3.msra.mxu1 %v1225_v26 }
0x13f7   : > { %7896 = vmatmul.mubr.msk.f32.vlgmr.msra.gmra.mxu1 %vm1275_vm1, %v9184_v29  ;;  %7916 = vmatprep.subr.mxu1 %v8423_v0 }
0x13f8   : > { %7920 = vmatprep.mubr.msk.f32.mxu1 %vm8424_vm0, %v8423_v0 }
0x13ff   : > { %5248 = vbcast.lane.b32.xlu0 %v5246_v51, 256  ;;  %v6674_v51 = vrot.slane %v6673_v58, 4 }
0x1472   : > { %v9334_v60 = vpop.xlane.xlu0 %5388 }
0x1476   : > { %v5249_v49 = vpop.permute.xlu0 %5248 }
0x1477   : > { %v5347_v61 = vadd.f32 %v5331_v36, %v5249_v49 }
0x1479   : > { %8280 = vtanh.f32 %v5347_v61 }
0x1486   : > { %v8281_v63 = vpop.eup %8280 }
0x1487   : > { %v5370_v1 = vmul.f32 1.442695, %v8281_v63 }
0x1489   : > { %8282 = vpow2.f32 %v5370_v1 }
0x148a   : > { %8284 = vrcp.f32 %v9304_v2  ;;  %v7162_v2 = vld [vmem:[%s9545_s6 + $0x4] ss:$0 sm:$0xff] }
0x148b   : > { %8286 = vrcp.f32 %v9301_v28  ;;  %v1234_v28 = vld [vmem:[%s9540_s28 + $0xa8] sm:$0xff] }
0x148c   : > { %8288 = vrcp.f32 %v9334_v60  ;;  %v6675_v60 = vadd.f32 %v6674_v51, %v6673_v58  ;;  %v1265_v58 = vld [vmem:[%s8606_s16 + $0x18] sm:$0xff]  ;;  %v6689_v51 = vstv %s8013_s8 }
0x1496   : > { %v9337_v6 = vpop.eup %8282 }
0x1497   : > { %v5393_v8 = vsel %vm1675_vm2, %v9337_v6, 0.0  ;;  %v8285_v48 = vpop.eup %8284 }
0x1498   : > { %5394 = vadd.xlane.f32.xlu0 %v5393_v8  ;;  %v5407_v18 = vmul.f32 %v8285_v48, %v9293_v13  ;;  %v8287_v3 = vpop.eup %8286  ;;  %v1244_v8 = vld [vmem:[%s9540_s28 + $0xf8] sm:$0xff]  ;;  %v1241_v48 = vld [vmem:[%s9540_s28 + $0xe0] sm:$0xff] }
0x1499   : > { %v5408_v4 = vmul.f32 %v8287_v3, %v9289_v7  ;;  %v8289_v44 = vpop.eup %8288 }
0x149a   : > { %v5409_v50 = vmul.f32 %v8289_v44, %v9313_v31  ;;  %v5392_v31 = vpop.xlane.xlu1 %5391 }
0x149b   : > { %8290 = vrcp.f32 %v5392_v31 }
0x14a8   : > { %v8291_v49 = vpop.eup %8290 }
0x14af   : > { %v5870_v16 = vpop.f32.mrf.mxu1 }
0x14b0   : > { %v5874_v62 = vadd.f32 %v5870_v16, %v5717_v43  ;;  %v6676_v16 = vrot.slane %v6675_v60, 2 }
0x14b1   : > { %v7886_v52 = vpop.f32.mrf.mxu1 }
0x14b2   : > { %v1243_v52 = vld [vmem:[%s9540_s28 + $0xf0] sm:$0xff] }
0x14b7   : > { %v7897_v9 = vpop.f32.mrf.mxu1 }
0x14b8   : > { %v5953_v10 = vadd.f32 %v7897_v9, %v7158_v23  ;;  %v6677_v9 = vadd.f32 %v6676_v16, %v6675_v60 }
0x14b9   : > { %v5947_v11 = vpop.f32.mrf.mxu1 }
0x14ba   : > { %v5948_v24 = vadd.f32 %v7158_v23, %v5947_v11  ;;  %7899 = vmatpush3.msra.mxu0 %v5953_v10  ;;  %v1242_v23 = vld [vmem:[%s9540_s28 + $0xe8] sm:$0xff]  ;;  %v1257_v10 = vld [vmem:[%s9546_s3 + $0x18] sm:$0xff] }
0x14bb   : > { %7900 = vmatprep.subr.mxu0 %v8423_v0 }
0x14bc   : > { %7901 = vmatpush3.msra.mxu0 %v5948_v24  ;;  %v1255_v24 = vld [vmem:[%s9546_s3 + $0x8] sm:$0xff] }
0x14bd   : > { %7903 = vmatmul.mubr.msk.f32.vlgmr.msra.gmra.mxu0 %vm1675_vm2, %v5407_v18  ;;  %7905 = vmatprep.subr.mxu0 %v1232_v12  ;;  %v1254_v18 = vld [vmem:[%s9546_s3] sm:$0xff] }
0x14be   : > { %7906 = vmatpush3.msra.mxu0 %v1232_v12  ;;  %7913 = vmatprep.mubr.msk.f32.mxu0 %vm1275_vm1, %v9193_v30  ;;  %v6680_v12 = vstv %s9404_s4  ;;  %s1088_s4 = sand.u32 1, %s8374_s18  }
0x14bf   : > { %7907 = vmatprep.subr.mxu0 %v1231_v32  ;;  %s1089_s8 = scalar_lea.vmem [#allocation5], %s1088_s4 }
0x14c0   : > { %7908 = vmatpush3.msra.mxu0 %v1231_v32  ;;  %s6935_s2 = sshll.u32 %s1089_s8, 4  ;;  %s6936_s2 = int_to_ptr.vmem [resolvable:$true] %s6935_s2 }
0x14c1   : > { %7909 = vmatprep.subr.mxu0 %v1230_v5  ;;  %s8320_s9 = scalar_lea.vmem %s6936_s2, 16 }
0x14c2   : > { %7910 = vmatpush3.msra.mxu0 %v1230_v5  ;;  %p8321_p9 = scmp.ne.s32.totalorder %s6936_s2, %s8320_s9 }
0x14c3   : > { %7911 = vmatprep.subr.mxu0 %v1229_v20 }
0x14c4   : > { %7912 = vmatpush3.msra.mxu0 %v1229_v20  ;;  %p8322_p10 = pnand %p8321_p9, %p8660_p1 }
0x14c5   : > { %7914 = vmatmul.mubr.msk.f32.vlgmr.msra.gmra.mxu0 %vm1275_vm1, %v9184_v29  ;;  %7934 = vmatprep.subr.mxu0 %v8423_v0 }
0x14c6   : > { %7938 = vmatprep.mubr.msk.f32.mxu0 %vm8424_vm0, %v8423_v0  ;;  %p8323_p11 = pneg %p8322_p10 }
0x157d   : > { %v6025_v13 = vpop.f32.mrf.mxu0 }
0x157e   : > { %v6029_v22 = vadd.f32 %v6025_v13, %v5874_v62  ;;  %v5410_v62 = vmul.f32 %v8291_v49, %v9309_v45  ;;  %v6678_v45 = vrot.slane %v6677_v9, 1 }
0x157f   : > { %v7904_v56 = vpop.f32.mrf.mxu0 }
0x1580   : > { %v6679_v11 = vadd.f32 %v6678_v45, %v6677_v9 }
0x1582   : > { %v6681_v32 = vmul.f32 %v6680_v12, %v6679_v11 }
0x1585   : > { %v7915_v15 = vpop.f32.mrf.mxu0 }
0x1586   : > { %v6108_v34 = vadd.f32 %v7915_v15, %v7162_v2 }
0x1587   : > { %v6102_v17 = vpop.f32.mrf.mxu0 }
0x1588   : > { %v6103_v38 = vadd.f32 %v7162_v2, %v6102_v17  ;;  %7917 = vmatpush3.msra.mxu1 %v6108_v34 }
0x1589   : > { %7918 = vmatprep.subr.mxu1 %v8423_v0 }
0x158a   : > { %7919 = vmatpush3.msra.mxu1 %v6103_v38 }
0x158b   : > { %7921 = vmatmul.mubr.msk.f32.vlgmr.msra.gmra.mxu1 %vm1675_vm2, %v5408_v4  ;;  %7923 = vmatprep.subr.mxu1 %v1236_v27  ;;  %v1261_v4 = vld [vmem:[%s9520_s10 + $0x18] sm:$0xff] }
0x158c   : > { %7924 = vmatpush3.msra.mxu1 %v1236_v27  ;;  %7931 = vmatprep.mubr.msk.f32.mxu1 %vm1275_vm1, %v9193_v30 }
0x158d   : > { %7925 = vmatprep.subr.mxu1 %v1235_v21 }
0x158e   : > { %7926 = vmatpush3.msra.mxu1 %v1235_v21  ;;  %v1260_v21 = vld [vmem:[%s9520_s10 + $0x10] sm:$0xff] }
0x158f   : > { %7927 = vmatprep.subr.mxu1 %v1234_v28 }
0x1590   : > { %7928 = vmatpush3.msra.mxu1 %v1234_v28  ;;  %v1258_v28 = vld [vmem:[%s9520_s10] sm:$0xff] }
0x1591   : > { %7929 = vmatprep.subr.mxu1 %v1233_v35 }
0x1592   : > { %7930 = vmatpush3.msra.mxu1 %v1233_v35  ;;  %v6682_v35 = vsel %vm1275_vm1, %v9222_v54, 0.0 }
0x1593   : > { %7932 = vmatmul.mubr.msk.f32.vlgmr.msra.gmra.mxu1 %vm1275_vm1, %v9184_v29  ;;  %7952 = vmatprep.subr.mxu1 %v8423_v0 }
0x1594   : > { %7956 = vmatprep.mubr.msk.f32.mxu1 %vm8424_vm0, %v8423_v0 }
0x164b   : > { %v6180_v7 = vpop.f32.mrf.mxu1 }
0x164c   : > { %v6184_v41 = vadd.f32 %v6180_v7, %v6029_v22  ;;  %v7174_v22 = vld [vmem:[%s9545_s6 + $0x7] ss:$0 sm:$0xff]  ;;  %v7178_v7 = vld [vmem:[%s9547_s1] ss:$0 sm:$0xff]  ;;  %s7182_s1 = sshll.u32 %s8643_s26, 4  ;;  %s6923_s6 = scalar_lea.sflag [#allocation6], %s1088_s4 }
0x164d   : > { %v7922_v39 = vpop.f32.mrf.mxu1 }
0x1653   : > { %v7933_v43 = vpop.f32.mrf.mxu1 }
0x1654   : > { %v6263_v46 = vadd.f32 %v7933_v43, %v7166_v40 }
0x1655   : > { %v6257_v47 = vpop.f32.mrf.mxu1 }
0x1656   : > { %v6258_v53 = vadd.f32 %v7166_v40, %v6257_v47  ;;  %7935 = vmatpush3.msra.mxu0 %v6263_v46  ;;  %v6683_v40 = vrot.slane %v6682_v35, 4 }
0x1657   : > { %7936 = vmatprep.subr.mxu0 %v8423_v0 }
0x1658   : > { %7937 = vmatpush3.msra.mxu0 %v6258_v53  ;;  %v6684_v47 = vadd.f32 %v6683_v40, %v6682_v35 }
0x1659   : > { %7939 = vmatmul.mubr.msk.f32.vlgmr.msra.gmra.mxu0 %vm1675_vm2, %v5409_v50  ;;  %7941 = vmatprep.subr.mxu0 %v1240_v14 }
0x165a   : > { %7942 = vmatpush3.msra.mxu0 %v1240_v14  ;;  %7949 = vmatprep.mubr.msk.f32.mxu0 %vm1275_vm1, %v9193_v30  ;;  %v6685_v50 = vrot.slane %v6684_v47, 2 }
0x165b   : > { %7943 = vmatprep.subr.mxu0 %v1239_v55 }
0x165c   : > { %7944 = vmatpush3.msra.mxu0 %v1239_v55 }
0x165d   : > { %7945 = vmatprep.subr.mxu0 %v1238_v19 }
0x165e   : > { %7946 = vmatpush3.msra.mxu0 %v1238_v19 }
0x165f   : > { %7947 = vmatprep.subr.mxu0 %v1237_v33 }
0x1660   : > { %7948 = vmatpush3.msra.mxu0 %v1237_v33  ;;  %v6686_v33 = vadd.f32 %v6685_v50, %v6684_v47 }
0x1661   : > { %7950 = vmatmul.mubr.msk.f32.vlgmr.msra.gmra.mxu0 %vm1275_vm1, %v9184_v29  ;;  %7970 = vmatprep.subr.mxu0 %v8423_v0 }
0x1662   : > { %7974 = vmatprep.mubr.msk.f32.mxu0 %vm8424_vm0, %v8423_v0  ;;  %v6687_v42 = vrot.slane %v6686_v33, 1 }
0x1719   : > { %v6335_v25 = vpop.f32.mrf.mxu0 }
0x171a   : > { %v6339_v37 = vadd.f32 %v6335_v25, %v6184_v41  ;;  %v1264_v25 = vld [vmem:[%s8606_s16 + $0x10] sm:$0xff] }
0x171b   : > { %v7940_v26 = vpop.f32.mrf.mxu0 }
0x171c   : > { %v1263_v26 = vld [vmem:[%s8606_s16 + $0x8] sm:$0xff] }
0x1721   : > { %v7951_v36 = vpop.f32.mrf.mxu0 }
0x1722   : > { %v6418_v61 = vadd.f32 %v7951_v36, %v7170_v59 }
0x1723   : > { %v6412_v63 = vpop.f32.mrf.mxu0 }
0x1724   : > { %v6413_v1 = vadd.f32 %v7170_v59, %v6412_v63  ;;  %7953 = vmatpush3.msra.mxu1 %v6418_v61  ;;  %v1262_v59 = vld [vmem:[%s8606_s16] sm:$0xff] }
0x1725   : > { %7954 = vmatprep.subr.mxu1 %v8423_v0  ;;  %v1266_v63 = vld [vmem:[%s8612_s22] sm:$0x1] }
0x1726   : > { %7955 = vmatpush3.msra.mxu1 %v6413_v1 }
0x1727   : > { %7957 = vmatmul.mubr.msk.f32.vlgmr.msra.gmra.mxu1 %vm1675_vm2, %v5410_v62  ;;  %7959 = vmatprep.subr.mxu1 %v1244_v8 }
0x1728   : > { %7960 = vmatpush3.msra.mxu1 %v1244_v8  ;;  %7967 = vmatprep.mubr.msk.f32.mxu1 %vm1275_vm1, %v9193_v30  ;;  %v1256_v30 = vld [vmem:[%s9546_s3 + $0x10] sm:$0xff]  ;;  %s6933_s3 = scalar_lea.hbm %s8617_s24, %s7182_s1 }
0x1729   : > { %7961 = vmatprep.subr.mxu1 %v1243_v52 }
0x172a   : > { %7962 = vmatpush3.msra.mxu1 %v1243_v52 }
0x172b   : > { %7963 = vmatprep.subr.mxu1 %v1242_v23 }
0x172c   : > { %7964 = vmatpush3.msra.mxu1 %v1242_v23 }
0x172d   : > { %7965 = vmatprep.subr.mxu1 %v1241_v48 }
0x172e   : > { %7966 = vmatpush3.msra.mxu1 %v1241_v48 }
0x172f   : > { %7968 = vmatmul.mubr.msk.f32.vlgmr.msra.gmra.mxu1 %vm1275_vm1, %v9184_v29  ;;  %7988 = vmatprep.subr.mxu1 %v8423_v0  ;;  %v5395_v29 = vpop.xlane.xlu0 %5394 }
0x1730   : > { %7989 = vmatpush3.msra.mxu1 %v1257_v10  ;;  %7996 = vmatprep.mubr.msk.f32.mxu1 %vm8424_vm0, %v8423_v0  ;;  %8292 = vrcp.f32 %v5395_v29 }
0x1731   : > { %7990 = vmatprep.subr.mxu1 %v8423_v0 }
0x1732   : > { %7991 = vmatpush3.msra.mxu1 %v1256_v30 }
0x1733   : > { %7992 = vmatprep.subr.mxu1 %v8423_v0 }
0x1734   : > { %7993 = vmatpush3.msra.mxu1 %v1255_v24 }
0x1735   : > { %7994 = vmatprep.subr.mxu1 %v8423_v0 }
0x1736   : > { %7995 = vmatpush3.msra.mxu1 %v1254_v18 }
0x1737   : > { %7997 = vmatmul.mubr.msk.f32.vlgmr.msra.gmra.mxu1 %vm1275_vm1, %v6681_v32 }
0x173d   : > { %v8293_v2 = vpop.eup %8292 }
0x173e   : > { %v5411_v17 = vmul.f32 %v8293_v2, %v9337_v6  ;;  %v1259_v6 = vld [vmem:[%s9520_s10 + $0x8] sm:$0xff]  ;;  %s8427_s10 = smov [#allocation5]  }
0x173f   : > { %s8324_s12 = sshll.u32 %s8427_s10, 4  ;;  %s8325_s12 = int_to_ptr.vmem [resolvable:$false] %s8324_s12 }
0x1740   : > { %s8326_s14 = scalar_lea.vmem %s8325_s12, 32  ;;  %p8327_p12 = scmp.lt.s32.totalorder %s6936_s2, %s8325_s12 }
0x1741   : > { %p8328_p13 = scmp.lt.s32.totalorder %s8326_s14, %s8320_s9 }
0x1743   : > { %p8329_p0 = por %p8328_p13, %p8327_p12 }
0x1745   : > { %p8330_p3 = pnand %p8329_p0, %p8323_p11 }
0x17e7   : > { %v6490_v5 = vpop.f32.mrf.mxu1 }
0x17e8   : > { %v6494_v20 = vadd.f32 %v6490_v5, %v6339_v37  ;;  %v6688_v37 = vadd.f32 %v6687_v42, %v6686_v33 }
0x17e9   : > { %v7958_v13 = vpop.f32.mrf.mxu1 }
0x17ea   : > { %v6690_v60 = vmul.f32 %v6689_v51, %v6688_v37 }
0x17ef   : > { %v7969_v56 = vpop.f32.mrf.mxu1 }
0x17f0   : > { %v6573_v15 = vadd.f32 %v7969_v56, %v7174_v22 }
0x17f1   : > { %v6567_v3 = vpop.f32.mrf.mxu1 }
0x17f2   : > { %v6568_v34 = vadd.f32 %v7174_v22, %v6567_v3  ;;  %7971 = vmatpush3.msra.mxu0 %v6573_v15 }
0x17f3   : > { %7972 = vmatprep.subr.mxu0 %v8423_v0 }
0x17f4   : > { %7973 = vmatpush3.msra.mxu0 %v6568_v34 }
0x17f5   : > { %7975 = vmatmul.mubr.msk.f32.vlgmr.msra.gmra.mxu0 %vm1675_vm2, %v5411_v17  ;;  %7977 = vmatprep.subr.mxu0 %v8423_v0 }
0x17f6   : > { %7985 = vmatprep.mubr.msk.f32.mxu0 %vm8424_vm0, %v8423_v0  ;;  %7978 = vmatpush3.msra.mxu0 %v1261_v4 }
0x17f7   : > { %v6841_v38 = vpop.f32.mrf.mxu1  ;;  %7979 = vmatprep.subr.mxu0 %v8423_v0 }
0x17f8   : > { %7980 = vmatpush3.msra.mxu0 %v1260_v21 }
0x17f9   : > { %v7998_v27 = vpop.f32.mrf.mxu1  ;;  %7981 = vmatprep.subr.mxu0 %v8423_v0 }
0x17fa   : > { %7982 = vmatpush3.msra.mxu0 %v1259_v6 }
0x17fb   : > { %7983 = vmatprep.subr.mxu0 %v8423_v0 }
0x17fc   : > { %7984 = vmatpush3.msra.mxu0 %v1258_v28 }
0x17fd   : > { %7999 = vmatprep.subr.mxu0 %v8423_v0 }
0x18b5   : > { %v6645_v41 = vpop.f32.mrf.mxu0 }
0x18b6   : > { %v6649_v39 = vadd.f32 %v6645_v41, %v6494_v20 }
0x18b7   : > { %v7976_v43 = vpop.f32.mrf.mxu0 }
0x18b8   : > { %v6656_v44 = vadd.f32 %v7178_v7, %v6649_v39 }
0x18ba   : > { %v6691_v46 = vsel %vm1275_vm1, %v6656_v44, 0.0 }
0x18bb   : > { %v6692_v53 = vrot.slane %v6691_v46, 4 }
0x18bd   : > { %v6693_v14 = vadd.f32 %v6692_v53, %v6691_v46 }
0x18bf   : > { %v6694_v55 = vrot.slane %v6693_v14, 2 }
0x18c1   : > { %v6695_v19 = vadd.f32 %v6694_v55, %v6693_v14 }
0x18c3   : > { %v6696_v31 = vrot.slane %v6695_v19, 1 }
0x18c5   : > { %v6697_v54 = vadd.f32 %v6696_v31, %v6695_v19 }
0x18c7   : > { %v6698_v57 = vmul.f32 %v6697_v54, %v6680_v12 }
0x18c9   : > { %7986 = vmatmul.mubr.msk.f32.vlgmr.msra.gmra.mxu0 %vm1275_vm1, %v6698_v57 }
0x18ca   : > { %8000 = vmatpush3.msra.mxu0 %v1265_v58  ;;  %8007 = vmatprep.mubr.msk.f32.mxu0 %vm8424_vm0, %v8423_v0 }
0x18cb   : > { %8001 = vmatprep.subr.mxu0 %v8423_v0 }
0x18cc   : > { %8002 = vmatpush3.msra.mxu0 %v1264_v25 }
0x18cd   : > { %8003 = vmatprep.subr.mxu0 %v8423_v0 }
0x18ce   : > { %8004 = vmatpush3.msra.mxu0 %v1263_v26 }
0x18cf   : > { %8005 = vmatprep.subr.mxu0 %v8423_v0 }
0x18d0   : > { %8006 = vmatpush3.msra.mxu0 %v1262_v59 }
0x18d1   : > { %8008 = vmatmul.mubr.msk.f32.vlgmr.msra.gmra.mxu0 %vm1275_vm1, %v6690_v60 }
0x1989   : > { %v6768_v36 = vpop.f32.mrf.mxu0 }
0x198a   : > { %v6842_v61 = vadd.f32 %v6841_v38, %v6768_v36 }
0x198b   : > { %v7987_v49 = vpop.f32.mrf.mxu0 }
0x1991   : > { %v6914_v1 = vpop.f32.mrf.mxu0 }
0x1992   : > { %v6918_v8 = vadd.f32 %v6914_v1, %v6842_v61 }
0x1993   : > { %v8009_v16 = vpop.f32.mrf.mxu0 }
0x1994   : > { %v6919_v62 = vadd.f32 %v6918_v8, %v1266_v63 }
0x1996   : > { %6921 = vst.msk [vmem:[%s1089_s8] sm:$0x1] %vm6920_vm3, %v6919_v62 }
0x1997   : > { %8333 = shalt.err (!%p8330_p3)
}
0x1998   : > { %s8334_s26 = scalar_lea.hbm %s6933_s3, 16  ;;  %s8338_s4 = scalar_lea.hbm %s8617_s24, 32 }
0x1999   : > { %p8335_p4 = scmp.ne.s32.totalorder %s6933_s3, %s8334_s26  ;;  %p8339_p7 = scmp.lt.s32.totalorder %s6933_s3, %s8617_s24 }
0x199a   : > { %p8340_p8 = scmp.lt.s32.totalorder %s8338_s4, %s8334_s26 }
0x199b   : > { %p8336_p5 = pnand %p8335_p4, %p8660_p1 }
0x199c   : > { %p8341_p9 = por %p8340_p8, %p8339_p7 }
0x199d   : > { %p8337_p6 = pneg %p8336_p5 }
0x199f   : > { %p8342_p10 = pnand %p8341_p9, %p8337_p6 }
0x19a1   : > { %8345 = shalt.err (!%p8342_p10)
}
0x19a2   : > { %8014 = dma.vmem_to_hbm [thread:$0]  (%p8660_p1), %s6936_s2, 16, %s6933_s3, %s6923_s6  }
0x19a3 PF: > { %p8020_p11 = scmp.ge.s32.totalorder %s8382_s27, 2  ;;  %s6947_s9 = sand.u32 1, %s8370_s23  }
0x19a4   : > { %s6948_s14 = scalar_lea.sflag [#allocation6], %s6947_s9 }
0x19a5   : > { %p8017_p12 = pnand %p8020_p11, %p8664_p2 }
0x19a7   : > { %p8018_p13 = pneg %p8017_p12 }
0x19a9   : > { %8365 = dma.done.wait (%p8018_p13), %s6948_s14, 16  }
0x19aa   : > { %8367 = vsyncadd (%p8018_p13), %s6948_s14, 4294967280  ;;  %p95_p0 = scmp.ge.s32.totalorder %s8647_s5, 4   ;;  %s9548_s23 = smov %s8374_s18 }
0x19ab   : > { %s9549_s18 = smov %s8378_s0  ;;  %s9550_s0 = smov %s8658_s13 }
0x19ac   : > { %s9551_s27 = smov %s8647_s5  ;;  %97 = sbr.rel (!%p95_p0) target bundleno = 90 (0x5a), region = 235 }
0x19b1   :  { %6952 = vsyncpa [#allocation6], 1 }
0x19b2   :  { %6954 = vsyncpa [#allocation6 + $0x1], 1 }

</bundles_post_ra>
